<compile_context>
chip_gen: v7x
topology: tpu7x:2x2x1
jax: 0.10.0
libtpu: 0.0.40
codegen_flags: <defaults>
</compile_context>

<pallas_src>
import functools

import jax
import jax.numpy as jnp
from jax.experimental import pallas as pl
from jax.experimental.pallas import tpu as pltpu

SIZE_EMBEDDING = 20
NB_CLASSES = 2
LANE = 128          # TPU lane width: pad all feature / node / edge dims to this
NUM_LAYERS = 3


def _round_up(x, m):
    return ((x + m - 1) // m) * m


def _pad2(x, rows, cols, dtype):
    """Zero-pad a 2-D array to (rows, cols) and cast."""
    out = jnp.zeros((rows, cols), dtype)
    return out.at[: x.shape[0], : x.shape[1]].set(x.astype(dtype))


def _pad_bias(b):
    """(1, k) bias -> (LANE,) f32 row, zero-padded."""
    out = jnp.zeros((LANE,), jnp.float32)
    return out.at[: b.shape[1]].set(b[0].astype(jnp.float32))


# ---------------------------------------------------------------------------
# Single fused kernel: 3x (message -> mean aggregate -> apply) + edge predictor
#
#   m        = [h_src, e] @ W_msg + b_msg            (concat fused: 2 matmuls)
#   h_neigh  = S_scaled @ m                          (S pre-scaled by 1/deg)
#   h        = relu([h, h_neigh] @ W_apply + b_apply)
#   score    = [h_u, h_v] @ W_pred + b_pred
#
# Gathers h[src] / h[dst] run on the MXU via one-hot matrices G_src / G_dst.
# Weights live in one stacked (14,128,128) slab, biases in one (7,128) slab.
# Everything f32 (exact match to the PyTorch reference).
# ---------------------------------------------------------------------------
def egraphsage_kernel(nf_ref, ef_ref, gsrc_ref, gdst_ref, ssc_ref,
                      w_ref, b_ref, out_ref, *, num_layers):
    f32 = jnp.float32

    # Toy-size graph: keep these resident in vregs across the unrolled loop.
    # (At production N/E these should be re-read per use to avoid spills.)
    gsrc = gsrc_ref[...]            # (Ep, Np) one-hot src gather
    gdst = gdst_ref[...]            # (Ep, Np) one-hot dst gather
    ssc = ssc_ref[...]              # (Np, Ep) invdeg-scaled dst incidence
    e = ef_ref[...]                 # (Ep, LANE) edge features (constant)
    biases = b_ref[...]             # (7, LANE)

    h = nf_ref[...]                 # (Np, LANE) node features

    for layer in range(num_layers):
        wm_h = w_ref[4 * layer + 0]          # (LANE, LANE)
        wm_e = w_ref[4 * layer + 1]
        wa_h = w_ref[4 * layer + 2]
        wa_n = w_ref[4 * layer + 3]
        bm = biases[2 * layer: 2 * layer + 1]        # (1, LANE)
        ba = biases[2 * layer + 1: 2 * layer + 2]    # (1, LANE)

        # gather source-node features on the MXU (exact: one-hot)
        h_src = jnp.dot(gsrc, h, preferred_element_type=f32)        # (Ep, LANE)

        # message: [h_src, e] @ W_msg + b_msg
        m = (jnp.dot(h_src, wm_h, preferred_element_type=f32)
             + jnp.dot(e, wm_e, preferred_element_type=f32)
             + bm)

        # mean aggregation by dst: h_neigh = (invdeg * one_hot_dst^T) @ m
        h_neigh = jnp.dot(ssc, m, preferred_element_type=f32)       # (Np, LANE)

        # apply: relu([h, h_neigh] @ W_apply + b_apply)
        h = (jnp.dot(h, wa_h, preferred_element_type=f32)
             + jnp.dot(h_neigh, wa_n, preferred_element_type=f32)
             + ba)
        h = jnp.maximum(h, 0.0)

    # edge predictor: [h_u, h_v] @ W_pred + b_pred
    w_u = w_ref[4 * num_layers + 0]
    w_v = w_ref[4 * num_layers + 1]
    bp = biases[2 * num_layers: 2 * num_layers + 1]
    h_u = jnp.dot(gsrc, h, preferred_element_type=f32)
    h_v = jnp.dot(gdst, h, preferred_element_type=f32)
    score = (jnp.dot(h_u, w_u, preferred_element_type=f32)
             + jnp.dot(h_v, w_v, preferred_element_type=f32)
             + bp)
    out_ref[...] = score                      # lane-dense (Ep, 128) store


# ---------------------------------------------------------------------------
# Parameter init (deterministic, mimics torch.nn.Linear default U(-k, k)).
# Weights stored transposed (in, out); cat-weights pre-split so the kernel can
# fuse "concat + linear" as two matmuls.
# ---------------------------------------------------------------------------
def linear_params(key, fan_in, fan_out):
    kw, kb = jax.random.split(key)
    bound = 1.0 / jnp.sqrt(jnp.float32(fan_in))
    w = jax.random.uniform(kw, (fan_in, fan_out), jnp.float32, -bound, bound)
    b = jax.random.uniform(kb, (1, fan_out), jnp.float32, -bound, bound)
    return w, b


def init_model_params(key, ndim_in, ndim_out, edim):
    layer_dims = [(ndim_in, edim, SIZE_EMBEDDING),
                  (SIZE_EMBEDDING, edim, SIZE_EMBEDDING),
                  (SIZE_EMBEDDING, edim, ndim_out)]
    keys = jax.random.split(key, len(layer_dims) + 1)
    layers = []
    for k, (din, de, dout) in zip(keys[:-1], layer_dims):
        k_msg, k_apply = jax.random.split(k)
        w_msg, b_msg = linear_params(k_msg, din + de, dout)          # W_msg
        w_apply, b_apply = linear_params(k_apply, din + dout, dout)  # W_apply
        layers.append(dict(
            wm_h=w_msg[:din], wm_e=w_msg[din:], bm=b_msg,
            wa_h=w_apply[:din], wa_n=w_apply[din:], ba=b_apply))
    w_pred, b_pred = linear_params(keys[-1], ndim_out * 2, NB_CLASSES)
    pred = dict(w_src=w_pred[:ndim_out], w_dst=w_pred[ndim_out:], b=b_pred)
    return dict(layers=layers, pred=pred)


# ---------------------------------------------------------------------------
# One-time (per-model / per-graph) preprocessing, hoisted out of the call path.
# ---------------------------------------------------------------------------
def pack_params(params):
    """Pad all weights to (128,128) / biases to (128,) and stack into 2 slabs."""
    ws, bs = [], []
    for lp in params["layers"]:
        ws += [_pad2(lp["wm_h"], LANE, LANE, jnp.float32),
               _pad2(lp["wm_e"], LANE, LANE, jnp.float32),
               _pad2(lp["wa_h"], LANE, LANE, jnp.float32),
               _pad2(lp["wa_n"], LANE, LANE, jnp.float32)]
        bs += [_pad_bias(lp["bm"]), _pad_bias(lp["ba"])]
    pp = params["pred"]
    ws += [_pad2(pp["w_src"], LANE, LANE, jnp.float32),
           _pad2(pp["w_dst"], LANE, LANE, jnp.float32)]
    bs += [_pad_bias(pp["b"])]
    return jnp.stack(ws), jnp.stack(bs)        # (14,128,128), (7,128)


def prepare_graph(src, dst, num_nodes):
    """One-hot gather matrices + invdeg-pre-scaled dst incidence, lane-padded."""
    e_cnt = src.shape[0]
    n_pad = _round_up(num_nodes, LANE)
    e_pad = _round_up(e_cnt, LANE)
    node_ids = jnp.arange(num_nodes)
    g_src = (src[:, None] == node_ids[None, :]).astype(jnp.float32)   # (E, N)
    g_dst = (dst[:, None] == node_ids[None, :]).astype(jnp.float32)   # (E, N)
    deg = jnp.sum(g_dst, axis=0, keepdims=True)                       # (1, N)
    invdeg = jnp.where(deg > 0, 1.0 / jnp.maximum(deg, 1.0), 0.0)
    s_scaled = g_dst.T * invdeg.T                                     # (N, E)
    return (_pad2(g_src, e_pad, n_pad, jnp.float32),
            _pad2(g_dst, e_pad, n_pad, jnp.float32),
            _pad2(s_scaled, n_pad, e_pad, jnp.float32))


# ---------------------------------------------------------------------------
# Full Model forward:  h = SAGE(g, nfeats, efeats);  score = MLPPredictor(g, h)
# ---------------------------------------------------------------------------
def model_forward(w_stack, b_stack, g_src_p, g_dst_p, s_p, nfeats, efeats):
    e_cnt = efeats.shape[0]
    n_pad = s_p.shape[0]
    e_pad = s_p.shape[1]

    h0 = nfeats.reshape(nfeats.shape[0], -1)    # (N, Din), middle dim is 1
    e0 = efeats.reshape(efeats.shape[0], -1)    # (E, De)
    nf_p = _pad2(h0, n_pad, LANE, jnp.float32)
    ef_p = _pad2(e0, e_pad, LANE, jnp.float32)

    kernel = functools.partial(egraphsage_kernel, num_layers=NUM_LAYERS)
    vmem = pltpu.MemorySpace.VMEM
    score_p = pl.pallas_call(
        kernel,
        out_shape=jax.ShapeDtypeStruct((e_pad, LANE), jnp.float32),
        in_specs=[pl.BlockSpec(memory_space=vmem)] * 7,
        out_specs=pl.BlockSpec(memory_space=vmem),
        compiler_params=pltpu.CompilerParams(
            vmem_limit_bytes=32 * 1024 * 1024),
    )(nf_p, ef_p, g_src_p, g_dst_p, s_p, w_stack, b_stack)

    # SAGE's nfeats.sum(1) was over a size-1 dim (identity). Slice the
    # lane-dense padded output slab back to (E, NB_CLASSES).
    return score_p[:e_cnt, :NB_CLASSES]


if __name__ == "__main__":
    key = jax.random.PRNGKey(0)
    N, E = 8, 16
    ndim_in, edim, ndim_out = 16, 16, 12

    k_src, k_dst, k_e, k_p = jax.random.split(key, 4)
    src = jax.random.randint(k_src, (E,), 0, N)
    dst = jax.random.randint(k_dst, (E,), 0, N)
    nfeats = jnp.ones((N, 1, ndim_in), jnp.float32)     # E-GraphSAGE uses ones
    efeats = jax.random.normal(k_e, (E, 1, edim), jnp.float32)

    params = init_model_params(k_p, ndim_in, ndim_out, edim)

    # one-time preprocessing (constant w.r.t. the forward call)
    w_stack, b_stack = pack_params(params)
    g_src_p, g_dst_p, s_p = prepare_graph(src, dst, N)

    fwd = jax.jit(model_forward)
    scores = fwd(w_stack, b_stack, g_src_p, g_dst_p, s_p, nfeats, efeats)
    scores = jax.block_until_ready(scores)

    assert scores.shape == (E, NB_CLASSES)
    assert scores.dtype == jnp.float32
    assert bool(jnp.all(jnp.isfinite(scores)))
    print("KERNEL_OK")
</pallas_src>

<mosaic_0001>
module attributes {stable_mosaic.version = 11 : i64} {
  func.func @egraphsage_kernel(%arg0: memref<128x128xf32, #tpu.memory_space<vmem>>, %arg1: memref<128x128xf32, #tpu.memory_space<vmem>>, %arg2: memref<128x128xf32, #tpu.memory_space<vmem>>, %arg3: memref<128x128xf32, #tpu.memory_space<vmem>>, %arg4: memref<128x128xf32, #tpu.memory_space<vmem>>, %arg5: memref<14x128x128xf32, #tpu.memory_space<vmem>>, %arg6: memref<7x128xf32, #tpu.memory_space<vmem>>, %arg7: memref<128x128xf32, #tpu.memory_space<vmem>>) attributes {dimension_semantics = [], scalar_prefetch = 0 : i64, scratch_operands = 0 : i64, tpu.core_type = #tpu.core_type<tc>} {
    %c0 = arith.constant 0 : index
    %c0_0 = arith.constant 0 : index
    %0 = vector.load %arg2[%c0, %c0_0] : memref<128x128xf32, #tpu.memory_space<vmem>>, vector<128x128xf32>
    %c0_1 = arith.constant 0 : index
    %c0_2 = arith.constant 0 : index
    %1 = vector.load %arg3[%c0_1, %c0_2] : memref<128x128xf32, #tpu.memory_space<vmem>>, vector<128x128xf32>
    %c0_3 = arith.constant 0 : index
    %c0_4 = arith.constant 0 : index
    %2 = vector.load %arg4[%c0_3, %c0_4] : memref<128x128xf32, #tpu.memory_space<vmem>>, vector<128x128xf32>
    %c0_5 = arith.constant 0 : index
    %c0_6 = arith.constant 0 : index
    %3 = vector.load %arg1[%c0_5, %c0_6] : memref<128x128xf32, #tpu.memory_space<vmem>>, vector<128x128xf32>
    %c0_7 = arith.constant 0 : index
    %c0_8 = arith.constant 0 : index
    %4 = vector.load %arg6[%c0_7, %c0_8] : memref<7x128xf32, #tpu.memory_space<vmem>>, vector<7x128xf32>
    %c0_9 = arith.constant 0 : index
    %c0_10 = arith.constant 0 : index
    %5 = vector.load %arg0[%c0_9, %c0_10] : memref<128x128xf32, #tpu.memory_space<vmem>>, vector<128x128xf32>
    %c0_11 = arith.constant 0 : index
    %c0_12 = arith.constant 0 : index
    %c0_13 = arith.constant 0 : index
    %6 = vector.load %arg5[%c0_11, %c0_12, %c0_13] : memref<14x128x128xf32, #tpu.memory_space<vmem>>, vector<1x128x128xf32>
    %7 = vector.shape_cast %6 : vector<1x128x128xf32> to vector<128x128xf32>
    %c1 = arith.constant 1 : index
    %c0_14 = arith.constant 0 : index
    %c0_15 = arith.constant 0 : index
    %8 = vector.load %arg5[%c1, %c0_14, %c0_15] : memref<14x128x128xf32, #tpu.memory_space<vmem>>, vector<1x128x128xf32>
    %9 = vector.shape_cast %8 : vector<1x128x128xf32> to vector<128x128xf32>
    %c2 = arith.constant 2 : index
    %c0_16 = arith.constant 0 : index
    %c0_17 = arith.constant 0 : index
    %10 = vector.load %arg5[%c2, %c0_16, %c0_17] : memref<14x128x128xf32, #tpu.memory_space<vmem>>, vector<1x128x128xf32>
    %11 = vector.shape_cast %10 : vector<1x128x128xf32> to vector<128x128xf32>
    %c3 = arith.constant 3 : index
    %c0_18 = arith.constant 0 : index
    %c0_19 = arith.constant 0 : index
    %12 = vector.load %arg5[%c3, %c0_18, %c0_19] : memref<14x128x128xf32, #tpu.memory_space<vmem>>, vector<1x128x128xf32>
    %13 = vector.shape_cast %12 : vector<1x128x128xf32> to vector<128x128xf32>
    %14 = vector.extract_strided_slice %4 {offsets = [0, 0], sizes = [1, 128], strides = [1, 1]} : vector<7x128xf32> to vector<1x128xf32>
    %15 = vector.extract_strided_slice %4 {offsets = [1, 0], sizes = [1, 128], strides = [1, 1]} : vector<7x128xf32> to vector<1x128xf32>
    %cst = arith.constant dense<0.000000e+00> : vector<128x128xf32>
    %16 = tpu.matmul %0, %5, %cst {dimension_numbers = #tpu.dot_dimension_numbers<[1], [0], [0], [1], [0, 0, 1, 1], [], []>} : vector<128x128xf32>, vector<128x128xf32>, vector<128x128xf32> -> vector<128x128xf32>
    %cst_20 = arith.constant dense<0.000000e+00> : vector<128x128xf32>
    %17 = tpu.matmul %16, %7, %cst_20 {dimension_numbers = #tpu.dot_dimension_numbers<[1], [0], [0], [1], [0, 0, 1, 1], [], []>} : vector<128x128xf32>, vector<128x128xf32>, vector<128x128xf32> -> vector<128x128xf32>
    %cst_21 = arith.constant dense<0.000000e+00> : vector<128x128xf32>
    %18 = tpu.matmul %3, %9, %cst_21 {dimension_numbers = #tpu.dot_dimension_numbers<[1], [0], [0], [1], [0, 0, 1, 1], [], []>} : vector<128x128xf32>, vector<128x128xf32>, vector<128x128xf32> -> vector<128x128xf32>
    %19 = arith.addf %17, %18 : vector<128x128xf32>
    %20 = vector.broadcast %14 : vector<1x128xf32> to vector<128x128xf32>
    %21 = arith.addf %19, %20 : vector<128x128xf32>
    %cst_22 = arith.constant dense<0.000000e+00> : vector<128x128xf32>
    %22 = tpu.matmul %2, %21, %cst_22 {dimension_numbers = #tpu.dot_dimension_numbers<[1], [0], [0], [1], [0, 0, 1, 1], [], []>} : vector<128x128xf32>, vector<128x128xf32>, vector<128x128xf32> -> vector<128x128xf32>
    %cst_23 = arith.constant dense<0.000000e+00> : vector<128x128xf32>
    %23 = tpu.matmul %5, %11, %cst_23 {dimension_numbers = #tpu.dot_dimension_numbers<[1], [0], [0], [1], [0, 0, 1, 1], [], []>} : vector<128x128xf32>, vector<128x128xf32>, vector<128x128xf32> -> vector<128x128xf32>
    %cst_24 = arith.constant dense<0.000000e+00> : vector<128x128xf32>
    %24 = tpu.matmul %22, %13, %cst_24 {dimension_numbers = #tpu.dot_dimension_numbers<[1], [0], [0], [1], [0, 0, 1, 1], [], []>} : vector<128x128xf32>, vector<128x128xf32>, vector<128x128xf32> -> vector<128x128xf32>
    %25 = arith.addf %23, %24 : vector<128x128xf32>
    %26 = vector.broadcast %15 : vector<1x128xf32> to vector<128x128xf32>
    %27 = arith.addf %25, %26 : vector<128x128xf32>
    %cst_25 = arith.constant 0.000000e+00 : f32
    %28 = vector.broadcast %cst_25 : f32 to vector<128x128xf32>
    %29 = arith.maximumf %27, %28 : vector<128x128xf32>
    %c4 = arith.constant 4 : index
    %c0_26 = arith.constant 0 : index
    %c0_27 = arith.constant 0 : index
    %30 = vector.load %arg5[%c4, %c0_26, %c0_27] : memref<14x128x128xf32, #tpu.memory_space<vmem>>, vector<1x128x128xf32>
    %31 = vector.shape_cast %30 : vector<1x128x128xf32> to vector<128x128xf32>
    %c5 = arith.constant 5 : index
    %c0_28 = arith.constant 0 : index
    %c0_29 = arith.constant 0 : index
    %32 = vector.load %arg5[%c5, %c0_28, %c0_29] : memref<14x128x128xf32, #tpu.memory_space<vmem>>, vector<1x128x128xf32>
    %33 = vector.shape_cast %32 : vector<1x128x128xf32> to vector<128x128xf32>
    %c6 = arith.constant 6 : index
    %c0_30 = arith.constant 0 : index
    %c0_31 = arith.constant 0 : index
    %34 = vector.load %arg5[%c6, %c0_30, %c0_31] : memref<14x128x128xf32, #tpu.memory_space<vmem>>, vector<1x128x128xf32>
    %35 = vector.shape_cast %34 : vector<1x128x128xf32> to vector<128x128xf32>
    %c7 = arith.constant 7 : index
    %c0_32 = arith.constant 0 : index
    %c0_33 = arith.constant 0 : index
    %36 = vector.load %arg5[%c7, %c0_32, %c0_33] : memref<14x128x128xf32, #tpu.memory_space<vmem>>, vector<1x128x128xf32>
    %37 = vector.shape_cast %36 : vector<1x128x128xf32> to vector<128x128xf32>
    %38 = vector.extract_strided_slice %4 {offsets = [2, 0], sizes = [1, 128], strides = [1, 1]} : vector<7x128xf32> to vector<1x128xf32>
    %39 = vector.extract_strided_slice %4 {offsets = [3, 0], sizes = [1, 128], strides = [1, 1]} : vector<7x128xf32> to vector<1x128xf32>
    %cst_34 = arith.constant dense<0.000000e+00> : vector<128x128xf32>
    %40 = tpu.matmul %0, %29, %cst_34 {dimension_numbers = #tpu.dot_dimension_numbers<[1], [0], [0], [1], [0, 0, 1, 1], [], []>} : vector<128x128xf32>, vector<128x128xf32>, vector<128x128xf32> -> vector<128x128xf32>
    %cst_35 = arith.constant dense<0.000000e+00> : vector<128x128xf32>
    %41 = tpu.matmul %40, %31, %cst_35 {dimension_numbers = #tpu.dot_dimension_numbers<[1], [0], [0], [1], [0, 0, 1, 1], [], []>} : vector<128x128xf32>, vector<128x128xf32>, vector<128x128xf32> -> vector<128x128xf32>
    %cst_36 = arith.constant dense<0.000000e+00> : vector<128x128xf32>
    %42 = tpu.matmul %3, %33, %cst_36 {dimension_numbers = #tpu.dot_dimension_numbers<[1], [0], [0], [1], [0, 0, 1, 1], [], []>} : vector<128x128xf32>, vector<128x128xf32>, vector<128x128xf32> -> vector<128x128xf32>
    %43 = arith.addf %41, %42 : vector<128x128xf32>
    %44 = vector.broadcast %38 : vector<1x128xf32> to vector<128x128xf32>
    %45 = arith.addf %43, %44 : vector<128x128xf32>
    %cst_37 = arith.constant dense<0.000000e+00> : vector<128x128xf32>
    %46 = tpu.matmul %2, %45, %cst_37 {dimension_numbers = #tpu.dot_dimension_numbers<[1], [0], [0], [1], [0, 0, 1, 1], [], []>} : vector<128x128xf32>, vector<128x128xf32>, vector<128x128xf32> -> vector<128x128xf32>
    %cst_38 = arith.constant dense<0.000000e+00> : vector<128x128xf32>
    %47 = tpu.matmul %29, %35, %cst_38 {dimension_numbers = #tpu.dot_dimension_numbers<[1], [0], [0], [1], [0, 0, 1, 1], [], []>} : vector<128x128xf32>, vector<128x128xf32>, vector<128x128xf32> -> vector<128x128xf32>
    %cst_39 = arith.constant dense<0.000000e+00> : vector<128x128xf32>
    %48 = tpu.matmul %46, %37, %cst_39 {dimension_numbers = #tpu.dot_dimension_numbers<[1], [0], [0], [1], [0, 0, 1, 1], [], []>} : vector<128x128xf32>, vector<128x128xf32>, vector<128x128xf32> -> vector<128x128xf32>
    %49 = arith.addf %47, %48 : vector<128x128xf32>
    %50 = vector.broadcast %39 : vector<1x128xf32> to vector<128x128xf32>
    %51 = arith.addf %49, %50 : vector<128x128xf32>
    %cst_40 = arith.constant 0.000000e+00 : f32
    %52 = vector.broadcast %cst_40 : f32 to vector<128x128xf32>
    %53 = arith.maximumf %51, %52 : vector<128x128xf32>
    %c8 = arith.constant 8 : index
    %c0_41 = arith.constant 0 : index
    %c0_42 = arith.constant 0 : index
    %54 = vector.load %arg5[%c8, %c0_41, %c0_42] : memref<14x128x128xf32, #tpu.memory_space<vmem>>, vector<1x128x128xf32>
    %55 = vector.shape_cast %54 : vector<1x128x128xf32> to vector<128x128xf32>
    %c9 = arith.constant 9 : index
    %c0_43 = arith.constant 0 : index
    %c0_44 = arith.constant 0 : index
    %56 = vector.load %arg5[%c9, %c0_43, %c0_44] : memref<14x128x128xf32, #tpu.memory_space<vmem>>, vector<1x128x128xf32>
    %57 = vector.shape_cast %56 : vector<1x128x128xf32> to vector<128x128xf32>
    %c10 = arith.constant 10 : index
    %c0_45 = arith.constant 0 : index
    %c0_46 = arith.constant 0 : index
    %58 = vector.load %arg5[%c10, %c0_45, %c0_46] : memref<14x128x128xf32, #tpu.memory_space<vmem>>, vector<1x128x128xf32>
    %59 = vector.shape_cast %58 : vector<1x128x128xf32> to vector<128x128xf32>
    %c11 = arith.constant 11 : index
    %c0_47 = arith.constant 0 : index
    %c0_48 = arith.constant 0 : index
    %60 = vector.load %arg5[%c11, %c0_47, %c0_48] : memref<14x128x128xf32, #tpu.memory_space<vmem>>, vector<1x128x128xf32>
    %61 = vector.shape_cast %60 : vector<1x128x128xf32> to vector<128x128xf32>
    %62 = vector.extract_strided_slice %4 {offsets = [4, 0], sizes = [1, 128], strides = [1, 1]} : vector<7x128xf32> to vector<1x128xf32>
    %63 = vector.extract_strided_slice %4 {offsets = [5, 0], sizes = [1, 128], strides = [1, 1]} : vector<7x128xf32> to vector<1x128xf32>
    %cst_49 = arith.constant dense<0.000000e+00> : vector<128x128xf32>
    %64 = tpu.matmul %0, %53, %cst_49 {dimension_numbers = #tpu.dot_dimension_numbers<[1], [0], [0], [1], [0, 0, 1, 1], [], []>} : vector<128x128xf32>, vector<128x128xf32>, vector<128x128xf32> -> vector<128x128xf32>
    %cst_50 = arith.constant dense<0.000000e+00> : vector<128x128xf32>
    %65 = tpu.matmul %64, %55, %cst_50 {dimension_numbers = #tpu.dot_dimension_numbers<[1], [0], [0], [1], [0, 0, 1, 1], [], []>} : vector<128x128xf32>, vector<128x128xf32>, vector<128x128xf32> -> vector<128x128xf32>
    %cst_51 = arith.constant dense<0.000000e+00> : vector<128x128xf32>
    %66 = tpu.matmul %3, %57, %cst_51 {dimension_numbers = #tpu.dot_dimension_numbers<[1], [0], [0], [1], [0, 0, 1, 1], [], []>} : vector<128x128xf32>, vector<128x128xf32>, vector<128x128xf32> -> vector<128x128xf32>
    %67 = arith.addf %65, %66 : vector<128x128xf32>
    %68 = vector.broadcast %62 : vector<1x128xf32> to vector<128x128xf32>
    %69 = arith.addf %67, %68 : vector<128x128xf32>
    %cst_52 = arith.constant dense<0.000000e+00> : vector<128x128xf32>
    %70 = tpu.matmul %2, %69, %cst_52 {dimension_numbers = #tpu.dot_dimension_numbers<[1], [0], [0], [1], [0, 0, 1, 1], [], []>} : vector<128x128xf32>, vector<128x128xf32>, vector<128x128xf32> -> vector<128x128xf32>
    %cst_53 = arith.constant dense<0.000000e+00> : vector<128x128xf32>
    %71 = tpu.matmul %53, %59, %cst_53 {dimension_numbers = #tpu.dot_dimension_numbers<[1], [0], [0], [1], [0, 0, 1, 1], [], []>} : vector<128x128xf32>, vector<128x128xf32>, vector<128x128xf32> -> vector<128x128xf32>
    %cst_54 = arith.constant dense<0.000000e+00> : vector<128x128xf32>
    %72 = tpu.matmul %70, %61, %cst_54 {dimension_numbers = #tpu.dot_dimension_numbers<[1], [0], [0], [1], [0, 0, 1, 1], [], []>} : vector<128x128xf32>, vector<128x128xf32>, vector<128x128xf32> -> vector<128x128xf32>
    %73 = arith.addf %71, %72 : vector<128x128xf32>
    %74 = vector.broadcast %63 : vector<1x128xf32> to vector<128x128xf32>
    %75 = arith.addf %73, %74 : vector<128x128xf32>
    %cst_55 = arith.constant 0.000000e+00 : f32
    %76 = vector.broadcast %cst_55 : f32 to vector<128x128xf32>
    %77 = arith.maximumf %75, %76 : vector<128x128xf32>
    %c12 = arith.constant 12 : index
    %c0_56 = arith.constant 0 : index
    %c0_57 = arith.constant 0 : index
    %78 = vector.load %arg5[%c12, %c0_56, %c0_57] : memref<14x128x128xf32, #tpu.memory_space<vmem>>, vector<1x128x128xf32>
    %79 = vector.shape_cast %78 : vector<1x128x128xf32> to vector<128x128xf32>
    %c13 = arith.constant 13 : index
    %c0_58 = arith.constant 0 : index
    %c0_59 = arith.constant 0 : index
    %80 = vector.load %arg5[%c13, %c0_58, %c0_59] : memref<14x128x128xf32, #tpu.memory_space<vmem>>, vector<1x128x128xf32>
    %81 = vector.shape_cast %80 : vector<1x128x128xf32> to vector<128x128xf32>
    %82 = vector.extract_strided_slice %4 {offsets = [6, 0], sizes = [1, 128], strides = [1, 1]} : vector<7x128xf32> to vector<1x128xf32>
    %cst_60 = arith.constant dense<0.000000e+00> : vector<128x128xf32>
    %83 = tpu.matmul %0, %77, %cst_60 {dimension_numbers = #tpu.dot_dimension_numbers<[1], [0], [0], [1], [0, 0, 1, 1], [], []>} : vector<128x128xf32>, vector<128x128xf32>, vector<128x128xf32> -> vector<128x128xf32>
    %cst_61 = arith.constant dense<0.000000e+00> : vector<128x128xf32>
    %84 = tpu.matmul %1, %77, %cst_61 {dimension_numbers = #tpu.dot_dimension_numbers<[1], [0], [0], [1], [0, 0, 1, 1], [], []>} : vector<128x128xf32>, vector<128x128xf32>, vector<128x128xf32> -> vector<128x128xf32>
    %cst_62 = arith.constant dense<0.000000e+00> : vector<128x128xf32>
    %85 = tpu.matmul %83, %79, %cst_62 {dimension_numbers = #tpu.dot_dimension_numbers<[1], [0], [0], [1], [0, 0, 1, 1], [], []>} : vector<128x128xf32>, vector<128x128xf32>, vector<128x128xf32> -> vector<128x128xf32>
    %cst_63 = arith.constant dense<0.000000e+00> : vector<128x128xf32>
    %86 = tpu.matmul %84, %81, %cst_63 {dimension_numbers = #tpu.dot_dimension_numbers<[1], [0], [0], [1], [0, 0, 1, 1], [], []>} : vector<128x128xf32>, vector<128x128xf32>, vector<128x128xf32> -> vector<128x128xf32>
    %87 = arith.addf %85, %86 : vector<128x128xf32>
    %88 = vector.broadcast %82 : vector<1x128xf32> to vector<128x128xf32>
    %89 = arith.addf %87, %88 : vector<128x128xf32>
    %c0_64 = arith.constant 0 : index
    %c0_65 = arith.constant 0 : index
    %90 = vector.load %arg7[%c0_64, %c0_65] : memref<128x128xf32, #tpu.memory_space<vmem>>, vector<128x128xf32>
    tpu.vector_store %arg7[%c0_64, %c0_65], %89 {strides = array<i32>} : memref<128x128xf32, #tpu.memory_space<vmem>>, vector<128x128xf32>,
    return
  }
}

</mosaic_0001>

<bundles_post_ra>
// kernel: model_forward.1
= control target key start
LH: loop header
LB: loop body
LE: loop exit
PB: predicated region body
PF: predicated region fallthrough
CT: control target
= control target key end

     0   :  { %12 = vsyncpa [#allocation3], 0  ;;  %s7710_s0 = inlined_call_operand.vmem [shape: f32[128,128], index: 0, kind: input, shape index: {}]   ;;  %s7711_s1 = inlined_call_operand.vmem [shape: f32[128,128], index: 1, kind: input, shape index: {}]   ;;  %s7712_s2 = inlined_call_operand.vmem [shape: f32[128,128], index: 2, kind: input, shape index: {}]   ;;  %s7713_s3 = inlined_call_operand.vmem [shape: f32[128,128], index: 3, kind: input, shape index: {}]   ;;  %s7714_s4 = inlined_call_operand.hbm [shape: f32[128,128], index: 4, kind: input, shape index: {}]   ;;  %s7715_s5 = inlined_call_operand.hbm [shape: f32[14,128,128], index: 5, kind: input, shape index: {}]   ;;  %s7716_s6 = inlined_call_operand.vmem [shape: f32[7,128], index: 6, kind: input, shape index: {}]   ;;  %s7717_s7 = inlined_call_operand.vmem [shape: f32[128,128], index: 7, kind: output, shape index: {}]  }
   0x1   :  { %13 = vsyncpa [#allocation5], 0  ;;  %s6626_s24 = smov [#allocation2]   ;;  %s6578_s28 = scalar_lea.hbm %s7714_s4, 2048 }
   0x2   :  { %s27_s25 = sshll.u32 %s6626_s24, 4  ;;  %p6579_p0 = scmp.ne.s32.totalorder %s7714_s4, %s6578_s28  ;;  %s28_s25 = int_to_ptr.vmem [resolvable:$true] %s27_s25 }
   0x3   :  { %p6582_p1 = scmp.lt.u32.totalorder %s6578_s28, %s7714_s4 }
   0x5   :  { %p6584_p2 = pnand %p6582_p1, %p6579_p0 }
   0x7   :  { %6587 = shalt.err (!%p6584_p2)
}
   0x8   :  { %s6588_s10 = scalar_lea.vmem %s28_s25, 2048  ;;  %p6593_p4 = scmp.lt.s32.totalorder %s28_s25, %s28_s25 }
   0x9   :  { %p6589_p3 = scmp.ne.s32.totalorder %s28_s25, %s6588_s10  ;;  %p6594_p5 = scmp.lt.s32.totalorder %s6588_s10, %s6588_s10 }
   0xb   :  { %p6595_p6 = por %p6594_p5, %p6593_p4 }
   0xd   :  { %p6596_p7 = pnand %p6595_p6, %p6589_p3 }
   0xf   :  { %6599 = shalt.err (!%p6596_p7)
}
  0x10   :  { %s6627_s11 = smov 128   ;;  %s6628_s12 = smov 8  }
  0x11   :  { %33 = dma.hbm_to_vmem [thread:$0]  %s7714_s4, 2048, %s28_s25, [#allocation3], %s6627_s11, %s6627_s11, %s6628_s12  }
  0x12   :  { %s6629_s15 = smov [#allocation4]   ;;  %s6600_s19 = scalar_lea.hbm %s7715_s5, 28672 }
  0x13   :  { %s39_s16 = sshll.u32 %s6629_s15, 4  ;;  %p6601_p8 = scmp.ne.s32.totalorder %s7715_s5, %s6600_s19  ;;  %s40_s16 = int_to_ptr.vmem [resolvable:$true] %s39_s16 }
  0x14   :  { %p6604_p9 = scmp.lt.u32.totalorder %s6600_s19, %s7715_s5 }
  0x16   :  { %p6606_p10 = pnand %p6604_p9, %p6601_p8 }
  0x18   :  { %6609 = shalt.err (!%p6606_p10)
}
  0x19   :  { %s6610_s24 = scalar_lea.vmem %s40_s16, 28672  ;;  %p6615_p12 = scmp.lt.s32.totalorder %s40_s16, %s40_s16 }
  0x1a   :  { %p6611_p11 = scmp.ne.s32.totalorder %s40_s16, %s6610_s24  ;;  %p6616_p13 = scmp.lt.s32.totalorder %s6610_s24, %s6610_s24 }
  0x1c   :  { %p6617_p0 = por %p6616_p13, %p6615_p12 }
  0x1e   :  { %p6618_p1 = pnand %p6617_p0, %p6611_p11 }
  0x20   :  { %6621 = shalt.err (!%p6618_p1)
}
  0x21   :  { %45 = dma.hbm_to_vmem [thread:$0]  %s7715_s5, 28672, %s40_s16, [#allocation5], %s6627_s11, %s6627_s11, %s6628_s12  }
  0x22   :  { %6622 = dma.done.wait [#allocation3], 2048  }
  0x23   :  { %6623 = vsyncadd [#allocation3], 4294965248 }
  0x24   :  { %6624 = dma.done.wait [#allocation5], 28672  }
  0x25   :  { %6625 = vsyncadd [#allocation5], 4294938624  ;;  %v6697_v0 = vld [vmem:[%s7710_s0] sm:$0xff]  ;;  %v6702_v1 = vld [vmem:[%s7710_s0 + $0x8] sm:$0xff] }
  0x26   :  { %v6707_v2 = vld [vmem:[%s7710_s0 + $0x10] sm:$0xff]  ;;  %v5708_v3 = vpack.c.bf16 %v6702_v1, %v6697_v0  ;;  %v6714_v4 = vld [vmem:[%s7710_s0 + $0x18] sm:$0xff]  ;;  %v6721_v6 = vld [vmem:[%s7710_s0 + $0x20] sm:$0xff] }
  0x27   :  { %v5712_v5 = vpack.c.bf16 %v6714_v4, %v6707_v2  ;;  %v6726_v7 = vld [vmem:[%s7710_s0 + $0x28] sm:$0xff]  ;;  %v6733_v9 = vld [vmem:[%s7712_s2] sm:$0xff]  ;;  %v6738_v10 = vld [vmem:[%s7710_s0 + $0x30] sm:$0xff] }
  0x28   :  { %5709 = vmatprep.subr.bf16.mxu1 %v5708_v3  ;;  %v5716_v8 = vpack.c.bf16 %v6726_v7, %v6721_v6  ;;  %v6743_v11 = vld [vmem:[%s7710_s0 + $0x38] sm:$0xff]  ;;  %4508 = vmatprep.mubr.f32.mxu1 %v6733_v9  ;;  %v6751_v13 = vld [vmem:[%s7710_s0 + $0x40] sm:$0xff]  ;;  %v6756_v14 = vld [vmem:[%s7710_s0 + $0x48] sm:$0xff] }
  0x29   :  { %5711 = vmatpush3.bf16.msra.mxu1 %v5708_v3  ;;  %v5720_v12 = vpack.c.bf16 %v6743_v11, %v6738_v10  ;;  %v5724_v15 = vpack.c.bf16 %v6756_v14, %v6751_v13  ;;  %v6763_v16 = vld [vmem:[%s7710_s0 + $0x50] sm:$0xff]  ;;  %v6768_v17 = vld [vmem:[%s7710_s0 + $0x58] sm:$0xff]  ;;  %v6775_v19 = vld [vmem:[%s7710_s0 + $0x60] sm:$0xff] }
  0x2a   :  { %5713 = vmatprep.subr.bf16.mxu1 %v5712_v5  ;;  %v5728_v18 = vpack.c.bf16 %v6768_v17, %v6763_v16  ;;  %v6780_v20 = vld [vmem:[%s7710_s0 + $0x68] sm:$0xff]  ;;  %v6787_v22 = vld [vmem:[%s7710_s0 + $0x70] sm:$0xff]  ;;  %v6792_v23 = vld [vmem:[%s7710_s0 + $0x78] sm:$0xff] }
  0x2b   :  { %v5732_v21 = vpack.c.bf16 %v6780_v20, %v6775_v19  ;;  %v5736_v24 = vpack.c.bf16 %v6792_v23, %v6787_v22  ;;  %v152_v25 = vld [vmem:[#allocation4 + $0x80] sm:$0xff]  ;;  %v153_v26 = vld [vmem:[#allocation4 + $0x88] sm:$0xff]  ;;  %v154_v28 = vld [vmem:[#allocation4 + $0x90] sm:$0xff] }
  0x2c   :  { %v5740_v27 = vpack.c.bf16 %v153_v26, %v152_v25  ;;  %v155_v29 = vld [vmem:[#allocation4 + $0x98] sm:$0xff]  ;;  %v6799_v30 = vld [vmem:[%s7712_s2 + $0x8] sm:$0xff]  ;;  %v6804_v31 = vld [vmem:[%s7712_s2 + $0x10] sm:$0xff] }
  0x2d   :  { %5715 = vmatpush3.bf16.msra.mxu1 %v5712_v5  ;;  %v5744_v32 = vpack.c.bf16 %v155_v29, %v154_v28  ;;  %v156_v33 = vld [vmem:[#allocation4 + $0xa0] sm:$0xff]  ;;  %v157_v34 = vld [vmem:[#allocation4 + $0xa8] sm:$0xff]  ;;  %v6811_v35 = vld [vmem:[%s7712_s2 + $0x18] sm:$0xff] }
  0x2e   :  { %5717 = vmatprep.subr.bf16.mxu1 %v5716_v8  ;;  %v6816_v36 = vld [vmem:[%s7712_s2 + $0x20] sm:$0xff]  ;;  %v5748_v37 = vpack.c.bf16 %v157_v34, %v156_v33  ;;  %v158_v38 = vld [vmem:[#allocation4 + $0xb0] sm:$0xff]  ;;  %v159_v39 = vld [vmem:[#allocation4 + $0xb8] sm:$0xff] }
  0x2f   :  { %v6823_v40 = vld [vmem:[%s7712_s2 + $0x28] sm:$0xff]  ;;  %v6828_v41 = vld [vmem:[%s7712_s2 + $0x30] sm:$0xff]  ;;  %v5752_v42 = vpack.c.bf16 %v159_v39, %v158_v38  ;;  %v160_v43 = vld [vmem:[#allocation4 + $0xc0] sm:$0xff] }
  0x30   :  { %v161_v44 = vld [vmem:[#allocation4 + $0xc8] sm:$0xff]  ;;  %v6835_v45 = vld [vmem:[%s7712_s2 + $0x38] sm:$0xff]  ;;  %v6840_v46 = vld [vmem:[%s7712_s2 + $0x40] sm:$0xff] }
  0x31   :  { %5719 = vmatpush3.bf16.msra.mxu1 %v5716_v8  ;;  %v5756_v47 = vpack.c.bf16 %v161_v44, %v160_v43  ;;  %v162_v48 = vld [vmem:[#allocation4 + $0xd0] sm:$0xff]  ;;  %v163_v49 = vld [vmem:[#allocation4 + $0xd8] sm:$0xff]  ;;  %v6847_v50 = vld [vmem:[%s7712_s2 + $0x48] sm:$0xff] }
  0x32   :  { %5721 = vmatprep.subr.bf16.mxu1 %v5720_v12  ;;  %v6852_v51 = vld [vmem:[%s7712_s2 + $0x50] sm:$0xff]  ;;  %v5760_v52 = vpack.c.bf16 %v163_v49, %v162_v48  ;;  %v164_v53 = vld [vmem:[#allocation4 + $0xe0] sm:$0xff]  ;;  %v165_v54 = vld [vmem:[#allocation4 + $0xe8] sm:$0xff] }
  0x33   :  { %v6859_v55 = vld [vmem:[%s7712_s2 + $0x58] sm:$0xff]  ;;  %v6864_v56 = vld [vmem:[%s7712_s2 + $0x60] sm:$0xff]  ;;  %v5764_v57 = vpack.c.bf16 %v165_v54, %v164_v53  ;;  %v166_v58 = vld [vmem:[#allocation4 + $0xf0] sm:$0xff] }
  0x34   :  { %v167_v59 = vld [vmem:[#allocation4 + $0xf8] sm:$0xff]  ;;  %v6871_v60 = vld [vmem:[%s7712_s2 + $0x68] sm:$0xff]  ;;  %v6876_v61 = vld [vmem:[%s7712_s2 + $0x70] sm:$0xff] }
  0x35   :  { %5723 = vmatpush3.bf16.msra.mxu1 %v5720_v12  ;;  %v5768_v62 = vpack.c.bf16 %v167_v59, %v166_v58  ;;  %v135_v63 = vld [vmem:[#allocation4] sm:$0xff]  ;;  %v136_v3 = vld [vmem:[#allocation4 + $0x8] sm:$0xff]  ;;  %v6883_v5 = vld [vmem:[%s7712_s2 + $0x78] sm:$0xff] }
  0x36   :  { %5725 = vmatprep.subr.bf16.mxu1 %v5724_v15  ;;  %v6888_v8 = vld [vmem:[%s7711_s1] sm:$0xff]  ;;  %v5772_v12 = vpack.c.bf16 %v136_v3, %v135_v63  ;;  %v6907_v28 = vld [vmem:[%s7711_s1 + $0x18] sm:$0xff]  ;;  %v141_v33 = vld [vmem:[#allocation4 + $0x30] sm:$0xff] }
  0x37   :  { %v139_v26 = vld [vmem:[#allocation4 + $0x20] sm:$0xff]  ;;  %v142_v34 = vld [vmem:[#allocation4 + $0x38] sm:$0xff]  ;;  %v6924_v38 = vld [vmem:[%s7711_s1 + $0x30] sm:$0xff] }
  0x38   :  { %v6912_v29 = vld [vmem:[%s7711_s1 + $0x20] sm:$0xff]  ;;  %v5784_v39 = vpack.c.bf16 %v142_v34, %v141_v33  ;;  %v144_v43 = vld [vmem:[#allocation4 + $0x48] sm:$0xff]  ;;  %v6931_v44 = vld [vmem:[%s7711_s1 + $0x38] sm:$0xff] }
  0x39   :  { %5727 = vmatpush3.bf16.msra.mxu1 %v5724_v15  ;;  %v137_v15 = vld [vmem:[#allocation4 + $0x10] sm:$0xff]  ;;  %v6943_v53 = vld [vmem:[%s7711_s1 + $0x48] sm:$0xff]  ;;  %v147_v58 = vld [vmem:[#allocation4 + $0x60] sm:$0xff] }
  0x3a   :  { %5729 = vmatprep.subr.bf16.mxu1 %v5728_v18  ;;  %v145_v49 = vld [vmem:[#allocation4 + $0x50] sm:$0xff]  ;;  %v148_v59 = vld [vmem:[#allocation4 + $0x68] sm:$0xff]  ;;  %v6960_v63 = vld [vmem:[%s7711_s1 + $0x60] sm:$0xff] }
  0x3b   :  { %v6948_v54 = vld [vmem:[%s7711_s1 + $0x50] sm:$0xff]  ;;  %7751 = vst [vmem:[#allocation9_spill] sm:$0xff] %v6960_v63  ;;  %v5796_v3 = vpack.c.bf16 %v148_v59, %v147_v58 }
  0x3d   :  { %5731 = vmatpush3.bf16.msra.mxu1 %v5728_v18  ;;  %v138_v18 = vld [vmem:[#allocation4 + $0x18] sm:$0xff] }
  0x3e   :  { %5733 = vmatprep.subr.bf16.mxu1 %v5732_v21  ;;  %v5776_v25 = vpack.c.bf16 %v138_v18, %v137_v15  ;;  %v150_v15 = vld [vmem:[#allocation4 + $0x78] sm:$0xff]  ;;  %v6967_v18 = vld [vmem:[%s7711_s1 + $0x68] sm:$0xff] }
  0x3f   :  { %7752 = vst [vmem:[#allocation10_spill] sm:$0xff] %v6967_v18 }
  0x41   :  { %5735 = vmatpush3.bf16.msra.mxu1 %v5732_v21  ;;  %v6895_v21 = vld [vmem:[%s7711_s1 + $0x8] sm:$0xff] }
  0x42   :  { %5737 = vmatprep.subr.bf16.mxu1 %v5736_v24 }
  0x45   :  { %5739 = vmatpush3.bf16.msra.mxu1 %v5736_v24  ;;  %v6900_v24 = vld [vmem:[%s7711_s1 + $0x10] sm:$0xff] }
  0x46   :  { %5741 = vmatprep.subr.bf16.mxu1 %v5740_v27 }
  0x48   :  { %4509 = vmatmul.mubr.f32.vlgmr.msra.gmra.mrb[0].mxu1 %v6799_v30 }
  0x49   :  { %4511 = vmatprep.mubr.f32.mxu1 %v6804_v31  ;;  %5743 = vmatpush3.bf16.msra.mxu1 %v5740_v27  ;;  %v140_v27 = vld [vmem:[#allocation4 + $0x28] sm:$0xff] }
  0x4a   :  { %5745 = vmatprep.subr.bf16.mxu1 %v5744_v32 }
  0x4c   :  { %4512 = vmatmul.mubr.f32.gmra.mrb[2].mxu1 %v6811_v35 }
  0x4d   :  { %4514 = vmatprep.mubr.f32.mxu1 %v6816_v36  ;;  %5747 = vmatpush3.bf16.msra.mxu1 %v5744_v32  ;;  %v5780_v32 = vpack.c.bf16 %v140_v27, %v139_v26  ;;  %v6979_v27 = vld [vmem:[%s7711_s1 + $0x78] sm:$0xff] }
  0x4e   :  { %5749 = vmatprep.subr.bf16.mxu1 %v5748_v37  ;;  %7754 = vst [vmem:[#allocation12_spill] sm:$0xff] %v6979_v27 }
  0x50   :  { %4515 = vmatmul.mubr.f32.gmra.mrb[4].mxu1 %v6823_v40 }
  0x51   :  { %4517 = vmatprep.mubr.f32.mxu1 %v6828_v41  ;;  %5751 = vmatpush3.bf16.msra.mxu1 %v5748_v37  ;;  %v6919_v37 = vld [vmem:[%s7711_s1 + $0x28] sm:$0xff] }
  0x52   :  { %5753 = vmatprep.subr.bf16.mxu1 %v5752_v42 }
  0x54   :  { %4518 = vmatmul.mubr.f32.gmra.mrb[6].mxu1 %v6835_v45 }
  0x55   :  { %4520 = vmatprep.mubr.f32.mxu1 %v6840_v46  ;;  %5755 = vmatpush3.bf16.msra.mxu1 %v5752_v42  ;;  %v143_v42 = vld [vmem:[#allocation4 + $0x40] sm:$0xff] }
  0x56   :  { %5757 = vmatprep.subr.bf16.mxu1 %v5756_v47  ;;  %v5788_v48 = vpack.c.bf16 %v144_v43, %v143_v42 }
  0x58   :  { %4521 = vmatmul.mubr.f32.gmra.mrb[8].mxu1 %v6847_v50 }
  0x59   :  { %4523 = vmatprep.mubr.f32.mxu1 %v6852_v51  ;;  %5759 = vmatpush3.bf16.msra.mxu1 %v5756_v47  ;;  %v6936_v47 = vld [vmem:[%s7711_s1 + $0x40] sm:$0xff] }
  0x5a   :  { %5761 = vmatprep.subr.bf16.mxu1 %v5760_v52 }
  0x5c   :  { %4524 = vmatmul.mubr.f32.gmra.mrb[10].mxu1 %v6859_v55 }
  0x5d   :  { %4526 = vmatprep.mubr.f32.mxu1 %v6864_v56  ;;  %5763 = vmatpush3.bf16.msra.mxu1 %v5760_v52  ;;  %v146_v52 = vld [vmem:[#allocation4 + $0x58] sm:$0xff] }
  0x5e   :  { %5765 = vmatprep.subr.bf16.mxu1 %v5764_v57 }
  0x60   :  { %4527 = vmatmul.mubr.f32.gmra.mrb[12].mxu1 %v6871_v60 }
  0x61   :  { %4529 = vmatprep.mubr.f32.mxu1 %v6876_v61  ;;  %5767 = vmatpush3.bf16.msra.mxu1 %v5764_v57  ;;  %v5792_v57 = vpack.c.bf16 %v146_v52, %v145_v49 }
  0x62   :  { %5769 = vmatprep.subr.bf16.mxu1 %v5768_v62 }
  0x64   :  { %4530 = vmatmul.mubr.f32.gmra.mrb[14].mxu1 %v6883_v5 }
  0x65   :  { %5771 = vmatpush3.bf16.msra.mxu1 %v5768_v62  ;;  %4564 = vmatprep.mubr.f32.mxu1 %v6888_v8  ;;  %v6955_v62 = vld [vmem:[%s7711_s1 + $0x58] sm:$0xff] }
  0x66   :  { %5773 = vmatprep.subr.bf16.mxu1 %v5772_v12  ;;  %7750 = vst [vmem:[#allocation8_spill] sm:$0xff] %v6955_v62 }
  0x68   :  { %4565 = vmatmul.mubr.f32.vlgmr.msra.gmra.mrb[16].mxu1 %v6895_v21 }
  0x69   :  { %5775 = vmatpush3.bf16.msra.mxu1 %v5772_v12  ;;  %4567 = vmatprep.mubr.f32.mxu1 %v6900_v24  ;;  %v149_v12 = vld [vmem:[#allocation4 + $0x70] sm:$0xff] }
  0x6a   :  { %5777 = vmatprep.subr.bf16.mxu1 %v5776_v25  ;;  %v5800_v26 = vpack.c.bf16 %v150_v15, %v149_v12 }
  0x6c   :  { %4568 = vmatmul.mubr.f32.gmra.mrb[18].mxu1 %v6907_v28 }
  0x6d   :  { %5779 = vmatpush3.bf16.msra.mxu1 %v5776_v25  ;;  %4570 = vmatprep.mubr.f32.mxu1 %v6912_v29  ;;  %v6972_v25 = vld [vmem:[%s7711_s1 + $0x70] sm:$0xff] }
  0x6e   :  { %5781 = vmatprep.subr.bf16.mxu1 %v5780_v32  ;;  %7753 = vst [vmem:[#allocation11_spill] sm:$0xff] %v6972_v25 }
  0x70   :  { %4571 = vmatmul.mubr.f32.gmra.mrb[20].mxu1 %v6919_v37 }
  0x71   :  { %5783 = vmatpush3.bf16.msra.mxu1 %v5780_v32  ;;  %4573 = vmatprep.mubr.f32.mxu1 %v6924_v38 }
  0x72   :  { %5785 = vmatprep.subr.bf16.mxu1 %v5784_v39 }
  0x74   :  { %4574 = vmatmul.mubr.f32.gmra.mrb[22].mxu1 %v6931_v44 }
  0x75   :  { %5787 = vmatpush3.bf16.msra.mxu1 %v5784_v39  ;;  %4576 = vmatprep.mubr.f32.mxu1 %v6936_v47 }
  0x76   :  { %5789 = vmatprep.subr.bf16.mxu1 %v5788_v48 }
  0x78   :  { %4577 = vmatmul.mubr.f32.gmra.mrb[24].mxu1 %v6943_v53 }
  0x79   :  { %5791 = vmatpush3.bf16.msra.mxu1 %v5788_v48  ;;  %4579 = vmatprep.mubr.f32.mxu1 %v6948_v54 }
  0x7a   :  { %5793 = vmatprep.subr.bf16.mxu1 %v5792_v57 }
  0x7c   :  { %4580 = vmatmul.mubr.f32.gmra.mrb[26].mxu1 %v6955_v62 }
  0x7d   :  { %5795 = vmatpush3.bf16.msra.mxu1 %v5792_v57  ;;  %4582 = vmatprep.mubr.f32.mxu1 %v6960_v63 }
  0x7e   :  { %5797 = vmatprep.subr.bf16.mxu1 %v5796_v3 }
  0x80   :  { %4583 = vmatmul.mubr.f32.gmra.mrb[28].mxu1 %v6967_v18 }
  0x81   :  { %5799 = vmatpush3.bf16.msra.mxu1 %v5796_v3  ;;  %4585 = vmatprep.mubr.f32.mxu1 %v6972_v25 }
  0x82   :  { %5801 = vmatprep.subr.bf16.mxu1 %v5800_v26 }
  0x84   :  { %4586 = vmatmul.mubr.f32.gmra.mrb[30].mxu1 %v6979_v27 }
  0x85   :  { %5803 = vmatpush3.bf16.msra.mxu1 %v5800_v26 }
 0x11b   :  { %v4510_v32 = vpop.f32.mrb[0].mxu1 }
 0x11c   :  { %v268_v33 = vpop.f32.mrb[1].mxu1 }
 0x11d   :  { %4620 = vmatprep.mubr.f32.mxu1 %v268_v33  ;;  %v637_v33 = vlaneseq }
 0x11e   :  { %4621 = vmatmul.mubr.f32.vlgmr.msra.gmra.mrb[16].mxu1 %v4510_v32  ;;  %v6983_v32 = vld [vmem:[#allocation2] sm:$0xff] }
 0x11f   :  { %v4513_v34 = vpop.f32.mrb[2].mxu1  ;;  %4676 = vmatprep.mubr.f32.mxu0 %v6983_v32 }
 0x120   :  { %v278_v39 = vpop.f32.mrb[3].mxu1 }
 0x121   :  { %4623 = vmatprep.mubr.f32.mxu1 %v278_v39 }
 0x122   :  { %4624 = vmatmul.mubr.f32.gmra.mrb[18].mxu1 %v4513_v34  ;;  %v6986_v34 = vshrl.u32 %v637_v33, 7 }
 0x123   :  { %v4516_v42 = vpop.f32.mrb[4].mxu1 }
 0x124   :  { %v288_v43 = vpop.f32.mrb[5].mxu1  ;;  %v639_v39 = vsub.s32 0, %v6986_v34 }
 0x125   :  { %4626 = vmatprep.mubr.f32.mxu1 %v288_v43 }
 0x126   :  { %4627 = vmatmul.mubr.f32.gmra.mrb[20].mxu1 %v4516_v42  ;;  %v6992_v42 = vld [vmem:[%s7716_s6] sm:$0x7f] }
 0x127   :  { %v4519_v48 = vpop.f32.mrb[6].mxu1  ;;  %v640_v43 = vrot.slane %v6992_v42, %v639_v39 }
 0x128   :  { %v298_v49 = vpop.f32.mrb[7].mxu1 }
 0x129   :  { %4629 = vmatprep.mubr.f32.mxu1 %v298_v49 }
 0x12a   :  { %4630 = vmatmul.mubr.f32.gmra.mrb[22].mxu1 %v4519_v48 }
 0x12b   :  { %v4522_v52 = vpop.f32.mrb[8].mxu1 }
 0x12c   :  { %v308_v57 = vpop.f32.mrb[9].mxu1 }
 0x12d   :  { %4632 = vmatprep.mubr.f32.mxu1 %v308_v57 }
 0x12e   :  { %4633 = vmatmul.mubr.f32.gmra.mrb[24].mxu1 %v4522_v52 }
 0x12f   :  { %v4525_v58 = vpop.f32.mrb[10].mxu1 }
 0x130   :  { %v318_v59 = vpop.f32.mrb[11].mxu1 }
 0x131   :  { %4635 = vmatprep.mubr.f32.mxu1 %v318_v59 }
 0x132   :  { %4636 = vmatmul.mubr.f32.gmra.mrb[26].mxu1 %v4525_v58 }
 0x133   :  { %v4528_v3 = vpop.f32.mrb[12].mxu1 }
 0x134   :  { %v328_v12 = vpop.f32.mrb[13].mxu1 }
 0x135   :  { %4638 = vmatprep.mubr.f32.mxu1 %v328_v12 }
 0x136   :  { %4639 = vmatmul.mubr.f32.gmra.mrb[28].mxu1 %v4528_v3 }
 0x137   :  { %v4531_v15 = vpop.f32.mrb[14].mxu1 }
 0x138   :  { %v338_v26 = vpop.f32.mrb[15].mxu1 }
 0x139   :  { %4641 = vmatprep.mubr.f32.mxu1 %v338_v26 }
 0x13a   :  { %4642 = vmatmul.mubr.f32.gmra.mrb[30].mxu1 %v4531_v15 }
 0x13b   :  { %4844 = vmatprep.mubr.f32.mxu1 %v6733_v9 }
 0x1f1   :  { %v4622_v48 = vpop.f32.mrb[16].mxu1 }
 0x1f2   :  { %v642_v49 = vadd.f32 %v4622_v48, %v640_v43  ;;  %v558_v52 = vpop.f32.mrb[17].mxu1 }
 0x1f3   :  { %v641_v9 = vadd.f32 %v640_v43, %v558_v52 }
 0x1f5   :  { %v4625_v57 = vpop.f32.mrb[18].mxu1  ;;  %v5804_v58 = vpack.c.bf16 %v642_v49, %v641_v9 }
 0x1f6   :  { %v644_v59 = vadd.f32 %v4625_v57, %v640_v43  ;;  %v568_v3 = vpop.f32.mrb[19].mxu1 }
 0x1f7   :  { %v643_v12 = vadd.f32 %v640_v43, %v568_v3  ;;  %5805 = vmatprep.subr.bf16.mxu0 %v5804_v58 }
 0x1f8   :  { %5807 = vmatpush3.bf16.msra.mxu0 %v5804_v58 }
 0x1f9   :  { %v5808_v15 = vpack.c.bf16 %v644_v59, %v643_v12  ;;  %v4628_v26 = vpop.f32.mrb[20].mxu1 }
 0x1fa   :  { %v646_v33 = vadd.f32 %v4628_v26, %v640_v43  ;;  %v578_v27 = vpop.f32.mrb[21].mxu1 }
 0x1fb   :  { %v645_v25 = vadd.f32 %v640_v43, %v578_v27  ;;  %5809 = vmatprep.subr.bf16.mxu0 %v5808_v15 }
 0x1fc   :  { %5811 = vmatpush3.bf16.msra.mxu0 %v5808_v15 }
 0x1fd   :  { %v5812_v18 = vpack.c.bf16 %v646_v33, %v645_v25  ;;  %v4631_v39 = vpop.f32.mrb[22].mxu1 }
 0x1fe   :  { %v648_v63 = vadd.f32 %v4631_v39, %v640_v43  ;;  %v588_v48 = vpop.f32.mrb[23].mxu1 }
 0x1ff   :  { %v647_v62 = vadd.f32 %v640_v43, %v588_v48  ;;  %5813 = vmatprep.subr.bf16.mxu0 %v5812_v18 }
 0x200   :  { %5815 = vmatpush3.bf16.msra.mxu0 %v5812_v18 }
 0x201   :  { %v5816_v49 = vpack.c.bf16 %v648_v63, %v647_v62  ;;  %v4634_v52 = vpop.f32.mrb[24].mxu1 }
 0x202   :  { %v650_v9 = vadd.f32 %v4634_v52, %v640_v43  ;;  %v598_v57 = vpop.f32.mrb[25].mxu1 }
 0x203   :  { %v649_v3 = vadd.f32 %v640_v43, %v598_v57  ;;  %5817 = vmatprep.subr.bf16.mxu0 %v5816_v49  ;;  %v186_v57 = vld [vmem:[#allocation4 + $0x180] sm:$0xff] }
 0x204   :  { %5819 = vmatpush3.bf16.msra.mxu0 %v5816_v49  ;;  %v187_v49 = vld [vmem:[#allocation4 + $0x188] sm:$0xff] }
 0x205   :  { %v5820_v58 = vpack.c.bf16 %v650_v9, %v649_v3  ;;  %v4637_v59 = vpop.f32.mrb[26].mxu1 }
 0x206   :  { %v652_v12 = vadd.f32 %v4637_v59, %v640_v43  ;;  %v608_v27 = vpop.f32.mrb[27].mxu1  ;;  %v5836_v59 = vpack.c.bf16 %v187_v49, %v186_v57  ;;  %v194_v49 = vld [vmem:[#allocation4 + $0x1c0] sm:$0xff] }
 0x207   :  { %v651_v26 = vadd.f32 %v640_v43, %v608_v27  ;;  %5821 = vmatprep.subr.bf16.mxu0 %v5820_v58  ;;  %v188_v27 = vld [vmem:[#allocation4 + $0x190] sm:$0xff] }
 0x208   :  { %5823 = vmatpush3.bf16.msra.mxu0 %v5820_v58  ;;  %v189_v58 = vld [vmem:[#allocation4 + $0x198] sm:$0xff] }
 0x209   :  { %v5824_v25 = vpack.c.bf16 %v652_v12, %v651_v26  ;;  %v4640_v15 = vpop.f32.mrb[28].mxu1  ;;  %v6995_v12 = vld [vmem:[#allocation2 + $0x8] sm:$0xff]  ;;  %v6997_v26 = vld [vmem:[#allocation2 + $0x10] sm:$0xff] }
 0x20a   :  { %v654_v33 = vadd.f32 %v4640_v15, %v640_v43  ;;  %v618_v39 = vpop.f32.mrb[29].mxu1  ;;  %v190_v15 = vld [vmem:[#allocation4 + $0x1a0] sm:$0xff] }
 0x20b   :  { %v653_v48 = vadd.f32 %v640_v43, %v618_v39  ;;  %5825 = vmatprep.subr.bf16.mxu0 %v5824_v25  ;;  %v7003_v39 = vld [vmem:[#allocation2 + $0x20] sm:$0xff] }
 0x20c   :  { %5827 = vmatpush3.bf16.msra.mxu0 %v5824_v25  ;;  %v5840_v25 = vpack.c.bf16 %v189_v58, %v188_v27  ;;  %7755 = vst [vmem:[#allocation13_spill] sm:$0xff] %v7003_v39  ;;  %v196_v58 = vld [vmem:[#allocation4 + $0x1d0] sm:$0xff] }
 0x20d   :  { %v5828_v62 = vpack.c.bf16 %v654_v33, %v653_v48  ;;  %v4643_v63 = vpop.f32.mrb[30].mxu1  ;;  %v191_v33 = vld [vmem:[#allocation4 + $0x1a8] sm:$0xff] }
 0x20e   :  { %v656_v18 = vadd.f32 %v4643_v63, %v640_v43  ;;  %v628_v52 = vpop.f32.mrb[31].mxu1  ;;  %v5844_v48 = vpack.c.bf16 %v191_v33, %v190_v15  ;;  %v193_v63 = vld [vmem:[#allocation4 + $0x1b8] sm:$0xff]  ;;  %v7021_v33 = vld [vmem:[#allocation2 + $0x50] sm:$0xff] }
 0x20f   :  { %v655_v9 = vadd.f32 %v640_v43, %v628_v52  ;;  %5829 = vmatprep.subr.bf16.mxu0 %v5828_v62  ;;  %v7001_v43 = vld [vmem:[#allocation2 + $0x18] sm:$0xff]  ;;  %v7009_v52 = vld [vmem:[#allocation2 + $0x30] sm:$0xff]  ;;  %7761 = vst [vmem:[#allocation19_spill] sm:$0xff] %v7021_v33 }
 0x210   :  { %5831 = vmatpush3.bf16.msra.mxu0 %v5828_v62  ;;  %v192_v62 = vld [vmem:[#allocation4 + $0x1b0] sm:$0xff]  ;;  %7757 = vst [vmem:[#allocation15_spill] sm:$0xff] %v7009_v52  ;;  %v197_v15 = vld [vmem:[#allocation4 + $0x1d8] sm:$0xff] }
 0x211   :  { %v5832_v3 = vpack.c.bf16 %v656_v18, %v655_v9  ;;  %v7007_v18 = vld [vmem:[#allocation2 + $0x28] sm:$0xff]  ;;  %v5848_v57 = vpack.c.bf16 %v193_v63, %v192_v62  ;;  %v5856_v62 = vpack.c.bf16 %v197_v15, %v196_v58  ;;  %v198_v63 = vld [vmem:[#allocation4 + $0x1e0] sm:$0xff]  ;;  %v7033_v58 = vld [vmem:[#allocation2 + $0x70] sm:$0xff] }
 0x212   :  { %7756 = vst [vmem:[#allocation14_spill] sm:$0xff] %v7007_v18  ;;  %v195_v9 = vld [vmem:[#allocation4 + $0x1c8] sm:$0xff]  ;;  %7765 = vst [vmem:[#allocation23_spill] sm:$0xff] %v7033_v58 }
 0x213   :  { %5833 = vmatprep.subr.bf16.mxu0 %v5832_v3  ;;  %v5852_v27 = vpack.c.bf16 %v195_v9, %v194_v49  ;;  %v7027_v49 = vld [vmem:[#allocation2 + $0x60] sm:$0xff] }
 0x214   :  { %5835 = vmatpush3.bf16.msra.mxu0 %v5832_v3  ;;  %v7013_v3 = vld [vmem:[#allocation2 + $0x38] sm:$0xff]  ;;  %7763 = vst [vmem:[#allocation21_spill] sm:$0xff] %v7027_v49 }
 0x215   :  { %5837 = vmatprep.subr.bf16.mxu0 %v5836_v59  ;;  %7758 = vst [vmem:[#allocation16_spill] sm:$0xff] %v7013_v3 }
 0x217   :  { %4677 = vmatmul.mubr.f32.vlgmr.msra.gmra.mrb[0].mxu0 %v6995_v12 }
 0x218   :  { %4679 = vmatprep.mubr.f32.mxu0 %v6997_v26  ;;  %5839 = vmatpush3.bf16.msra.mxu0 %v5836_v59  ;;  %v7015_v59 = vld [vmem:[#allocation2 + $0x40] sm:$0xff] }
 0x219   :  { %5841 = vmatprep.subr.bf16.mxu0 %v5840_v25  ;;  %7759 = vst [vmem:[#allocation17_spill] sm:$0xff] %v7015_v59 }
 0x21b   :  { %4680 = vmatmul.mubr.f32.gmra.mrb[2].mxu0 %v7001_v43 }
 0x21c   :  { %4682 = vmatprep.mubr.f32.mxu0 %v7003_v39  ;;  %5843 = vmatpush3.bf16.msra.mxu0 %v5840_v25  ;;  %v7019_v25 = vld [vmem:[#allocation2 + $0x48] sm:$0xff] }
 0x21d   :  { %5845 = vmatprep.subr.bf16.mxu0 %v5844_v48  ;;  %7760 = vst [vmem:[#allocation18_spill] sm:$0xff] %v7019_v25 }
 0x21f   :  { %4683 = vmatmul.mubr.f32.gmra.mrb[4].mxu0 %v7007_v18 }
 0x220   :  { %4685 = vmatprep.mubr.f32.mxu0 %v7009_v52  ;;  %5847 = vmatpush3.bf16.msra.mxu0 %v5844_v48  ;;  %v199_v52 = vld [vmem:[#allocation4 + $0x1e8] sm:$0xff]  ;;  %v7025_v48 = vld [vmem:[#allocation2 + $0x58] sm:$0xff] }
 0x221   :  { %5849 = vmatprep.subr.bf16.mxu0 %v5848_v57  ;;  %7762 = vst [vmem:[#allocation20_spill] sm:$0xff] %v7025_v48  ;;  %v5860_v9 = vpack.c.bf16 %v199_v52, %v198_v63  ;;  %v169_v52 = vld [vmem:[#allocation4 + $0x100] sm:$0xff]  ;;  %v170_v63 = vld [vmem:[#allocation4 + $0x108] sm:$0xff] }
 0x223   :  { %4686 = vmatmul.mubr.f32.gmra.mrb[6].mxu0 %v7013_v3  ;;  %v201_v3 = vld [vmem:[#allocation4 + $0x1f8] sm:$0xff] }
 0x224   :  { %4688 = vmatprep.mubr.f32.mxu0 %v7015_v59  ;;  %5851 = vmatpush3.bf16.msra.mxu0 %v5848_v57  ;;  %v200_v59 = vld [vmem:[#allocation4 + $0x1f0] sm:$0xff]  ;;  %v7031_v57 = vld [vmem:[#allocation2 + $0x68] sm:$0xff] }
 0x225   :  { %5853 = vmatprep.subr.bf16.mxu0 %v5852_v27  ;;  %7764 = vst [vmem:[#allocation22_spill] sm:$0xff] %v7031_v57  ;;  %v5864_v15 = vpack.c.bf16 %v201_v3, %v200_v59  ;;  %v173_v59 = vld [vmem:[#allocation4 + $0x120] sm:$0xff] }
 0x227   :  { %4689 = vmatmul.mubr.f32.gmra.mrb[8].mxu0 %v7019_v25 }
 0x228   :  { %4691 = vmatprep.mubr.f32.mxu0 %v7021_v33  ;;  %5855 = vmatpush3.bf16.msra.mxu0 %v5852_v27  ;;  %v7037_v27 = vld [vmem:[#allocation2 + $0x78] sm:$0xff] }
 0x229   :  { %5857 = vmatprep.subr.bf16.mxu0 %v5856_v62  ;;  %7766 = vst [vmem:[#allocation24_spill] sm:$0xff] %v7037_v27 }
 0x22b   :  { %4692 = vmatmul.mubr.f32.gmra.mrb[10].mxu0 %v7025_v48  ;;  %v172_v48 = vld [vmem:[#allocation4 + $0x118] sm:$0xff] }
 0x22c   :  { %4694 = vmatprep.mubr.f32.mxu0 %v7027_v49  ;;  %5859 = vmatpush3.bf16.msra.mxu0 %v5856_v62  ;;  %v5868_v49 = vpack.c.bf16 %v170_v63, %v169_v52  ;;  %v171_v62 = vld [vmem:[#allocation4 + $0x110] sm:$0xff] }
 0x22d   :  { %5861 = vmatprep.subr.bf16.mxu0 %v5860_v9  ;;  %v5872_v3 = vpack.c.bf16 %v172_v48, %v171_v62  ;;  %v177_v48 = vld [vmem:[#allocation4 + $0x140] sm:$0xff] }
 0x22f   :  { %4695 = vmatmul.mubr.f32.gmra.mrb[12].mxu0 %v7031_v57  ;;  %v174_v57 = vld [vmem:[#allocation4 + $0x128] sm:$0xff] }
 0x230   :  { %4697 = vmatprep.mubr.f32.mxu0 %v7033_v58  ;;  %5863 = vmatpush3.bf16.msra.mxu0 %v5860_v9  ;;  %v5876_v18 = vpack.c.bf16 %v174_v57, %v173_v59  ;;  %v179_v57 = vld [vmem:[#allocation4 + $0x150] sm:$0xff]  ;;  %v180_v59 = vld [vmem:[#allocation4 + $0x158] sm:$0xff] }
 0x231   :  { %5865 = vmatprep.subr.bf16.mxu0 %v5864_v15 }
 0x233   :  { %4698 = vmatmul.mubr.f32.gmra.mrb[14].mxu0 %v7037_v27  ;;  %v176_v27 = vld [vmem:[#allocation4 + $0x138] sm:$0xff] }
 0x234   :  { %5867 = vmatpush3.bf16.msra.mxu0 %v5864_v15  ;;  %v175_v15 = vld [vmem:[#allocation4 + $0x130] sm:$0xff] }
 0x235   :  { %5869 = vmatprep.subr.bf16.mxu0 %v5868_v49  ;;  %v5880_v39 = vpack.c.bf16 %v176_v27, %v175_v15  ;;  %v181_v27 = vld [vmem:[#allocation4 + $0x160] sm:$0xff]  ;;  %v182_v15 = vld [vmem:[#allocation4 + $0x168] sm:$0xff] }
 0x2ea   :  { %v4678_v33 = vpop.f32.mrb[0].mxu0 }
 0x2eb   :  { %v723_v25 = vpop.f32.mrb[1].mxu0 }
 0x2ec   :  { %4732 = vmatprep.mubr.f32.mxu0 %v723_v25  ;;  %v178_v25 = vld [vmem:[#allocation4 + $0x148] sm:$0xff] }
 0x2ed   :  { %4733 = vmatmul.mubr.f32.vlgmr.msra.gmra.mrb[16].mxu0 %v4678_v33 }
 0x2ee   :  { %v4681_v58 = vpop.f32.mrb[2].mxu0  ;;  %5871 = vmatpush3.bf16.msra.mxu0 %v5868_v49  ;;  %v5884_v49 = vpack.c.bf16 %v178_v25, %v177_v48  ;;  %v183_v48 = vld [vmem:[#allocation4 + $0x170] sm:$0xff]  ;;  %v184_v25 = vld [vmem:[#allocation4 + $0x178] sm:$0xff] }
 0x2ef   :  { %v733_v9 = vpop.f32.mrb[3].mxu0  ;;  %5873 = vmatprep.subr.bf16.mxu0 %v5872_v3 }
 0x2f0   :  { %4735 = vmatprep.mubr.f32.mxu0 %v733_v9 }
 0x2f1   :  { %4736 = vmatmul.mubr.f32.gmra.mrb[18].mxu0 %v4681_v58 }
 0x2f2   :  { %v4684_v52 = vpop.f32.mrb[4].mxu0  ;;  %5875 = vmatpush3.bf16.msra.mxu0 %v5872_v3  ;;  %v5888_v3 = vpack.c.bf16 %v180_v59, %v179_v57 }
 0x2f3   :  { %v743_v63 = vpop.f32.mrb[5].mxu0  ;;  %5877 = vmatprep.subr.bf16.mxu0 %v5876_v18 }
 0x2f4   :  { %4738 = vmatprep.mubr.f32.mxu0 %v743_v63 }
 0x2f5   :  { %4739 = vmatmul.mubr.f32.gmra.mrb[20].mxu0 %v4684_v52 }
 0x2f6   :  { %v4687_v62 = vpop.f32.mrb[6].mxu0  ;;  %5879 = vmatpush3.bf16.msra.mxu0 %v5876_v18  ;;  %v5892_v18 = vpack.c.bf16 %v182_v15, %v181_v27 }
 0x2f7   :  { %v753_v33 = vpop.f32.mrb[7].mxu0  ;;  %5881 = vmatprep.subr.bf16.mxu0 %v5880_v39 }
 0x2f8   :  { %4741 = vmatprep.mubr.f32.mxu0 %v753_v33 }
 0x2f9   :  { %4742 = vmatmul.mubr.f32.gmra.mrb[22].mxu0 %v4687_v62 }
 0x2fa   :  { %v4690_v9 = vpop.f32.mrb[8].mxu0  ;;  %5883 = vmatpush3.bf16.msra.mxu0 %v5880_v39  ;;  %v5896_v39 = vpack.c.bf16 %v184_v25, %v183_v48 }
 0x2fb   :  { %v763_v58 = vpop.f32.mrb[9].mxu0  ;;  %5885 = vmatprep.subr.bf16.mxu0 %v5884_v49 }
 0x2fc   :  { %4744 = vmatprep.mubr.f32.mxu0 %v763_v58 }
 0x2fd   :  { %4745 = vmatmul.mubr.f32.gmra.mrb[24].mxu0 %v4690_v9 }
 0x2fe   :  { %v4693_v63 = vpop.f32.mrb[10].mxu0  ;;  %5887 = vmatpush3.bf16.msra.mxu0 %v5884_v49 }
 0x2ff   :  { %v773_v52 = vpop.f32.mrb[11].mxu0  ;;  %5889 = vmatprep.subr.bf16.mxu0 %v5888_v3 }
 0x300   :  { %4747 = vmatprep.mubr.f32.mxu0 %v773_v52 }
 0x301   :  { %4748 = vmatmul.mubr.f32.gmra.mrb[26].mxu0 %v4693_v63 }
 0x302   :  { %v4696_v33 = vpop.f32.mrb[12].mxu0  ;;  %5891 = vmatpush3.bf16.msra.mxu0 %v5888_v3 }
 0x303   :  { %v783_v62 = vpop.f32.mrb[13].mxu0  ;;  %5893 = vmatprep.subr.bf16.mxu0 %v5892_v18 }
 0x304   :  { %4750 = vmatprep.mubr.f32.mxu0 %v783_v62 }
 0x305   :  { %4751 = vmatmul.mubr.f32.gmra.mrb[28].mxu0 %v4696_v33 }
 0x306   :  { %v4699_v57 = vpop.f32.mrb[14].mxu0  ;;  %5895 = vmatpush3.bf16.msra.mxu0 %v5892_v18 }
 0x307   :  { %v793_v59 = vpop.f32.mrb[15].mxu0  ;;  %5897 = vmatprep.subr.bf16.mxu0 %v5896_v39 }
 0x308   :  { %4753 = vmatprep.mubr.f32.mxu0 %v793_v59 }
 0x309   :  { %4754 = vmatmul.mubr.f32.gmra.mrb[30].mxu0 %v4699_v57 }
 0x30a   :  { %5899 = vmatpush3.bf16.msra.mxu0 %v5896_v39  ;;  %4788 = vmatprep.mubr.f32.mxu0 %v6697_v0  ;;  %v1094_v0 = vsub.s32 1, %v6986_v34 }
 0x30d   :  { %4789 = vmatmul.mubr.f32.vlgmr.msra.gmra.mrb[16].mxu0 %v6702_v1  ;;  %v7059_v1 = vrot.slane %v6992_v42, %v1094_v0 }
 0x30e   :  { %4791 = vmatprep.mubr.f32.mxu0 %v6707_v2 }
 0x311   :  { %4792 = vmatmul.mubr.f32.gmra.mrb[18].mxu0 %v6714_v4 }
 0x312   :  { %4794 = vmatprep.mubr.f32.mxu0 %v6721_v6 }
 0x315   :  { %4795 = vmatmul.mubr.f32.gmra.mrb[20].mxu0 %v6726_v7 }
 0x316   :  { %4797 = vmatprep.mubr.f32.mxu0 %v6738_v10 }
 0x319   :  { %4798 = vmatmul.mubr.f32.gmra.mrb[22].mxu0 %v6743_v11 }
 0x31a   :  { %4800 = vmatprep.mubr.f32.mxu0 %v6751_v13 }
 0x31d   :  { %4801 = vmatmul.mubr.f32.gmra.mrb[24].mxu0 %v6756_v14 }
 0x31e   :  { %4803 = vmatprep.mubr.f32.mxu0 %v6763_v16 }
 0x321   :  { %4804 = vmatmul.mubr.f32.gmra.mrb[26].mxu0 %v6768_v17 }
 0x322   :  { %4806 = vmatprep.mubr.f32.mxu0 %v6775_v19 }
 0x325   :  { %4807 = vmatmul.mubr.f32.gmra.mrb[28].mxu0 %v6780_v20 }
 0x326   :  { %4809 = vmatprep.mubr.f32.mxu0 %v6787_v22 }
 0x329   :  { %4810 = vmatmul.mubr.f32.gmra.mrb[30].mxu0 %v6792_v23 }
 0x32a   :  { %5012 = vmatprep.mubr.f32.mxu0 %v6983_v32 }
 0x3e0   :  { %v4790_v2 = vpop.f32.mrb[16].mxu0 }
 0x3e1   :  { %v7062_v4 = vadd.f32 %v4790_v2, %v7059_v1  ;;  %v1013_v6 = vpop.f32.mrb[17].mxu0 }
 0x3e2   :  { %v7065_v7 = vadd.f32 %v7059_v1, %v1013_v6 }
 0x3e3   :  { %v1113_v10 = vmax.f32 %v7062_v4, 0.0 }
 0x3e4   :  { %v1112_v11 = vmax.f32 %v7065_v7, 0.0  ;;  %v4793_v13 = vpop.f32.mrb[18].mxu0 }
 0x3e5   :  { %v7070_v14 = vadd.f32 %v4793_v13, %v7059_v1  ;;  %v1023_v16 = vpop.f32.mrb[19].mxu0 }
 0x3e6   :  { %v5900_v17 = vpack.c.bf16 %v1113_v10, %v1112_v11  ;;  %v7077_v19 = vadd.f32 %v7059_v1, %v1023_v16 }
 0x3e7   :  { %v7745_v20 = vmax.f32 %v7070_v14, 0.0 }
 0x3e8   :  { %v1114_v22 = vmax.f32 %v7077_v19, 0.0  ;;  %v4796_v23 = vpop.f32.mrb[20].mxu0  ;;  %5901 = vmatprep.subr.bf16.mxu1 %v5900_v17 }
 0x3e9   :  { %v7082_v32 = vadd.f32 %v4796_v23, %v7059_v1  ;;  %v1033_v49 = vpop.f32.mrb[21].mxu0  ;;  %5903 = vmatpush3.bf16.msra.mxu1 %v5900_v17 }
 0x3ea   :  { %v5904_v9 = vpack.c.bf16 %v7745_v20, %v1114_v22  ;;  %v7089_v58 = vadd.f32 %v7059_v1, %v1033_v49  ;;  %v1153_v20 = vld [vmem:[#allocation4 + $0x2b8] sm:$0xff] }
 0x3eb   :  { %v7741_v3 = vmax.f32 %v7082_v32, 0.0 }
 0x3ec   :  { %v7742_v27 = vmax.f32 %v7089_v58, 0.0  ;;  %v4799_v15 = vpop.f32.mrb[22].mxu0  ;;  %5905 = vmatprep.subr.bf16.mxu1 %v5904_v9 }
 0x3ed   :  { %v7094_v63 = vadd.f32 %v4799_v15, %v7059_v1  ;;  %v1043_v52 = vpop.f32.mrb[23].mxu0  ;;  %5907 = vmatpush3.bf16.msra.mxu1 %v5904_v9 }
 0x3ee   :  { %v5908_v18 = vpack.c.bf16 %v7741_v3, %v7742_v27  ;;  %v7101_v48 = vadd.f32 %v7059_v1, %v1043_v52  ;;  %v1148_v3 = vld [vmem:[#allocation4 + $0x290] sm:$0xff]  ;;  %v1149_v27 = vld [vmem:[#allocation4 + $0x298] sm:$0xff] }
 0x3ef   :  { %v7739_v25 = vmax.f32 %v7094_v63, 0.0  ;;  %v7788_v7 = vmax.f32 %v7094_v63, 0.0  ;;  %v7247_v63 = vld [vmem:[%s7716_s6] sm:$0x7f] }
 0x3f0   :  { %v7740_v33 = vmax.f32 %v7101_v48, 0.0  ;;  %v4802_v62 = vpop.f32.mrb[24].mxu0  ;;  %5909 = vmatprep.subr.bf16.mxu1 %v5908_v18 }
 0x3f1   :  { %v7106_v39 = vadd.f32 %v4802_v62, %v7059_v1  ;;  %v1053_v57 = vpop.f32.mrb[25].mxu0  ;;  %5911 = vmatpush3.bf16.msra.mxu1 %v5908_v18 }
 0x3f2   :  { %v5912_v59 = vpack.c.bf16 %v7739_v25, %v7740_v33  ;;  %v7113_v0 = vadd.f32 %v7059_v1, %v1053_v57  ;;  %v1147_v25 = vld [vmem:[#allocation4 + $0x288] sm:$0xff] }
 0x3f3   :  { %v7735_v2 = vmax.f32 %v7106_v39, 0.0 }
 0x3f4   :  { %v7736_v6 = vmax.f32 %v7113_v0, 0.0  ;;  %v4805_v13 = vpop.f32.mrb[26].mxu0  ;;  %5913 = vmatprep.subr.bf16.mxu1 %v5912_v59  ;;  %v7789_v4 = vmax.f32 %v7113_v0, 0.0 }
 0x3f5   :  { %v7118_v16 = vadd.f32 %v4805_v13, %v7059_v1  ;;  %v1063_v17 = vpop.f32.mrb[27].mxu0  ;;  %5915 = vmatpush3.bf16.msra.mxu1 %v5912_v59 }
 0x3f6   :  { %v5916_v23 = vpack.c.bf16 %v7735_v2, %v7736_v6  ;;  %v7125_v49 = vadd.f32 %v7059_v1, %v1063_v17 }
 0x3f7   :  { %v7737_v9 = vmax.f32 %v7118_v16, 0.0 }
 0x3f8   :  { %v7738_v15 = vmax.f32 %v7125_v49, 0.0  ;;  %v4808_v52 = vpop.f32.mrb[28].mxu0  ;;  %5917 = vmatprep.subr.bf16.mxu1 %v5916_v23 }
 0x3f9   :  { %v7130_v18 = vadd.f32 %v4808_v52, %v7059_v1  ;;  %v1073_v62 = vpop.f32.mrb[29].mxu0  ;;  %5919 = vmatpush3.bf16.msra.mxu1 %v5916_v23 }
 0x3fa   :  { %v5920_v57 = vpack.c.bf16 %v7737_v9, %v7738_v15  ;;  %v7137_v59 = vadd.f32 %v7059_v1, %v1073_v62  ;;  %v1146_v15 = vld [vmem:[#allocation4 + $0x280] sm:$0xff] }
 0x3fb   :  { %v7743_v13 = vmax.f32 %v7130_v18, 0.0 }
 0x3fc   :  { %v7744_v17 = vmax.f32 %v7137_v59, 0.0  ;;  %v4811_v2 = vpop.f32.mrb[30].mxu0  ;;  %5921 = vmatprep.subr.bf16.mxu1 %v5920_v57  ;;  %v7793_v19 = vmax.f32 %v7137_v59, 0.0 }
 0x3fd   :  { %v7142_v6 = vadd.f32 %v4811_v2, %v7059_v1  ;;  %v1083_v52 = vpop.f32.mrb[31].mxu0  ;;  %5923 = vmatpush3.bf16.msra.mxu1 %v5920_v57  ;;  %v5932_v57 = vpack.c.bf16 %v1147_v25, %v1146_v15  ;;  %v1154_v15 = vld [vmem:[#allocation4 + $0x2c0] sm:$0xff] }
 0x3fe   :  { %v5924_v23 = vpack.c.bf16 %v7743_v13, %v7744_v17  ;;  %v7149_v9 = vadd.f32 %v7059_v1, %v1083_v52  ;;  %v5936_v1 = vpack.c.bf16 %v1149_v27, %v1148_v3  ;;  %v1150_v52 = vld [vmem:[#allocation4 + $0x2a0] sm:$0xff]  ;;  %v1151_v13 = vld [vmem:[#allocation4 + $0x2a8] sm:$0xff]  ;;  %v1152_v17 = vld [vmem:[#allocation4 + $0x2b0] sm:$0xff] }
 0x3ff   :  { %v1127_v62 = vmax.f32 %v7142_v6, 0.0  ;;  %v5944_v25 = vpack.c.bf16 %v1153_v20, %v1152_v17  ;;  %v1155_v3 = vld [vmem:[#allocation4 + $0x2c8] sm:$0xff]  ;;  %v1157_v27 = vld [vmem:[#allocation4 + $0x2d8] sm:$0xff] }
 0x400   :  { %v1126_v33 = vmax.f32 %v7149_v9, 0.0  ;;  %5925 = vmatprep.subr.bf16.mxu1 %v5924_v23  ;;  %v1159_v20 = vld [vmem:[#allocation4 + $0x2e8] sm:$0xff] }
 0x401   :  { %5927 = vmatpush3.bf16.msra.mxu1 %v5924_v23  ;;  %v5940_v23 = vpack.c.bf16 %v1151_v13, %v1150_v52  ;;  %v1161_v13 = vld [vmem:[#allocation4 + $0x2f8] sm:$0xff]  ;;  %v1130_v17 = vld [vmem:[#allocation4 + $0x208] sm:$0xff] }
 0x402   :  { %v5928_v2 = vpack.c.bf16 %v1127_v62, %v1126_v33  ;;  %v1138_v52 = vld [vmem:[#allocation4 + $0x248] sm:$0xff] }
 0x404   :  { %5929 = vmatprep.subr.bf16.mxu1 %v5928_v2 }
 0x405   :  { %5931 = vmatpush3.bf16.msra.mxu1 %v5928_v2  ;;  %v1132_v2 = vld [vmem:[#allocation4 + $0x218] sm:$0xff] }
 0x406   :  { %5933 = vmatprep.subr.bf16.mxu1 %v5932_v57 }
 0x408   :  { %4845 = vmatmul.mubr.f32.vlgmr.msra.gmra.mrb[32].mxu1 %v6799_v30  ;;  %v5948_v30 = vpack.c.bf16 %v1155_v3, %v1154_v15  ;;  %v1144_v15 = vld [vmem:[#allocation4 + $0x278] sm:$0xff]  ;;  %v7767_v3 = vld [vmem:[#allocation8_spill] sm:$0xff] }
 0x409   :  { %4847 = vmatprep.mubr.f32.mxu1 %v6804_v31  ;;  %5935 = vmatpush3.bf16.msra.mxu1 %v5932_v57  ;;  %v1156_v31 = vld [vmem:[#allocation4 + $0x2d0] sm:$0xff]  ;;  %v1134_v57 = vld [vmem:[#allocation4 + $0x228] sm:$0xff] }
 0x40a   :  { %5937 = vmatprep.subr.bf16.mxu1 %v5936_v1 }
 0x40c   :  { %4848 = vmatmul.mubr.f32.gmra.mrb[34].mxu1 %v6811_v35  ;;  %v5952_v35 = vpack.c.bf16 %v1157_v27, %v1156_v31  ;;  %v7770_v31 = vld [vmem:[#allocation11_spill] sm:$0xff] }
 0x40d   :  { %4850 = vmatprep.mubr.f32.mxu1 %v6816_v36  ;;  %5939 = vmatpush3.bf16.msra.mxu1 %v5936_v1  ;;  %v1158_v36 = vld [vmem:[#allocation4 + $0x2e0] sm:$0xff]  ;;  %v1136_v1 = vld [vmem:[#allocation4 + $0x238] sm:$0xff] }
 0x40e   :  { %5941 = vmatprep.subr.bf16.mxu1 %v5940_v23 }
 0x410   :  { %4851 = vmatmul.mubr.f32.gmra.mrb[36].mxu1 %v6823_v40  ;;  %v5956_v40 = vpack.c.bf16 %v1159_v20, %v1158_v36 }
 0x411   :  { %4853 = vmatprep.mubr.f32.mxu1 %v6828_v41  ;;  %5943 = vmatpush3.bf16.msra.mxu1 %v5940_v23  ;;  %v1160_v41 = vld [vmem:[#allocation4 + $0x2f0] sm:$0xff]  ;;  %v1140_v23 = vld [vmem:[#allocation4 + $0x258] sm:$0xff] }
 0x412   :  { %5945 = vmatprep.subr.bf16.mxu1 %v5944_v25 }
 0x414   :  { %4854 = vmatmul.mubr.f32.gmra.mrb[38].mxu1 %v6835_v45  ;;  %v5960_v45 = vpack.c.bf16 %v1161_v13, %v1160_v41 }
 0x415   :  { %4856 = vmatprep.mubr.f32.mxu1 %v6840_v46  ;;  %5947 = vmatpush3.bf16.msra.mxu1 %v5944_v25  ;;  %v1129_v46 = vld [vmem:[#allocation4 + $0x200] sm:$0xff]  ;;  %v1142_v25 = vld [vmem:[#allocation4 + $0x268] sm:$0xff] }
 0x416   :  { %5949 = vmatprep.subr.bf16.mxu1 %v5948_v30 }
 0x418   :  { %4857 = vmatmul.mubr.f32.gmra.mrb[40].mxu1 %v6847_v50  ;;  %v5964_v50 = vpack.c.bf16 %v1130_v17, %v1129_v46 }
 0x419   :  { %4859 = vmatprep.mubr.f32.mxu1 %v6852_v51  ;;  %5951 = vmatpush3.bf16.msra.mxu1 %v5948_v30  ;;  %v1131_v51 = vld [vmem:[#allocation4 + $0x210] sm:$0xff] }
 0x41a   :  { %5953 = vmatprep.subr.bf16.mxu1 %v5952_v35  ;;  %v7769_v30 = vld [vmem:[#allocation10_spill] sm:$0xff] }
 0x41c   :  { %4860 = vmatmul.mubr.f32.gmra.mrb[42].mxu1 %v6859_v55  ;;  %v5968_v55 = vpack.c.bf16 %v1132_v2, %v1131_v51 }
 0x41d   :  { %4862 = vmatprep.mubr.f32.mxu1 %v6864_v56  ;;  %5955 = vmatpush3.bf16.msra.mxu1 %v5952_v35  ;;  %v1133_v56 = vld [vmem:[#allocation4 + $0x220] sm:$0xff] }
 0x41e   :  { %5957 = vmatprep.subr.bf16.mxu1 %v5956_v40 }
 0x420   :  { %4863 = vmatmul.mubr.f32.gmra.mrb[44].mxu1 %v6871_v60  ;;  %v5972_v60 = vpack.c.bf16 %v1134_v57, %v1133_v56  ;;  %v7191_v57 = vld [vmem:[%s7712_s2] sm:$0xff] }
 0x421   :  { %4865 = vmatprep.mubr.f32.mxu1 %v6876_v61  ;;  %5959 = vmatpush3.bf16.msra.mxu1 %v5956_v40  ;;  %v1135_v61 = vld [vmem:[#allocation4 + $0x230] sm:$0xff] }
 0x422   :  { %5961 = vmatprep.subr.bf16.mxu1 %v5960_v45 }
 0x424   :  { %4866 = vmatmul.mubr.f32.gmra.mrb[46].mxu1 %v6883_v5  ;;  %v5976_v5 = vpack.c.bf16 %v1136_v1, %v1135_v61 }
 0x425   :  { %5963 = vmatpush3.bf16.msra.mxu1 %v5960_v45  ;;  %4900 = vmatprep.mubr.f32.mxu1 %v6888_v8  ;;  %v1137_v8 = vld [vmem:[#allocation4 + $0x240] sm:$0xff] }
 0x426   :  { %5965 = vmatprep.subr.bf16.mxu1 %v5964_v50 }
 0x428   :  { %4901 = vmatmul.mubr.f32.vlgmr.msra.gmra.mrb[48].mxu1 %v6895_v21  ;;  %v5980_v21 = vpack.c.bf16 %v1138_v52, %v1137_v8 }
 0x429   :  { %5967 = vmatpush3.bf16.msra.mxu1 %v5964_v50  ;;  %4903 = vmatprep.mubr.f32.mxu1 %v6900_v24  ;;  %v1139_v24 = vld [vmem:[#allocation4 + $0x250] sm:$0xff] }
 0x42a   :  { %5969 = vmatprep.subr.bf16.mxu1 %v5968_v55 }
 0x42c   :  { %4904 = vmatmul.mubr.f32.gmra.mrb[50].mxu1 %v6907_v28  ;;  %v5984_v28 = vpack.c.bf16 %v1140_v23, %v1139_v24 }
 0x42d   :  { %5971 = vmatpush3.bf16.msra.mxu1 %v5968_v55  ;;  %4906 = vmatprep.mubr.f32.mxu1 %v6912_v29  ;;  %v1141_v29 = vld [vmem:[#allocation4 + $0x260] sm:$0xff] }
 0x42e   :  { %5973 = vmatprep.subr.bf16.mxu1 %v5972_v60 }
 0x430   :  { %4907 = vmatmul.mubr.f32.gmra.mrb[52].mxu1 %v6919_v37  ;;  %v5988_v37 = vpack.c.bf16 %v1142_v25, %v1141_v29 }
 0x431   :  { %5975 = vmatpush3.bf16.msra.mxu1 %v5972_v60  ;;  %4909 = vmatprep.mubr.f32.mxu1 %v6924_v38  ;;  %v1143_v38 = vld [vmem:[#allocation4 + $0x270] sm:$0xff]  ;;  %v1633_v60 = vsub.s32 2, %v6986_v34 }
 0x432   :  { %5977 = vmatprep.subr.bf16.mxu1 %v5976_v5 }
 0x433   :  { %v1634_v61 = vrot.slane %v6992_v42, %v1633_v60 }
 0x434   :  { %4910 = vmatmul.mubr.f32.gmra.mrb[54].mxu1 %v6931_v44  ;;  %v7768_v44 = vld [vmem:[#allocation9_spill] sm:$0xff] }
 0x435   :  { %5979 = vmatpush3.bf16.msra.mxu1 %v5976_v5  ;;  %4912 = vmatprep.mubr.f32.mxu1 %v6936_v47  ;;  %v5992_v47 = vpack.c.bf16 %v1144_v15, %v1143_v38 }
 0x436   :  { %5981 = vmatprep.subr.bf16.mxu1 %v5980_v21 }
 0x438   :  { %4913 = vmatmul.mubr.f32.gmra.mrb[56].mxu1 %v6943_v53  ;;  %v7771_v53 = vld [vmem:[#allocation12_spill] sm:$0xff] }
 0x439   :  { %5983 = vmatpush3.bf16.msra.mxu1 %v5980_v21  ;;  %4915 = vmatprep.mubr.f32.mxu1 %v6948_v54 }
 0x43a   :  { %5985 = vmatprep.subr.bf16.mxu1 %v5984_v28 }
 0x43c   :  { %4916 = vmatmul.mubr.f32.gmra.mrb[58].mxu1 %v7767_v3 }
 0x43d   :  { %5987 = vmatpush3.bf16.msra.mxu1 %v5984_v28  ;;  %4918 = vmatprep.mubr.f32.mxu1 %v7768_v44 }
 0x43e   :  { %5989 = vmatprep.subr.bf16.mxu1 %v5988_v37 }
 0x440   :  { %4919 = vmatmul.mubr.f32.gmra.mrb[60].mxu1 %v7769_v30 }
 0x441   :  { %5991 = vmatpush3.bf16.msra.mxu1 %v5988_v37  ;;  %4921 = vmatprep.mubr.f32.mxu1 %v7770_v31 }
 0x442   :  { %5993 = vmatprep.subr.bf16.mxu1 %v5992_v47 }
 0x444   :  { %4922 = vmatmul.mubr.f32.gmra.mrb[62].mxu1 %v7771_v53 }
 0x445   :  { %5995 = vmatpush3.bf16.msra.mxu1 %v5992_v47 }
 0x4db   :  { %v4846_v54 = vpop.f32.mrb[32].mxu1 }
 0x4dc   :  { %v1262_v27 = vpop.f32.mrb[33].mxu1 }
 0x4dd   :  { %4956 = vmatprep.mubr.f32.mxu1 %v1262_v27 }
 0x4de   :  { %4957 = vmatmul.mubr.f32.vlgmr.msra.gmra.mrb[48].mxu1 %v4846_v54 }
 0x4df   :  { %v4849_v35 = vpop.f32.mrb[34].mxu1 }
 0x4e0   :  { %v1272_v36 = vpop.f32.mrb[35].mxu1 }
 0x4e1   :  { %4959 = vmatprep.mubr.f32.mxu1 %v1272_v36 }
 0x4e2   :  { %4960 = vmatmul.mubr.f32.gmra.mrb[50].mxu1 %v4849_v35 }
 0x4e3   :  { %v4852_v20 = vpop.f32.mrb[36].mxu1 }
 0x4e4   :  { %v1282_v40 = vpop.f32.mrb[37].mxu1 }
 0x4e5   :  { %4962 = vmatprep.mubr.f32.mxu1 %v1282_v40 }
 0x4e6   :  { %4963 = vmatmul.mubr.f32.gmra.mrb[52].mxu1 %v4852_v20 }
 0x4e7   :  { %v4855_v41 = vpop.f32.mrb[38].mxu1 }
 0x4e8   :  { %v1292_v13 = vpop.f32.mrb[39].mxu1 }
 0x4e9   :  { %4965 = vmatprep.mubr.f32.mxu1 %v1292_v13 }
 0x4ea   :  { %4966 = vmatmul.mubr.f32.gmra.mrb[54].mxu1 %v4855_v41 }
 0x4eb   :  { %v4858_v45 = vpop.f32.mrb[40].mxu1 }
 0x4ec   :  { %v1302_v46 = vpop.f32.mrb[41].mxu1 }
 0x4ed   :  { %4968 = vmatprep.mubr.f32.mxu1 %v1302_v46 }
 0x4ee   :  { %4969 = vmatmul.mubr.f32.gmra.mrb[56].mxu1 %v4858_v45 }
 0x4ef   :  { %v4861_v17 = vpop.f32.mrb[42].mxu1 }
 0x4f0   :  { %v1312_v50 = vpop.f32.mrb[43].mxu1 }
 0x4f1   :  { %4971 = vmatprep.mubr.f32.mxu1 %v1312_v50 }
 0x4f2   :  { %4972 = vmatmul.mubr.f32.gmra.mrb[58].mxu1 %v4861_v17 }
 0x4f3   :  { %v4864_v51 = vpop.f32.mrb[44].mxu1 }
 0x4f4   :  { %v1322_v2 = vpop.f32.mrb[45].mxu1 }
 0x4f5   :  { %4974 = vmatprep.mubr.f32.mxu1 %v1322_v2 }
 0x4f6   :  { %4975 = vmatmul.mubr.f32.gmra.mrb[60].mxu1 %v4864_v51 }
 0x4f7   :  { %v4867_v55 = vpop.f32.mrb[46].mxu1 }
 0x4f8   :  { %v1332_v56 = vpop.f32.mrb[47].mxu1 }
 0x4f9   :  { %4977 = vmatprep.mubr.f32.mxu1 %v1332_v56 }
 0x4fa   :  { %4978 = vmatmul.mubr.f32.gmra.mrb[62].mxu1 %v4867_v55 }
 0x4fb   :  { %5180 = vmatprep.mubr.f32.mxu1 %v7191_v57 }
 0x5b1   :  { %v4958_v1 = vpop.f32.mrb[48].mxu1 }
 0x5b2   :  { %v1636_v5 = vadd.f32 %v4958_v1, %v1634_v61  ;;  %v1552_v8 = vpop.f32.mrb[49].mxu1 }
 0x5b3   :  { %v1635_v52 = vadd.f32 %v1634_v61, %v1552_v8  ;;  %v1181_v8 = vld [vmem:[#allocation4 + $0x388] sm:$0xff] }
 0x5b5   :  { %v5996_v21 = vpack.c.bf16 %v1636_v5, %v1635_v52  ;;  %v4961_v24 = vpop.f32.mrb[50].mxu1  ;;  %v1180_v5 = vld [vmem:[#allocation4 + $0x380] sm:$0xff] }
 0x5b6   :  { %v1638_v23 = vadd.f32 %v4961_v24, %v1634_v61  ;;  %v1562_v28 = vpop.f32.mrb[51].mxu1  ;;  %v6028_v24 = vpack.c.bf16 %v1181_v8, %v1180_v5  ;;  %v1165_v5 = vld [vmem:[#allocation4 + $0x310] sm:$0xff]  ;;  %v1166_v8 = vld [vmem:[#allocation4 + $0x318] sm:$0xff] }
 0x5b7   :  { %v1637_v29 = vadd.f32 %v1634_v61, %v1562_v28  ;;  %5997 = vmatprep.subr.bf16.mxu0 %v5996_v21  ;;  %v1183_v28 = vld [vmem:[#allocation4 + $0x398] sm:$0xff] }
 0x5b8   :  { %5999 = vmatpush3.bf16.msra.mxu0 %v5996_v21 }
 0x5b9   :  { %v6000_v25 = vpack.c.bf16 %v1638_v23, %v1637_v29  ;;  %v4964_v37 = vpop.f32.mrb[52].mxu1  ;;  %v1182_v23 = vld [vmem:[#allocation4 + $0x390] sm:$0xff] }
 0x5ba   :  { %v1640_v38 = vadd.f32 %v4964_v37, %v1634_v61  ;;  %v1572_v15 = vpop.f32.mrb[53].mxu1  ;;  %v6032_v29 = vpack.c.bf16 %v1183_v28, %v1182_v23  ;;  %v1185_v37 = vld [vmem:[#allocation4 + $0x3a8] sm:$0xff]  ;;  %v1167_v23 = vld [vmem:[#allocation4 + $0x320] sm:$0xff] }
 0x5bb   :  { %v1639_v3 = vadd.f32 %v1634_v61, %v1572_v15  ;;  %6001 = vmatprep.subr.bf16.mxu0 %v6000_v25  ;;  %v1187_v15 = vld [vmem:[#allocation4 + $0x3b8] sm:$0xff]  ;;  %v1168_v28 = vld [vmem:[#allocation4 + $0x328] sm:$0xff] }
 0x5bc   :  { %6003 = vmatpush3.bf16.msra.mxu0 %v6000_v25  ;;  %v1184_v25 = vld [vmem:[#allocation4 + $0x3a0] sm:$0xff] }
 0x5bd   :  { %v6004_v44 = vpack.c.bf16 %v1640_v38, %v1639_v3  ;;  %v4967_v42 = vpop.f32.mrb[54].mxu1  ;;  %v6036_v38 = vpack.c.bf16 %v1185_v37, %v1184_v25  ;;  %v7772_v3 = vld [vmem:[#allocation13_spill] sm:$0xff]  ;;  %v6068_v37 = vpack.c.bf16 %v1168_v28, %v1167_v23 }
 0x5be   :  { %v1642_v47 = vadd.f32 %v4967_v42, %v1634_v61  ;;  %v1582_v30 = vpop.f32.mrb[55].mxu1  ;;  %v1188_v42 = vld [vmem:[#allocation4 + $0x3c0] sm:$0xff] }
 0x5bf   :  { %v1641_v31 = vadd.f32 %v1634_v61, %v1582_v30  ;;  %6005 = vmatprep.subr.bf16.mxu0 %v6004_v44  ;;  %v7773_v30 = vld [vmem:[#allocation14_spill] sm:$0xff] }
 0x5c0   :  { %6007 = vmatpush3.bf16.msra.mxu0 %v6004_v44 }
 0x5c1   :  { %v6008_v53 = vpack.c.bf16 %v1642_v47, %v1641_v31  ;;  %v4970_v54 = vpop.f32.mrb[56].mxu1  ;;  %v1189_v47 = vld [vmem:[#allocation4 + $0x3c8] sm:$0xff]  ;;  %v7774_v31 = vld [vmem:[#allocation15_spill] sm:$0xff] }
 0x5c2   :  { %v1644_v27 = vadd.f32 %v4970_v54, %v1634_v61  ;;  %v1592_v35 = vpop.f32.mrb[57].mxu1  ;;  %v7775_v54 = vld [vmem:[#allocation16_spill] sm:$0xff] }
 0x5c3   :  { %v1643_v36 = vadd.f32 %v1634_v61, %v1592_v35  ;;  %6009 = vmatprep.subr.bf16.mxu0 %v6008_v53  ;;  %v1192_v35 = vld [vmem:[#allocation4 + $0x3e0] sm:$0xff] }
 0x5c4   :  { %6011 = vmatpush3.bf16.msra.mxu0 %v6008_v53  ;;  %v1191_v53 = vld [vmem:[#allocation4 + $0x3d8] sm:$0xff] }
 0x5c5   :  { %v6012_v20 = vpack.c.bf16 %v1644_v27, %v1643_v36  ;;  %v4973_v40 = vpop.f32.mrb[58].mxu1  ;;  %v7776_v27 = vld [vmem:[#allocation17_spill] sm:$0xff] }
 0x5c6   :  { %v1646_v41 = vadd.f32 %v4973_v40, %v1634_v61  ;;  %v1602_v13 = vpop.f32.mrb[59].mxu1  ;;  %v1193_v36 = vld [vmem:[#allocation4 + $0x3e8] sm:$0xff]  ;;  %v7778_v40 = vld [vmem:[#allocation19_spill] sm:$0xff] }
 0x5c7   :  { %v1645_v45 = vadd.f32 %v1634_v61, %v1602_v13  ;;  %6013 = vmatprep.subr.bf16.mxu0 %v6012_v20  ;;  %v1194_v13 = vld [vmem:[#allocation4 + $0x3f0] sm:$0xff] }
 0x5c8   :  { %6015 = vmatpush3.bf16.msra.mxu0 %v6012_v20  ;;  %v7777_v20 = vld [vmem:[#allocation18_spill] sm:$0xff] }
 0x5c9   :  { %v6016_v46 = vpack.c.bf16 %v1646_v41, %v1645_v45  ;;  %v4976_v17 = vpop.f32.mrb[60].mxu1  ;;  %v6052_v41 = vpack.c.bf16 %v1193_v36, %v1192_v35  ;;  %v1195_v45 = vld [vmem:[#allocation4 + $0x3f8] sm:$0xff]  ;;  %v1175_v35 = vld [vmem:[#allocation4 + $0x360] sm:$0xff]  ;;  %v1176_v36 = vld [vmem:[#allocation4 + $0x368] sm:$0xff] }
 0x5ca   :  { %v1648_v50 = vadd.f32 %v4976_v17, %v1634_v61  ;;  %v1612_v51 = vpop.f32.mrb[61].mxu1  ;;  %v7780_v17 = vld [vmem:[#allocation21_spill] sm:$0xff] }
 0x5cb   :  { %v1647_v2 = vadd.f32 %v1634_v61, %v1612_v51  ;;  %6017 = vmatprep.subr.bf16.mxu0 %v6016_v46  ;;  %v7781_v51 = vld [vmem:[#allocation22_spill] sm:$0xff] }
 0x5cc   :  { %6019 = vmatpush3.bf16.msra.mxu0 %v6016_v46  ;;  %v7779_v46 = vld [vmem:[#allocation20_spill] sm:$0xff] }
 0x5cd   :  { %v6020_v55 = vpack.c.bf16 %v1648_v50, %v1647_v2  ;;  %v4979_v56 = vpop.f32.mrb[62].mxu1  ;;  %v6056_v50 = vpack.c.bf16 %v1195_v45, %v1194_v13  ;;  %v7782_v2 = vld [vmem:[#allocation23_spill] sm:$0xff]  ;;  %v1177_v13 = vld [vmem:[#allocation4 + $0x370] sm:$0xff] }
 0x5ce   :  { %v1650_v60 = vadd.f32 %v4979_v56, %v1634_v61  ;;  %v1622_v1 = vpop.f32.mrb[63].mxu1  ;;  %v1163_v56 = vld [vmem:[#allocation4 + $0x300] sm:$0xff]  ;;  %v1178_v45 = vld [vmem:[#allocation4 + $0x378] sm:$0xff] }
 0x5cf   :  { %v1649_v52 = vadd.f32 %v1634_v61, %v1622_v1  ;;  %6021 = vmatprep.subr.bf16.mxu0 %v6020_v55  ;;  %v1186_v61 = vld [vmem:[#allocation4 + $0x3b0] sm:$0xff] }
 0x5d0   :  { %6023 = vmatpush3.bf16.msra.mxu0 %v6020_v55  ;;  %v6040_v44 = vpack.c.bf16 %v1187_v15, %v1186_v61  ;;  %v7783_v55 = vld [vmem:[#allocation24_spill] sm:$0xff]  ;;  %v1170_v61 = vld [vmem:[#allocation4 + $0x338] sm:$0xff] }
 0x5d1   :  { %v6024_v21 = vpack.c.bf16 %v1650_v60, %v1649_v52  ;;  %v1164_v60 = vld [vmem:[#allocation4 + $0x308] sm:$0xff] }
 0x5d2   :  { %v6060_v1 = vpack.c.bf16 %v1164_v60, %v1163_v56  ;;  %v7785_v56 = vmax.f32 %v7089_v58, 0.0  ;;  %v7786_v60 = vmax.f32 %v7082_v32, 0.0  ;;  %v6529_v32 = vld [vmem:[#allocation2] sm:$0xff]  ;;  %v2088_v58 = vsub.s32 3, %v6986_v34 }
 0x5d3   :  { %6025 = vmatprep.subr.bf16.mxu0 %v6024_v21 }
 0x5d4   :  { %6027 = vmatpush3.bf16.msra.mxu0 %v6024_v21 }
 0x5d5   :  { %6029 = vmatprep.subr.bf16.mxu0 %v6028_v24 }
 0x5d7   :  { %5013 = vmatmul.mubr.f32.vlgmr.msra.gmra.mrb[32].mxu0 %v6995_v12  ;;  %v6044_v12 = vpack.c.bf16 %v1189_v47, %v1188_v42  ;;  %v1171_v42 = vld [vmem:[#allocation4 + $0x340] sm:$0xff]  ;;  %v1172_v47 = vld [vmem:[#allocation4 + $0x348] sm:$0xff] }
 0x5d8   :  { %5015 = vmatprep.mubr.f32.mxu0 %v6997_v26  ;;  %6031 = vmatpush3.bf16.msra.mxu0 %v6028_v24  ;;  %v1190_v26 = vld [vmem:[#allocation4 + $0x3d0] sm:$0xff]  ;;  %v6064_v24 = vpack.c.bf16 %v1166_v8, %v1165_v5 }
 0x5d9   :  { %6033 = vmatprep.subr.bf16.mxu0 %v6032_v29 }
 0x5db   :  { %5016 = vmatmul.mubr.f32.gmra.mrb[34].mxu0 %v7001_v43  ;;  %v6048_v43 = vpack.c.bf16 %v1191_v53, %v1190_v26  ;;  %v1173_v26 = vld [vmem:[#allocation4 + $0x350] sm:$0xff]  ;;  %v1174_v53 = vld [vmem:[#allocation4 + $0x358] sm:$0xff] }
 0x5dc   :  { %5018 = vmatprep.mubr.f32.mxu0 %v7772_v3  ;;  %6035 = vmatpush3.bf16.msra.mxu0 %v6032_v29 }
 0x5dd   :  { %6037 = vmatprep.subr.bf16.mxu0 %v6036_v38 }
 0x5df   :  { %5019 = vmatmul.mubr.f32.gmra.mrb[36].mxu0 %v7773_v30 }
 0x5e0   :  { %5021 = vmatprep.mubr.f32.mxu0 %v7774_v31  ;;  %6039 = vmatpush3.bf16.msra.mxu0 %v6036_v38  ;;  %v1169_v38 = vld [vmem:[#allocation4 + $0x330] sm:$0xff] }
 0x5e1   :  { %6041 = vmatprep.subr.bf16.mxu0 %v6040_v44 }
 0x5e3   :  { %5022 = vmatmul.mubr.f32.gmra.mrb[38].mxu0 %v7775_v54 }
 0x5e4   :  { %5024 = vmatprep.mubr.f32.mxu0 %v7776_v27  ;;  %6043 = vmatpush3.bf16.msra.mxu0 %v6040_v44  ;;  %v6072_v44 = vpack.c.bf16 %v1170_v61, %v1169_v38 }
 0x5e5   :  { %6045 = vmatprep.subr.bf16.mxu0 %v6044_v12 }
 0x5e7   :  { %5025 = vmatmul.mubr.f32.gmra.mrb[40].mxu0 %v7777_v20 }
 0x5e8   :  { %5027 = vmatprep.mubr.f32.mxu0 %v7778_v40  ;;  %6047 = vmatpush3.bf16.msra.mxu0 %v6044_v12  ;;  %v6076_v12 = vpack.c.bf16 %v1172_v47, %v1171_v42 }
 0x5e9   :  { %6049 = vmatprep.subr.bf16.mxu0 %v6048_v43 }
 0x5eb   :  { %5028 = vmatmul.mubr.f32.gmra.mrb[42].mxu0 %v7779_v46 }
 0x5ec   :  { %5030 = vmatprep.mubr.f32.mxu0 %v7780_v17  ;;  %6051 = vmatpush3.bf16.msra.mxu0 %v6048_v43  ;;  %v6080_v43 = vpack.c.bf16 %v1174_v53, %v1173_v26 }
 0x5ed   :  { %6053 = vmatprep.subr.bf16.mxu0 %v6052_v41 }
 0x5ef   :  { %5031 = vmatmul.mubr.f32.gmra.mrb[44].mxu0 %v7781_v51 }
 0x5f0   :  { %5033 = vmatprep.mubr.f32.mxu0 %v7782_v2  ;;  %6055 = vmatpush3.bf16.msra.mxu0 %v6052_v41  ;;  %v6084_v41 = vpack.c.bf16 %v1176_v36, %v1175_v35 }
 0x5f1   :  { %6057 = vmatprep.subr.bf16.mxu0 %v6056_v50 }
 0x5f3   :  { %5034 = vmatmul.mubr.f32.gmra.mrb[46].mxu0 %v7783_v55  ;;  %v7784_v55 = vmax.f32 %v7070_v14, 0.0  ;;  %v7792_v14 = vmax.f32 %v7118_v16, 0.0 }
 0x5f4   :  { %6059 = vmatpush3.bf16.msra.mxu0 %v6056_v50  ;;  %v6088_v50 = vpack.c.bf16 %v1178_v45, %v1177_v13 }
 0x5f5   :  { %6061 = vmatprep.subr.bf16.mxu0 %v6060_v1 }
 0x6aa   :  { %v5014_v52 = vpop.f32.mrb[32].mxu0 }
 0x6ab   :  { %v1717_v21 = vpop.f32.mrb[33].mxu0 }
 0x6ac   :  { %5068 = vmatprep.mubr.f32.mxu0 %v1717_v21 }
 0x6ad   :  { %5069 = vmatmul.mubr.f32.vlgmr.msra.gmra.mrb[48].mxu0 %v5014_v52 }
 0x6ae   :  { %v5017_v29 = vpop.f32.mrb[34].mxu0  ;;  %6063 = vmatpush3.bf16.msra.mxu0 %v6060_v1  ;;  %v7787_v1 = vmax.f32 %v7101_v48, 0.0  ;;  %v7250_v48 = vrot.slane %v7247_v63, %v2088_v58  ;;  %v2142_v58 = vld [vmem:[#allocation4 + $0x490] sm:$0xff] }
 0x6af   :  { %v1727_v25 = vpop.f32.mrb[35].mxu0  ;;  %6065 = vmatprep.subr.bf16.mxu0 %v6064_v24 }
 0x6b0   :  { %5071 = vmatprep.mubr.f32.mxu0 %v1727_v25 }
 0x6b1   :  { %5072 = vmatmul.mubr.f32.gmra.mrb[50].mxu0 %v5017_v29 }
 0x6b2   :  { %v5020_v15 = vpop.f32.mrb[36].mxu0  ;;  %6067 = vmatpush3.bf16.msra.mxu0 %v6064_v24 }
 0x6b3   :  { %v1737_v3 = vpop.f32.mrb[37].mxu0  ;;  %6069 = vmatprep.subr.bf16.mxu0 %v6068_v37 }
 0x6b4   :  { %5074 = vmatprep.mubr.f32.mxu0 %v1737_v3 }
 0x6b5   :  { %5075 = vmatmul.mubr.f32.gmra.mrb[52].mxu0 %v5020_v15 }
 0x6b6   :  { %v5023_v30 = vpop.f32.mrb[38].mxu0  ;;  %6071 = vmatpush3.bf16.msra.mxu0 %v6068_v37 }
 0x6b7   :  { %v1747_v31 = vpop.f32.mrb[39].mxu0  ;;  %6073 = vmatprep.subr.bf16.mxu0 %v6072_v44 }
 0x6b8   :  { %5077 = vmatprep.mubr.f32.mxu0 %v1747_v31 }
 0x6b9   :  { %5078 = vmatmul.mubr.f32.gmra.mrb[54].mxu0 %v5023_v30 }
 0x6ba   :  { %v5026_v54 = vpop.f32.mrb[40].mxu0  ;;  %6075 = vmatpush3.bf16.msra.mxu0 %v6072_v44 }
 0x6bb   :  { %v1757_v27 = vpop.f32.mrb[41].mxu0  ;;  %6077 = vmatprep.subr.bf16.mxu0 %v6076_v12 }
 0x6bc   :  { %5080 = vmatprep.mubr.f32.mxu0 %v1757_v27 }
 0x6bd   :  { %5081 = vmatmul.mubr.f32.gmra.mrb[56].mxu0 %v5026_v54 }
 0x6be   :  { %v5029_v20 = vpop.f32.mrb[42].mxu0  ;;  %6079 = vmatpush3.bf16.msra.mxu0 %v6076_v12 }
 0x6bf   :  { %v1767_v40 = vpop.f32.mrb[43].mxu0  ;;  %6081 = vmatprep.subr.bf16.mxu0 %v6080_v43 }
 0x6c0   :  { %5083 = vmatprep.mubr.f32.mxu0 %v1767_v40 }
 0x6c1   :  { %5084 = vmatmul.mubr.f32.gmra.mrb[58].mxu0 %v5029_v20 }
 0x6c2   :  { %v5032_v46 = vpop.f32.mrb[44].mxu0  ;;  %6083 = vmatpush3.bf16.msra.mxu0 %v6080_v43 }
 0x6c3   :  { %v1777_v17 = vpop.f32.mrb[45].mxu0  ;;  %6085 = vmatprep.subr.bf16.mxu0 %v6084_v41 }
 0x6c4   :  { %5086 = vmatprep.mubr.f32.mxu0 %v1777_v17 }
 0x6c5   :  { %5087 = vmatmul.mubr.f32.gmra.mrb[60].mxu0 %v5032_v46 }
 0x6c6   :  { %v5035_v51 = vpop.f32.mrb[46].mxu0  ;;  %6087 = vmatpush3.bf16.msra.mxu0 %v6084_v41 }
 0x6c7   :  { %v1787_v2 = vpop.f32.mrb[47].mxu0  ;;  %6089 = vmatprep.subr.bf16.mxu0 %v6088_v50 }
 0x6c8   :  { %5089 = vmatprep.mubr.f32.mxu0 %v1787_v2 }
 0x6c9   :  { %5090 = vmatmul.mubr.f32.gmra.mrb[62].mxu0 %v5035_v51 }
 0x6ca   :  { %6091 = vmatpush3.bf16.msra.mxu0 %v6088_v50  ;;  %5124 = vmatprep.mubr.f32.mxu0 %v1112_v11  ;;  %v7791_v11 = vmax.f32 %v7125_v49, 0.0 }
 0x6cd   :  { %5125 = vmatmul.mubr.f32.vlgmr.msra.gmra.mrb[48].mxu0 %v1113_v10  ;;  %v7790_v10 = vmax.f32 %v7106_v39, 0.0 }
 0x6ce   :  { %5127 = vmatprep.mubr.f32.mxu0 %v1114_v22  ;;  %v7794_v22 = vmax.f32 %v7130_v18, 0.0 }
 0x6d1   :  { %5128 = vmatmul.mubr.f32.gmra.mrb[50].mxu0 %v7784_v55 }
 0x6d2   :  { %5130 = vmatprep.mubr.f32.mxu0 %v7785_v56 }
 0x6d5   :  { %5131 = vmatmul.mubr.f32.gmra.mrb[52].mxu0 %v7786_v60 }
 0x6d6   :  { %5133 = vmatprep.mubr.f32.mxu0 %v7787_v1 }
 0x6d9   :  { %5134 = vmatmul.mubr.f32.gmra.mrb[54].mxu0 %v7788_v7 }
 0x6da   :  { %5136 = vmatprep.mubr.f32.mxu0 %v7789_v4 }
 0x6dd   :  { %5137 = vmatmul.mubr.f32.gmra.mrb[56].mxu0 %v7790_v10 }
 0x6de   :  { %5139 = vmatprep.mubr.f32.mxu0 %v7791_v11  ;;  %v2140_v11 = vld [vmem:[#allocation4 + $0x480] sm:$0xff] }
 0x6e1   :  { %5140 = vmatmul.mubr.f32.gmra.mrb[58].mxu0 %v7792_v14  ;;  %v2141_v14 = vld [vmem:[#allocation4 + $0x488] sm:$0xff] }
 0x6e2   :  { %5142 = vmatprep.mubr.f32.mxu0 %v7793_v19 }
 0x6e5   :  { %5143 = vmatmul.mubr.f32.gmra.mrb[60].mxu0 %v7794_v22 }
 0x6e6   :  { %5145 = vmatprep.mubr.f32.mxu0 %v1126_v33 }
 0x6e9   :  { %5146 = vmatmul.mubr.f32.gmra.mrb[62].mxu0 %v1127_v62 }
 0x6ea   :  { %5348 = vmatprep.mubr.f32.mxu0 %v6529_v32  ;;  %v6124_v32 = vpack.c.bf16 %v2141_v14, %v2140_v11  ;;  %v7399_v11 = vld [vmem:[%s7712_s2 + $0x48] sm:$0xff]  ;;  %v7405_v14 = vld [vmem:[%s7712_s2 + $0x50] sm:$0xff] }
 0x7a0   :  { %v5126_v39 = vpop.f32.mrb[48].mxu0 }
 0x7a1   :  { %v7253_v0 = vadd.f32 %v5126_v39, %v7250_v48  ;;  %v2007_v33 = vpop.f32.mrb[49].mxu0  ;;  %v2143_v39 = vld [vmem:[#allocation4 + $0x498] sm:$0xff] }
 0x7a2   :  { %v7256_v6 = vadd.f32 %v7250_v48, %v2007_v33  ;;  %v2144_v33 = vld [vmem:[#allocation4 + $0x4a0] sm:$0xff] }
 0x7a3   :  { %v2107_v16 = vmax.f32 %v7253_v0, 0.0 }
 0x7a4   :  { %v2106_v49 = vmax.f32 %v7256_v6, 0.0  ;;  %v5129_v9 = vpop.f32.mrb[50].mxu0 }
 0x7a5   :  { %v7261_v18 = vadd.f32 %v5129_v9, %v7250_v48  ;;  %v2017_v59 = vpop.f32.mrb[51].mxu0  ;;  %v2145_v9 = vld [vmem:[#allocation4 + $0x4a8] sm:$0xff] }
 0x7a6   :  { %v6092_v62 = vpack.c.bf16 %v2107_v16, %v2106_v49  ;;  %v7268_v5 = vadd.f32 %v7250_v48, %v2017_v59  ;;  %v7351_v59 = vld [vmem:[%s7712_s2 + $0x8] sm:$0xff] }
 0x7a7   :  { %v2109_v8 = vmax.f32 %v7261_v18, 0.0  ;;  %v3082_v18 = vsub.s32 5, %v6986_v34 }
 0x7a8   :  { %v2108_v52 = vmax.f32 %v7268_v5, 0.0  ;;  %v5132_v21 = vpop.f32.mrb[52].mxu0  ;;  %6093 = vmatprep.subr.bf16.mxu1 %v6092_v62 }
 0x7a9   :  { %v7273_v24 = vadd.f32 %v5132_v21, %v7250_v48  ;;  %v2027_v23 = vpop.f32.mrb[53].mxu0  ;;  %6095 = vmatpush3.bf16.msra.mxu1 %v6092_v62  ;;  %v7357_v62 = vld [vmem:[%s7712_s2 + $0x10] sm:$0xff]  ;;  %v6132_v21 = vpack.c.bf16 %v2145_v9, %v2144_v33  ;;  %v2123_v9 = vld [vmem:[#allocation4 + $0x400] sm:$0xff]  ;;  %v7523_v5 = vrot.slane %v7247_v63, %v3082_v18 }
 0x7aa   :  { %v6096_v28 = vpack.c.bf16 %v2109_v8, %v2108_v52  ;;  %v7280_v29 = vadd.f32 %v7250_v48, %v2027_v23  ;;  %v2146_v23 = vld [vmem:[#allocation4 + $0x4b0] sm:$0xff] }
 0x7ab   :  { %v2111_v25 = vmax.f32 %v7273_v24, 0.0 }
 0x7ac   :  { %v2110_v37 = vmax.f32 %v7280_v29, 0.0  ;;  %v5135_v38 = vpop.f32.mrb[54].mxu0  ;;  %6097 = vmatprep.subr.bf16.mxu1 %v6096_v28 }
 0x7ad   :  { %v7285_v61 = vadd.f32 %v5135_v38, %v7250_v48  ;;  %v2037_v15 = vpop.f32.mrb[55].mxu0  ;;  %6099 = vmatpush3.bf16.msra.mxu1 %v6096_v28  ;;  %v2147_v28 = vld [vmem:[#allocation4 + $0x4b8] sm:$0xff] }
 0x7ae   :  { %v6100_v3 = vpack.c.bf16 %v2111_v25, %v2110_v37  ;;  %v7292_v44 = vadd.f32 %v7250_v48, %v2037_v15  ;;  %v7363_v38 = vld [vmem:[%s7712_s2 + $0x18] sm:$0xff]  ;;  %v7369_v15 = vld [vmem:[%s7712_s2 + $0x20] sm:$0xff] }
 0x7af   :  { %v2113_v42 = vmax.f32 %v7285_v61, 0.0 }
 0x7b0   :  { %v2112_v47 = vmax.f32 %v7292_v44, 0.0  ;;  %v5138_v30 = vpop.f32.mrb[56].mxu0  ;;  %6101 = vmatprep.subr.bf16.mxu1 %v6100_v3 }
 0x7b1   :  { %v7297_v31 = vadd.f32 %v5138_v30, %v7250_v48  ;;  %v2047_v12 = vpop.f32.mrb[57].mxu0  ;;  %6103 = vmatpush3.bf16.msra.mxu1 %v6100_v3  ;;  %v6136_v3 = vpack.c.bf16 %v2147_v28, %v2146_v23  ;;  %v2148_v30 = vld [vmem:[#allocation4 + $0x4c0] sm:$0xff]  ;;  %v7423_v23 = vld [vmem:[%s7712_s2 + $0x68] sm:$0xff]  ;;  %v7429_v28 = vld [vmem:[%s7712_s2 + $0x70] sm:$0xff] }
 0x7b2   :  { %v6104_v26 = vpack.c.bf16 %v2113_v42, %v2112_v47  ;;  %v7304_v53 = vadd.f32 %v7250_v48, %v2047_v12  ;;  %v2149_v12 = vld [vmem:[#allocation4 + $0x4c8] sm:$0xff] }
 0x7b3   :  { %v2115_v54 = vmax.f32 %v7297_v31, 0.0 }
 0x7b4   :  { %v2114_v27 = vmax.f32 %v7304_v53, 0.0  ;;  %v5141_v43 = vpop.f32.mrb[58].mxu0  ;;  %6105 = vmatprep.subr.bf16.mxu1 %v6104_v26 }
 0x7b5   :  { %v7309_v35 = vadd.f32 %v5141_v43, %v7250_v48  ;;  %v2057_v36 = vpop.f32.mrb[59].mxu0  ;;  %6107 = vmatpush3.bf16.msra.mxu1 %v6104_v26  ;;  %v7375_v26 = vld [vmem:[%s7712_s2 + $0x28] sm:$0xff]  ;;  %v7381_v43 = vld [vmem:[%s7712_s2 + $0x30] sm:$0xff] }
 0x7b6   :  { %v6108_v20 = vpack.c.bf16 %v2115_v54, %v2114_v27  ;;  %v7316_v40 = vadd.f32 %v7250_v48, %v2057_v36  ;;  %v6140_v36 = vpack.c.bf16 %v2149_v12, %v2148_v30  ;;  %v2125_v30 = vld [vmem:[#allocation4 + $0x410] sm:$0xff]  ;;  %v2126_v12 = vld [vmem:[#allocation4 + $0x418] sm:$0xff] }
 0x7b7   :  { %v2117_v41 = vmax.f32 %v7309_v35, 0.0 }
 0x7b8   :  { %v2116_v13 = vmax.f32 %v7316_v40, 0.0  ;;  %v5144_v45 = vpop.f32.mrb[60].mxu0  ;;  %6109 = vmatprep.subr.bf16.mxu1 %v6108_v20 }
 0x7b9   :  { %v7321_v46 = vadd.f32 %v5144_v45, %v7250_v48  ;;  %v2067_v17 = vpop.f32.mrb[61].mxu0  ;;  %6111 = vmatpush3.bf16.msra.mxu1 %v6108_v20  ;;  %v2150_v20 = vld [vmem:[#allocation4 + $0x4d0] sm:$0xff]  ;;  %v2151_v45 = vld [vmem:[#allocation4 + $0x4d8] sm:$0xff] }
 0x7ba   :  { %v6112_v50 = vpack.c.bf16 %v2117_v41, %v2116_v13  ;;  %v7328_v51 = vadd.f32 %v7250_v48, %v2067_v17  ;;  %v7387_v17 = vld [vmem:[%s7712_s2 + $0x38] sm:$0xff] }
 0x7bb   :  { %v7748_v2 = vmax.f32 %v7321_v46, 0.0  ;;  %v7796_v6 = vmax.f32 %v7321_v46, 0.0 }
 0x7bc   :  { %v7749_v55 = vmax.f32 %v7328_v51, 0.0  ;;  %v5147_v56 = vpop.f32.mrb[62].mxu0  ;;  %6113 = vmatprep.subr.bf16.mxu1 %v6112_v50  ;;  %v7795_v0 = vmax.f32 %v7328_v51, 0.0 }
 0x7bd   :  { %v7333_v60 = vadd.f32 %v5147_v56, %v7250_v48  ;;  %v2077_v1 = vpop.f32.mrb[63].mxu0  ;;  %6115 = vmatpush3.bf16.msra.mxu1 %v6112_v50  ;;  %v7393_v50 = vld [vmem:[%s7712_s2 + $0x40] sm:$0xff]  ;;  %v6144_v56 = vpack.c.bf16 %v2151_v45, %v2150_v20  ;;  %v6160_v45 = vpack.c.bf16 %v2126_v12, %v2125_v30  ;;  %v2132_v12 = vld [vmem:[#allocation4 + $0x448] sm:$0xff] }
 0x7be   :  { %v6116_v7 = vpack.c.bf16 %v7748_v2, %v7749_v55  ;;  %v7340_v4 = vadd.f32 %v7250_v48, %v2077_v1  ;;  %v6128_v48 = vpack.c.bf16 %v2143_v39, %v2142_v58  ;;  %v2152_v1 = vld [vmem:[#allocation4 + $0x4e0] sm:$0xff]  ;;  %v2155_v58 = vld [vmem:[#allocation4 + $0x4f8] sm:$0xff] }
 0x7bf   :  { %v7746_v10 = vmax.f32 %v7333_v60, 0.0  ;;  %v7411_v39 = vld [vmem:[%s7712_s2 + $0x58] sm:$0xff]  ;;  %v6546_v20 = vld [vmem:[%s7711_s1] sm:$0xff] }
 0x7c0   :  { %v7747_v19 = vmax.f32 %v7340_v4, 0.0  ;;  %6117 = vmatprep.subr.bf16.mxu1 %v6116_v7  ;;  %v2131_v30 = vld [vmem:[#allocation4 + $0x440] sm:$0xff] }
 0x7c1   :  { %6119 = vmatpush3.bf16.msra.mxu1 %v6116_v7  ;;  %v2153_v7 = vld [vmem:[#allocation4 + $0x4e8] sm:$0xff] }
 0x7c2   :  { %v6120_v22 = vpack.c.bf16 %v7746_v10, %v7747_v19 }
 0x7c4   :  { %6121 = vmatprep.subr.bf16.mxu1 %v6120_v22 }
 0x7c5   :  { %6123 = vmatpush3.bf16.msra.mxu1 %v6120_v22  ;;  %v6148_v22 = vpack.c.bf16 %v2153_v7, %v2152_v1  ;;  %v2128_v1 = vld [vmem:[#allocation4 + $0x428] sm:$0xff] }
 0x7c6   :  { %6125 = vmatprep.subr.bf16.mxu1 %v6124_v32  ;;  %v6547_v7 = vld [vmem:[%s7711_s1 + $0x8] sm:$0xff] }
 0x7c8   :  { %5181 = vmatmul.mubr.f32.vlgmr.msra.gmra.mrb[64].mxu1 %v7351_v59 }
 0x7c9   :  { %5183 = vmatprep.mubr.f32.mxu1 %v7357_v62  ;;  %6127 = vmatpush3.bf16.msra.mxu1 %v6124_v32  ;;  %v2154_v32 = vld [vmem:[#allocation4 + $0x4f0] sm:$0xff] }
 0x7ca   :  { %6129 = vmatprep.subr.bf16.mxu1 %v6128_v48  ;;  %v6152_v33 = vpack.c.bf16 %v2155_v58, %v2154_v32  ;;  %v2129_v58 = vld [vmem:[#allocation4 + $0x430] sm:$0xff] }
 0x7cc   :  { %5184 = vmatmul.mubr.f32.gmra.mrb[66].mxu1 %v7363_v38 }
 0x7cd   :  { %5186 = vmatprep.mubr.f32.mxu1 %v7369_v15  ;;  %6131 = vmatpush3.bf16.msra.mxu1 %v6128_v48  ;;  %v7417_v48 = vld [vmem:[%s7712_s2 + $0x60] sm:$0xff] }
 0x7ce   :  { %6133 = vmatprep.subr.bf16.mxu1 %v6132_v21 }
 0x7d0   :  { %5187 = vmatmul.mubr.f32.gmra.mrb[68].mxu1 %v7375_v26 }
 0x7d1   :  { %5189 = vmatprep.mubr.f32.mxu1 %v7381_v43  ;;  %6135 = vmatpush3.bf16.msra.mxu1 %v6132_v21  ;;  %v2124_v21 = vld [vmem:[#allocation4 + $0x408] sm:$0xff] }
 0x7d2   :  { %6137 = vmatprep.subr.bf16.mxu1 %v6136_v3 }
 0x7d4   :  { %5190 = vmatmul.mubr.f32.gmra.mrb[70].mxu1 %v7387_v17 }
 0x7d5   :  { %5192 = vmatprep.mubr.f32.mxu1 %v7393_v50  ;;  %6139 = vmatpush3.bf16.msra.mxu1 %v6136_v3  ;;  %v6156_v3 = vpack.c.bf16 %v2124_v21, %v2123_v9  ;;  %v6549_v9 = vld [vmem:[%s7711_s1 + $0x18] sm:$0xff]  ;;  %v6550_v21 = vld [vmem:[%s7711_s1 + $0x20] sm:$0xff] }
 0x7d6   :  { %6141 = vmatprep.subr.bf16.mxu1 %v6140_v36 }
 0x7d8   :  { %5193 = vmatmul.mubr.f32.gmra.mrb[72].mxu1 %v7399_v11 }
 0x7d9   :  { %5195 = vmatprep.mubr.f32.mxu1 %v7405_v14  ;;  %6143 = vmatpush3.bf16.msra.mxu1 %v6140_v36  ;;  %v7435_v36 = vld [vmem:[%s7712_s2 + $0x78] sm:$0xff] }
 0x7da   :  { %6145 = vmatprep.subr.bf16.mxu1 %v6144_v56 }
 0x7dc   :  { %5196 = vmatmul.mubr.f32.gmra.mrb[74].mxu1 %v7411_v39 }
 0x7dd   :  { %5198 = vmatprep.mubr.f32.mxu1 %v7417_v48  ;;  %6147 = vmatpush3.bf16.msra.mxu1 %v6144_v56  ;;  %v2127_v56 = vld [vmem:[#allocation4 + $0x420] sm:$0xff] }
 0x7de   :  { %6149 = vmatprep.subr.bf16.mxu1 %v6148_v22  ;;  %v6164_v32 = vpack.c.bf16 %v2128_v1, %v2127_v56  ;;  %v6552_v56 = vld [vmem:[%s7711_s1 + $0x30] sm:$0xff] }
 0x7df   :  { %v2133_v1 = vld [vmem:[#allocation4 + $0x450] sm:$0xff] }
 0x7e0   :  { %5199 = vmatmul.mubr.f32.gmra.mrb[76].mxu1 %v7423_v23 }
 0x7e1   :  { %5201 = vmatprep.mubr.f32.mxu1 %v7429_v28  ;;  %6151 = vmatpush3.bf16.msra.mxu1 %v6148_v22  ;;  %v6548_v22 = vld [vmem:[%s7711_s1 + $0x10] sm:$0xff] }
 0x7e2   :  { %6153 = vmatprep.subr.bf16.mxu1 %v6152_v33 }
 0x7e4   :  { %5202 = vmatmul.mubr.f32.gmra.mrb[78].mxu1 %v7435_v36 }
 0x7e5   :  { %6155 = vmatpush3.bf16.msra.mxu1 %v6152_v33  ;;  %5236 = vmatprep.mubr.f32.mxu1 %v6546_v20  ;;  %v2130_v33 = vld [vmem:[#allocation4 + $0x438] sm:$0xff]  ;;  %v6551_v20 = vld [vmem:[%s7711_s1 + $0x28] sm:$0xff] }
 0x7e6   :  { %6157 = vmatprep.subr.bf16.mxu1 %v6156_v3 }
 0x7e8   :  { %5237 = vmatmul.mubr.f32.vlgmr.msra.gmra.mrb[80].mxu1 %v6547_v7  ;;  %v2134_v7 = vld [vmem:[#allocation4 + $0x458] sm:$0xff] }
 0x7e9   :  { %6159 = vmatpush3.bf16.msra.mxu1 %v6156_v3  ;;  %5239 = vmatprep.mubr.f32.mxu1 %v6548_v22  ;;  %v6168_v3 = vpack.c.bf16 %v2130_v33, %v2129_v58  ;;  %v6553_v22 = vld [vmem:[%s7711_s1 + $0x38] sm:$0xff]  ;;  %v6554_v58 = vld [vmem:[%s7711_s1 + $0x40] sm:$0xff] }
 0x7ea   :  { %6161 = vmatprep.subr.bf16.mxu1 %v6160_v45  ;;  %v2135_v33 = vld [vmem:[#allocation4 + $0x460] sm:$0xff] }
 0x7ec   :  { %5240 = vmatmul.mubr.f32.gmra.mrb[82].mxu1 %v6549_v9  ;;  %v2136_v9 = vld [vmem:[#allocation4 + $0x468] sm:$0xff] }
 0x7ed   :  { %6163 = vmatpush3.bf16.msra.mxu1 %v6160_v45  ;;  %5242 = vmatprep.mubr.f32.mxu1 %v6550_v21  ;;  %v6172_v45 = vpack.c.bf16 %v2132_v12, %v2131_v30  ;;  %v6555_v21 = vld [vmem:[%s7711_s1 + $0x48] sm:$0xff]  ;;  %v6556_v30 = vld [vmem:[%s7711_s1 + $0x50] sm:$0xff] }
 0x7ee   :  { %6165 = vmatprep.subr.bf16.mxu1 %v6164_v32  ;;  %v2137_v12 = vld [vmem:[#allocation4 + $0x470] sm:$0xff] }
 0x7f0   :  { %5243 = vmatmul.mubr.f32.gmra.mrb[84].mxu1 %v6551_v20  ;;  %v2138_v20 = vld [vmem:[#allocation4 + $0x478] sm:$0xff] }
 0x7f1   :  { %6167 = vmatpush3.bf16.msra.mxu1 %v6164_v32  ;;  %5245 = vmatprep.mubr.f32.mxu1 %v6552_v56  ;;  %v6176_v32 = vpack.c.bf16 %v2134_v7, %v2133_v1  ;;  %v6557_v56 = vld [vmem:[%s7711_s1 + $0x58] sm:$0xff]  ;;  %v6558_v1 = vld [vmem:[%s7711_s1 + $0x60] sm:$0xff]  ;;  %v6559_v7 = vld [vmem:[%s7711_s1 + $0x68] sm:$0xff] }
 0x7f2   :  { %6169 = vmatprep.subr.bf16.mxu1 %v6168_v3 }
 0x7f4   :  { %5246 = vmatmul.mubr.f32.gmra.mrb[86].mxu1 %v6553_v22  ;;  %v6560_v22 = vld [vmem:[%s7711_s1 + $0x70] sm:$0xff] }
 0x7f5   :  { %6171 = vmatpush3.bf16.msra.mxu1 %v6168_v3  ;;  %5248 = vmatprep.mubr.f32.mxu1 %v6554_v58  ;;  %v6180_v3 = vpack.c.bf16 %v2136_v9, %v2135_v33  ;;  %v6561_v58 = vld [vmem:[%s7711_s1 + $0x78] sm:$0xff] }
 0x7f6   :  { %6173 = vmatprep.subr.bf16.mxu1 %v6172_v45 }
 0x7f8   :  { %5249 = vmatmul.mubr.f32.gmra.mrb[88].mxu1 %v6555_v21 }
 0x7f9   :  { %6175 = vmatpush3.bf16.msra.mxu1 %v6172_v45  ;;  %5251 = vmatprep.mubr.f32.mxu1 %v6556_v30  ;;  %v6184_v45 = vpack.c.bf16 %v2138_v20, %v2137_v12 }
 0x7fa   :  { %6177 = vmatprep.subr.bf16.mxu1 %v6176_v32 }
 0x7fc   :  { %5252 = vmatmul.mubr.f32.gmra.mrb[90].mxu1 %v6557_v56 }
 0x7fd   :  { %6179 = vmatpush3.bf16.msra.mxu1 %v6176_v32  ;;  %5254 = vmatprep.mubr.f32.mxu1 %v6558_v1 }
 0x7fe   :  { %6181 = vmatprep.subr.bf16.mxu1 %v6180_v3 }
 0x800   :  { %5255 = vmatmul.mubr.f32.gmra.mrb[92].mxu1 %v6559_v7 }
 0x801   :  { %6183 = vmatpush3.bf16.msra.mxu1 %v6180_v3  ;;  %5257 = vmatprep.mubr.f32.mxu1 %v6560_v22 }
 0x802   :  { %6185 = vmatprep.subr.bf16.mxu1 %v6184_v45 }
 0x804   :  { %5258 = vmatmul.mubr.f32.gmra.mrb[94].mxu1 %v6561_v58 }
 0x805   :  { %6187 = vmatpush3.bf16.msra.mxu1 %v6184_v45 }
 0x89b   :  { %v5182_v32 = vpop.f32.mrb[64].mxu1 }
 0x89c   :  { %v2256_v33 = vpop.f32.mrb[65].mxu1 }
 0x89d   :  { %5292 = vmatprep.mubr.f32.mxu1 %v2256_v33 }
 0x89e   :  { %5293 = vmatmul.mubr.f32.vlgmr.msra.gmra.mrb[80].mxu1 %v5182_v32 }
 0x89f   :  { %v5185_v9 = vpop.f32.mrb[66].mxu1 }
 0x8a0   :  { %v2266_v21 = vpop.f32.mrb[67].mxu1 }
 0x8a1   :  { %5295 = vmatprep.mubr.f32.mxu1 %v2266_v21 }
 0x8a2   :  { %5296 = vmatmul.mubr.f32.gmra.mrb[82].mxu1 %v5185_v9  ;;  %v2627_v9 = vsub.s32 4, %v6986_v34 }
 0x8a3   :  { %v5188_v30 = vpop.f32.mrb[68].mxu1 }
 0x8a4   :  { %v2276_v3 = vpop.f32.mrb[69].mxu1  ;;  %v2628_v21 = vrot.slane %v7247_v63, %v2627_v9 }
 0x8a5   :  { %5298 = vmatprep.mubr.f32.mxu1 %v2276_v3 }
 0x8a6   :  { %5299 = vmatmul.mubr.f32.gmra.mrb[84].mxu1 %v5188_v30 }
 0x8a7   :  { %v5191_v12 = vpop.f32.mrb[70].mxu1 }
 0x8a8   :  { %v2286_v20 = vpop.f32.mrb[71].mxu1 }
 0x8a9   :  { %5301 = vmatprep.mubr.f32.mxu1 %v2286_v20 }
 0x8aa   :  { %5302 = vmatmul.mubr.f32.gmra.mrb[86].mxu1 %v5191_v12 }
 0x8ab   :  { %v5194_v56 = vpop.f32.mrb[72].mxu1 }
 0x8ac   :  { %v2296_v1 = vpop.f32.mrb[73].mxu1 }
 0x8ad   :  { %5304 = vmatprep.mubr.f32.mxu1 %v2296_v1 }
 0x8ae   :  { %5305 = vmatmul.mubr.f32.gmra.mrb[88].mxu1 %v5194_v56 }
 0x8af   :  { %v5197_v45 = vpop.f32.mrb[74].mxu1 }
 0x8b0   :  { %v2306_v7 = vpop.f32.mrb[75].mxu1 }
 0x8b1   :  { %5307 = vmatprep.mubr.f32.mxu1 %v2306_v7 }
 0x8b2   :  { %5308 = vmatmul.mubr.f32.gmra.mrb[90].mxu1 %v5197_v45 }
 0x8b3   :  { %v5200_v22 = vpop.f32.mrb[76].mxu1 }
 0x8b4   :  { %v2316_v58 = vpop.f32.mrb[77].mxu1 }
 0x8b5   :  { %5310 = vmatprep.mubr.f32.mxu1 %v2316_v58 }
 0x8b6   :  { %5311 = vmatmul.mubr.f32.gmra.mrb[92].mxu1 %v5200_v22 }
 0x8b7   :  { %v5203_v32 = vpop.f32.mrb[78].mxu1 }
 0x8b8   :  { %v2326_v33 = vpop.f32.mrb[79].mxu1 }
 0x8b9   :  { %5313 = vmatprep.mubr.f32.mxu1 %v2326_v33 }
 0x8ba   :  { %5314 = vmatmul.mubr.f32.gmra.mrb[94].mxu1 %v5203_v32 }
 0x8bb   :  { %5516 = vmatprep.mubr.f32.mxu1 %v7191_v57 }
 0x971   :  { %v5294_v30 = vpop.f32.mrb[80].mxu1 }
 0x972   :  { %v2630_v3 = vadd.f32 %v5294_v30, %v2628_v21  ;;  %v2546_v12 = vpop.f32.mrb[81].mxu1 }
 0x973   :  { %v2629_v20 = vadd.f32 %v2628_v21, %v2546_v12 }
 0x975   :  { %v6188_v56 = vpack.c.bf16 %v2630_v3, %v2629_v20  ;;  %v5297_v1 = vpop.f32.mrb[82].mxu1 }
 0x976   :  { %v2632_v45 = vadd.f32 %v5297_v1, %v2628_v21  ;;  %v2556_v7 = vpop.f32.mrb[83].mxu1 }
 0x977   :  { %v2631_v58 = vadd.f32 %v2628_v21, %v2556_v7  ;;  %6189 = vmatprep.subr.bf16.mxu0 %v6188_v56 }
 0x978   :  { %6191 = vmatpush3.bf16.msra.mxu0 %v6188_v56 }
 0x979   :  { %v6192_v22 = vpack.c.bf16 %v2632_v45, %v2631_v58  ;;  %v5300_v33 = vpop.f32.mrb[84].mxu1 }
 0x97a   :  { %v2634_v32 = vadd.f32 %v5300_v33, %v2628_v21  ;;  %v2566_v10 = vpop.f32.mrb[85].mxu1 }
 0x97b   :  { %v2633_v57 = vadd.f32 %v2628_v21, %v2566_v10  ;;  %6193 = vmatprep.subr.bf16.mxu0 %v6192_v22 }
 0x97c   :  { %6195 = vmatpush3.bf16.msra.mxu0 %v6192_v22 }
 0x97d   :  { %v6196_v19 = vpack.c.bf16 %v2634_v32, %v2633_v57  ;;  %v5303_v9 = vpop.f32.mrb[86].mxu1 }
 0x97e   :  { %v2636_v2 = vadd.f32 %v5303_v9, %v2628_v21  ;;  %v2576_v30 = vpop.f32.mrb[87].mxu1 }
 0x97f   :  { %v2635_v55 = vadd.f32 %v2628_v21, %v2576_v30  ;;  %6197 = vmatprep.subr.bf16.mxu0 %v6196_v19 }
 0x980   :  { %6199 = vmatpush3.bf16.msra.mxu0 %v6196_v19 }
 0x981   :  { %v6200_v3 = vpack.c.bf16 %v2636_v2, %v2635_v55  ;;  %v5306_v12 = vpop.f32.mrb[88].mxu1 }
 0x982   :  { %v2638_v20 = vadd.f32 %v5306_v12, %v2628_v21  ;;  %v2586_v1 = vpop.f32.mrb[89].mxu1 }
 0x983   :  { %v2637_v7 = vadd.f32 %v2628_v21, %v2586_v1  ;;  %6201 = vmatprep.subr.bf16.mxu0 %v6200_v3  ;;  %v2174_v1 = vld [vmem:[#allocation4 + $0x580] sm:$0xff] }
 0x984   :  { %6203 = vmatpush3.bf16.msra.mxu0 %v6200_v3  ;;  %v2175_v3 = vld [vmem:[#allocation4 + $0x588] sm:$0xff] }
 0x985   :  { %v6204_v56 = vpack.c.bf16 %v2638_v20, %v2637_v7  ;;  %v5309_v45 = vpop.f32.mrb[90].mxu1 }
 0x986   :  { %v2640_v58 = vadd.f32 %v5309_v45, %v2628_v21  ;;  %v2596_v10 = vpop.f32.mrb[91].mxu1  ;;  %v6220_v45 = vpack.c.bf16 %v2175_v3, %v2174_v1  ;;  %v2183_v1 = vld [vmem:[#allocation4 + $0x5c8] sm:$0xff] }
 0x987   :  { %v2639_v33 = vadd.f32 %v2628_v21, %v2596_v10  ;;  %6205 = vmatprep.subr.bf16.mxu0 %v6204_v56  ;;  %v2176_v10 = vld [vmem:[#allocation4 + $0x590] sm:$0xff]  ;;  %v6566_v3 = vld [vmem:[#allocation2 + $0x28] sm:$0xff] }
 0x988   :  { %6207 = vmatpush3.bf16.msra.mxu0 %v6204_v56  ;;  %v2177_v56 = vld [vmem:[#allocation4 + $0x598] sm:$0xff] }
 0x989   :  { %v6208_v22 = vpack.c.bf16 %v2640_v58, %v2639_v33  ;;  %v5312_v32 = vpop.f32.mrb[92].mxu1  ;;  %v6224_v58 = vpack.c.bf16 %v2177_v56, %v2176_v10  ;;  %v2178_v33 = vld [vmem:[#allocation4 + $0x5a0] sm:$0xff]  ;;  %v2185_v10 = vld [vmem:[#allocation4 + $0x5d8] sm:$0xff] }
 0x98a   :  { %v2642_v57 = vadd.f32 %v5312_v32, %v2628_v21  ;;  %v2606_v9 = vpop.f32.mrb[93].mxu1  ;;  %v2179_v32 = vld [vmem:[#allocation4 + $0x5a8] sm:$0xff]  ;;  %v6568_v56 = vld [vmem:[#allocation2 + $0x38] sm:$0xff] }
 0x98b   :  { %v2641_v30 = vadd.f32 %v2628_v21, %v2606_v9  ;;  %6209 = vmatprep.subr.bf16.mxu0 %v6208_v22  ;;  %v6228_v9 = vpack.c.bf16 %v2179_v32, %v2178_v33  ;;  %v6569_v33 = vld [vmem:[#allocation2 + $0x40] sm:$0xff] }
 0x98c   :  { %6211 = vmatpush3.bf16.msra.mxu0 %v6208_v22  ;;  %v6562_v22 = vld [vmem:[#allocation2 + $0x8] sm:$0xff]  ;;  %v2186_v32 = vld [vmem:[#allocation4 + $0x5e0] sm:$0xff] }
 0x98d   :  { %v6212_v2 = vpack.c.bf16 %v2642_v57, %v2641_v30  ;;  %v5315_v55 = vpop.f32.mrb[94].mxu1  ;;  %v6563_v57 = vld [vmem:[#allocation2 + $0x10] sm:$0xff]  ;;  %v2181_v30 = vld [vmem:[#allocation4 + $0x5b8] sm:$0xff] }
 0x98e   :  { %v2644_v19 = vadd.f32 %v5315_v55, %v2628_v21  ;;  %v2616_v12 = vpop.f32.mrb[95].mxu1  ;;  %v6565_v55 = vld [vmem:[#allocation2 + $0x20] sm:$0xff] }
 0x98f   :  { %v2643_v20 = vadd.f32 %v2628_v21, %v2616_v12  ;;  %6213 = vmatprep.subr.bf16.mxu0 %v6212_v2  ;;  %v2180_v21 = vld [vmem:[#allocation4 + $0x5b0] sm:$0xff]  ;;  %v2182_v12 = vld [vmem:[#allocation4 + $0x5c0] sm:$0xff] }
 0x990   :  { %6215 = vmatpush3.bf16.msra.mxu0 %v6212_v2  ;;  %v6564_v2 = vld [vmem:[#allocation2 + $0x18] sm:$0xff] }
 0x991   :  { %v6216_v7 = vpack.c.bf16 %v2644_v19, %v2643_v20  ;;  %v6232_v19 = vpack.c.bf16 %v2181_v30, %v2180_v21  ;;  %v6567_v20 = vld [vmem:[#allocation2 + $0x30] sm:$0xff] }
 0x992   :  { %v6571_v21 = vld [vmem:[#allocation2 + $0x50] sm:$0xff] }
 0x993   :  { %6217 = vmatprep.subr.bf16.mxu0 %v6216_v7  ;;  %v2188_v30 = vld [vmem:[#allocation4 + $0x5f0] sm:$0xff] }
 0x994   :  { %6219 = vmatpush3.bf16.msra.mxu0 %v6216_v7  ;;  %v6236_v7 = vpack.c.bf16 %v2183_v1, %v2182_v12  ;;  %v6573_v12 = vld [vmem:[#allocation2 + $0x60] sm:$0xff]  ;;  %v6574_v1 = vld [vmem:[#allocation2 + $0x68] sm:$0xff] }
 0x995   :  { %6221 = vmatprep.subr.bf16.mxu0 %v6220_v45 }
 0x997   :  { %5349 = vmatmul.mubr.f32.vlgmr.msra.gmra.mrb[64].mxu0 %v6562_v22  ;;  %v2187_v22 = vld [vmem:[#allocation4 + $0x5e8] sm:$0xff] }
 0x998   :  { %5351 = vmatprep.mubr.f32.mxu0 %v6563_v57  ;;  %6223 = vmatpush3.bf16.msra.mxu0 %v6220_v45  ;;  %v2184_v45 = vld [vmem:[#allocation4 + $0x5d0] sm:$0xff]  ;;  %v6570_v57 = vld [vmem:[#allocation2 + $0x48] sm:$0xff] }
 0x999   :  { %6225 = vmatprep.subr.bf16.mxu0 %v6224_v58 }
 0x99b   :  { %5352 = vmatmul.mubr.f32.gmra.mrb[66].mxu0 %v6564_v2  ;;  %v2189_v2 = vld [vmem:[#allocation4 + $0x5f8] sm:$0xff] }
 0x99c   :  { %5354 = vmatprep.mubr.f32.mxu0 %v6565_v55  ;;  %6227 = vmatpush3.bf16.msra.mxu0 %v6224_v58  ;;  %v6240_v58 = vpack.c.bf16 %v2185_v10, %v2184_v45  ;;  %v6572_v55 = vld [vmem:[#allocation2 + $0x58] sm:$0xff]  ;;  %v2158_v45 = vld [vmem:[#allocation4 + $0x508] sm:$0xff] }
 0x99d   :  { %6229 = vmatprep.subr.bf16.mxu0 %v6228_v9 }
 0x99f   :  { %5355 = vmatmul.mubr.f32.gmra.mrb[68].mxu0 %v6566_v3  ;;  %v6575_v3 = vld [vmem:[#allocation2 + $0x70] sm:$0xff] }
 0x9a0   :  { %5357 = vmatprep.mubr.f32.mxu0 %v6567_v20  ;;  %6231 = vmatpush3.bf16.msra.mxu0 %v6228_v9  ;;  %v6244_v9 = vpack.c.bf16 %v2187_v22, %v2186_v32  ;;  %v6576_v20 = vld [vmem:[#allocation2 + $0x78] sm:$0xff] }
 0x9a1   :  { %6233 = vmatprep.subr.bf16.mxu0 %v6232_v19 }
 0x9a3   :  { %5358 = vmatmul.mubr.f32.gmra.mrb[70].mxu0 %v6568_v56  ;;  %v2159_v56 = vld [vmem:[#allocation4 + $0x510] sm:$0xff] }
 0x9a4   :  { %5360 = vmatprep.mubr.f32.mxu0 %v6569_v33  ;;  %6235 = vmatpush3.bf16.msra.mxu0 %v6232_v19  ;;  %v6248_v19 = vpack.c.bf16 %v2189_v2, %v2188_v30  ;;  %v2160_v33 = vld [vmem:[#allocation4 + $0x518] sm:$0xff] }
 0x9a5   :  { %6237 = vmatprep.subr.bf16.mxu0 %v6236_v7 }
 0x9a7   :  { %5361 = vmatmul.mubr.f32.gmra.mrb[72].mxu0 %v6570_v57  ;;  %v2161_v57 = vld [vmem:[#allocation4 + $0x520] sm:$0xff] }
 0x9a8   :  { %5363 = vmatprep.mubr.f32.mxu0 %v6571_v21  ;;  %6239 = vmatpush3.bf16.msra.mxu0 %v6236_v7  ;;  %v2157_v7 = vld [vmem:[#allocation4 + $0x500] sm:$0xff]  ;;  %v2162_v21 = vld [vmem:[#allocation4 + $0x528] sm:$0xff] }
 0x9a9   :  { %6241 = vmatprep.subr.bf16.mxu0 %v6240_v58  ;;  %v6252_v10 = vpack.c.bf16 %v2158_v45, %v2157_v7  ;;  %v6260_v2 = vpack.c.bf16 %v2162_v21, %v2161_v57  ;;  %v2166_v7 = vld [vmem:[#allocation4 + $0x548] sm:$0xff]  ;;  %v2169_v21 = vld [vmem:[#allocation4 + $0x560] sm:$0xff] }
 0x9ab   :  { %5364 = vmatmul.mubr.f32.gmra.mrb[74].mxu0 %v6572_v55  ;;  %v2163_v55 = vld [vmem:[#allocation4 + $0x530] sm:$0xff] }
 0x9ac   :  { %5366 = vmatprep.mubr.f32.mxu0 %v6573_v12  ;;  %6243 = vmatpush3.bf16.msra.mxu0 %v6240_v58  ;;  %v6256_v58 = vpack.c.bf16 %v2160_v33, %v2159_v56  ;;  %v2164_v12 = vld [vmem:[#allocation4 + $0x538] sm:$0xff]  ;;  %v2167_v33 = vld [vmem:[#allocation4 + $0x550] sm:$0xff] }
 0x9ad   :  { %6245 = vmatprep.subr.bf16.mxu0 %v6244_v9 }
 0x9af   :  { %5367 = vmatmul.mubr.f32.gmra.mrb[76].mxu0 %v6574_v1 }
 0x9b0   :  { %5369 = vmatprep.mubr.f32.mxu0 %v6575_v3  ;;  %6247 = vmatpush3.bf16.msra.mxu0 %v6244_v9  ;;  %v6264_v3 = vpack.c.bf16 %v2164_v12, %v2163_v55  ;;  %v2171_v12 = vld [vmem:[#allocation4 + $0x570] sm:$0xff] }
 0x9b1   :  { %6249 = vmatprep.subr.bf16.mxu0 %v6248_v19 }
 0x9b3   :  { %5370 = vmatmul.mubr.f32.gmra.mrb[78].mxu0 %v6576_v20  ;;  %v2165_v20 = vld [vmem:[#allocation4 + $0x540] sm:$0xff] }
 0x9b4   :  { %6251 = vmatpush3.bf16.msra.mxu0 %v6248_v19 }
 0x9b5   :  { %6253 = vmatprep.subr.bf16.mxu0 %v6252_v10 }
 0xa6a   :  { %v5350_v32 = vpop.f32.mrb[64].mxu0 }
 0xa6b   :  { %v2711_v22 = vpop.f32.mrb[65].mxu0 }
 0xa6c   :  { %5404 = vmatprep.mubr.f32.mxu0 %v2711_v22 }
 0xa6d   :  { %5405 = vmatmul.mubr.f32.vlgmr.msra.gmra.mrb[80].mxu0 %v5350_v32  ;;  %v2168_v32 = vld [vmem:[#allocation4 + $0x558] sm:$0xff] }
 0xa6e   :  { %v5353_v30 = vpop.f32.mrb[66].mxu0  ;;  %6255 = vmatpush3.bf16.msra.mxu0 %v6252_v10  ;;  %v6268_v10 = vpack.c.bf16 %v2166_v7, %v2165_v20 }
 0xa6f   :  { %v2721_v9 = vpop.f32.mrb[67].mxu0  ;;  %6257 = vmatprep.subr.bf16.mxu0 %v6256_v58 }
 0xa70   :  { %5407 = vmatprep.mubr.f32.mxu0 %v2721_v9 }
 0xa71   :  { %5408 = vmatmul.mubr.f32.gmra.mrb[82].mxu0 %v5353_v30  ;;  %v2170_v30 = vld [vmem:[#allocation4 + $0x568] sm:$0xff] }
 0xa72   :  { %v5356_v19 = vpop.f32.mrb[68].mxu0  ;;  %6259 = vmatpush3.bf16.msra.mxu0 %v6256_v58  ;;  %v6272_v58 = vpack.c.bf16 %v2168_v32, %v2167_v33 }
 0xa73   :  { %v2731_v1 = vpop.f32.mrb[69].mxu0  ;;  %6261 = vmatprep.subr.bf16.mxu0 %v6260_v2 }
 0xa74   :  { %5410 = vmatprep.mubr.f32.mxu0 %v2731_v1 }
 0xa75   :  { %5411 = vmatmul.mubr.f32.gmra.mrb[84].mxu0 %v5356_v19  ;;  %v2172_v19 = vld [vmem:[#allocation4 + $0x578] sm:$0xff] }
 0xa76   :  { %v5359_v45 = vpop.f32.mrb[70].mxu0  ;;  %6263 = vmatpush3.bf16.msra.mxu0 %v6260_v2  ;;  %v6276_v2 = vpack.c.bf16 %v2170_v30, %v2169_v21 }
 0xa77   :  { %v2741_v56 = vpop.f32.mrb[71].mxu0  ;;  %6265 = vmatprep.subr.bf16.mxu0 %v6264_v3 }
 0xa78   :  { %5413 = vmatprep.mubr.f32.mxu0 %v2741_v56 }
 0xa79   :  { %5414 = vmatmul.mubr.f32.gmra.mrb[86].mxu0 %v5359_v45 }
 0xa7a   :  { %v5362_v22 = vpop.f32.mrb[72].mxu0  ;;  %6267 = vmatpush3.bf16.msra.mxu0 %v6264_v3  ;;  %v6280_v3 = vpack.c.bf16 %v2172_v19, %v2171_v12 }
 0xa7b   :  { %v2751_v57 = vpop.f32.mrb[73].mxu0  ;;  %6269 = vmatprep.subr.bf16.mxu0 %v6268_v10 }
 0xa7c   :  { %5416 = vmatprep.mubr.f32.mxu0 %v2751_v57 }
 0xa7d   :  { %5417 = vmatmul.mubr.f32.gmra.mrb[88].mxu0 %v5362_v22 }
 0xa7e   :  { %v5365_v9 = vpop.f32.mrb[74].mxu0  ;;  %6271 = vmatpush3.bf16.msra.mxu0 %v6268_v10 }
 0xa7f   :  { %v2761_v55 = vpop.f32.mrb[75].mxu0  ;;  %6273 = vmatprep.subr.bf16.mxu0 %v6272_v58 }
 0xa80   :  { %5419 = vmatprep.mubr.f32.mxu0 %v2761_v55 }
 0xa81   :  { %5420 = vmatmul.mubr.f32.gmra.mrb[90].mxu0 %v5365_v9 }
 0xa82   :  { %v5368_v1 = vpop.f32.mrb[76].mxu0  ;;  %6275 = vmatpush3.bf16.msra.mxu0 %v6272_v58 }
 0xa83   :  { %v2771_v20 = vpop.f32.mrb[77].mxu0  ;;  %6277 = vmatprep.subr.bf16.mxu0 %v6276_v2 }
 0xa84   :  { %5422 = vmatprep.mubr.f32.mxu0 %v2771_v20 }
 0xa85   :  { %5423 = vmatmul.mubr.f32.gmra.mrb[92].mxu0 %v5368_v1 }
 0xa86   :  { %v5371_v7 = vpop.f32.mrb[78].mxu0  ;;  %6279 = vmatpush3.bf16.msra.mxu0 %v6276_v2 }
 0xa87   :  { %v2781_v45 = vpop.f32.mrb[79].mxu0  ;;  %6281 = vmatprep.subr.bf16.mxu0 %v6280_v3 }
 0xa88   :  { %5425 = vmatprep.mubr.f32.mxu0 %v2781_v45 }
 0xa89   :  { %5426 = vmatmul.mubr.f32.gmra.mrb[94].mxu0 %v5371_v7 }
 0xa8a   :  { %6283 = vmatpush3.bf16.msra.mxu0 %v6280_v3  ;;  %5460 = vmatprep.mubr.f32.mxu0 %v2106_v49  ;;  %v7798_v49 = vmax.f32 %v7333_v60, 0.0 }
 0xa8d   :  { %5461 = vmatmul.mubr.f32.vlgmr.msra.gmra.mrb[80].mxu0 %v2107_v16  ;;  %v7797_v16 = vmax.f32 %v7340_v4, 0.0 }
 0xa8e   :  { %5463 = vmatprep.mubr.f32.mxu0 %v2108_v52 }
 0xa91   :  { %5464 = vmatmul.mubr.f32.gmra.mrb[82].mxu0 %v2109_v8 }
 0xa92   :  { %5466 = vmatprep.mubr.f32.mxu0 %v2110_v37 }
 0xa95   :  { %5467 = vmatmul.mubr.f32.gmra.mrb[84].mxu0 %v2111_v25 }
 0xa96   :  { %5469 = vmatprep.mubr.f32.mxu0 %v2112_v47 }
 0xa99   :  { %5470 = vmatmul.mubr.f32.gmra.mrb[86].mxu0 %v2113_v42 }
 0xa9a   :  { %5472 = vmatprep.mubr.f32.mxu0 %v2114_v27 }
 0xa9d   :  { %5473 = vmatmul.mubr.f32.gmra.mrb[88].mxu0 %v2115_v54 }
 0xa9e   :  { %5475 = vmatprep.mubr.f32.mxu0 %v2116_v13 }
 0xaa1   :  { %5476 = vmatmul.mubr.f32.gmra.mrb[90].mxu0 %v2117_v41 }
 0xaa2   :  { %5478 = vmatprep.mubr.f32.mxu0 %v7795_v0 }
 0xaa5   :  { %5479 = vmatmul.mubr.f32.gmra.mrb[92].mxu0 %v7796_v6 }
 0xaa6   :  { %5481 = vmatprep.mubr.f32.mxu0 %v7797_v16 }
 0xaa9   :  { %5482 = vmatmul.mubr.f32.gmra.mrb[94].mxu0 %v7798_v49 }
 0xb60   :  { %v5462_v8 = vpop.f32.mrb[80].mxu0 }
 0xb61   :  { %v3085_v52 = vadd.f32 %v5462_v8, %v7523_v5  ;;  %v3001_v24 = vpop.f32.mrb[81].mxu0 }
 0xb62   :  { %v3084_v29 = vadd.f32 %v7523_v5, %v3001_v24 }
 0xb63   :  { %v3101_v25 = vmax.f32 %v3085_v52, 0.0 }
 0xb64   :  { %v3100_v37 = vmax.f32 %v3084_v29, 0.0  ;;  %v5465_v61 = vpop.f32.mrb[82].mxu0 }
 0xb65   :  { %v3087_v44 = vadd.f32 %v5465_v61, %v7523_v5  ;;  %v3011_v42 = vpop.f32.mrb[83].mxu0 }
 0xb66   :  { %v7528_v47 = vpack.c.bf16 %v3101_v25, %v3100_v37  ;;  %v3086_v31 = vadd.f32 %v7523_v5, %v3011_v42 }
 0xb67   :  { %v3103_v53 = vmax.f32 %v3087_v44, 0.0 }
 0xb68   :  { %v3102_v54 = vmax.f32 %v3086_v31, 0.0  ;;  %v5468_v63 = vpop.f32.mrb[84].mxu0  ;;  %6285 = vmatprep.subr.bf16.mxu1 %v7528_v47  ;;  %v3135_v31 = vld [vmem:[#allocation4 + $0x688] sm:$0xff] }
 0xb69   :  { %v3089_v27 = vadd.f32 %v5468_v63, %v7523_v5  ;;  %v3021_v35 = vpop.f32.mrb[85].mxu0  ;;  %6287 = vmatpush3.bf16.msra.mxu1 %v7528_v47  ;;  %v3137_v63 = vld [vmem:[#allocation4 + $0x698] sm:$0xff] }
 0xb6a   :  { %v6288_v40 = vpack.c.bf16 %v3103_v53, %v3102_v54  ;;  %v3088_v41 = vadd.f32 %v7523_v5, %v3021_v35  ;;  %v3136_v54 = vld [vmem:[#allocation4 + $0x690] sm:$0xff]  ;;  %v3138_v35 = vld [vmem:[#allocation4 + $0x6a0] sm:$0xff] }
 0xb6b   :  { %v3105_v13 = vmax.f32 %v3089_v27, 0.0  ;;  %v6352_v27 = vpack.c.bf16 %v3137_v63, %v3136_v54 }
 0xb6c   :  { %v3104_v46 = vmax.f32 %v3088_v41, 0.0  ;;  %v5471_v51 = vpop.f32.mrb[86].mxu0  ;;  %6289 = vmatprep.subr.bf16.mxu1 %v6288_v40 }
 0xb6d   :  { %v3091_v60 = vadd.f32 %v5471_v51, %v7523_v5  ;;  %v3031_v4 = vpop.f32.mrb[87].mxu0  ;;  %6291 = vmatpush3.bf16.msra.mxu1 %v6288_v40 }
 0xb6e   :  { %v6292_v56 = vpack.c.bf16 %v3105_v13, %v3104_v46  ;;  %v3090_v10 = vadd.f32 %v7523_v5, %v3031_v4  ;;  %v3140_v13 = vld [vmem:[#allocation4 + $0x6b0] sm:$0xff]  ;;  %v3141_v46 = vld [vmem:[#allocation4 + $0x6b8] sm:$0xff]  ;;  %v3143_v4 = vld [vmem:[#allocation4 + $0x6c8] sm:$0xff] }
 0xb6f   :  { %v3107_v33 = vmax.f32 %v3091_v60, 0.0  ;;  %v6360_v51 = vpack.c.bf16 %v3141_v46, %v3140_v13  ;;  %v3142_v60 = vld [vmem:[#allocation4 + $0x6c0] sm:$0xff]  ;;  %v3131_v46 = vld [vmem:[#allocation4 + $0x670] sm:$0xff] }
 0xb70   :  { %v3106_v32 = vmax.f32 %v3090_v10, 0.0  ;;  %v5474_v22 = vpop.f32.mrb[88].mxu0  ;;  %6293 = vmatprep.subr.bf16.mxu1 %v6292_v56  ;;  %v3144_v10 = vld [vmem:[#allocation4 + $0x6d0] sm:$0xff] }
 0xb71   :  { %v3093_v57 = vadd.f32 %v5474_v22, %v7523_v5  ;;  %v3041_v58 = vpop.f32.mrb[89].mxu0  ;;  %6295 = vmatpush3.bf16.msra.mxu1 %v6292_v56  ;;  %v3146_v22 = vld [vmem:[#allocation4 + $0x6e0] sm:$0xff] }
 0xb72   :  { %v6296_v21 = vpack.c.bf16 %v3107_v33, %v3106_v32  ;;  %v3092_v30 = vadd.f32 %v7523_v5, %v3041_v58  ;;  %v3145_v33 = vld [vmem:[#allocation4 + $0x6d8] sm:$0xff] }
 0xb73   :  { %v3109_v9 = vmax.f32 %v3093_v57, 0.0  ;;  %v6368_v32 = vpack.c.bf16 %v3145_v33, %v3144_v10  ;;  %v3147_v57 = vld [vmem:[#allocation4 + $0x6e8] sm:$0xff] }
 0xb74   :  { %v3108_v55 = vmax.f32 %v3092_v30, 0.0  ;;  %v5477_v2 = vpop.f32.mrb[90].mxu0  ;;  %6297 = vmatprep.subr.bf16.mxu1 %v6296_v21  ;;  %v6372_v58 = vpack.c.bf16 %v3147_v57, %v3146_v22  ;;  %v3149_v30 = vld [vmem:[#allocation4 + $0x6f8] sm:$0xff]  ;;  %v6577_v22 = vld [vmem:[%s7716_s6] sm:$0x7f] }
 0xb75   :  { %v3095_v12 = vadd.f32 %v5477_v2, %v7523_v5  ;;  %v3051_v19 = vpop.f32.mrb[91].mxu0  ;;  %6299 = vmatpush3.bf16.msra.mxu1 %v6296_v21  ;;  %v3118_v2 = vld [vmem:[#allocation4 + $0x608] sm:$0xff] }
 0xb76   :  { %v6300_v1 = vpack.c.bf16 %v3109_v9, %v3108_v55  ;;  %v3094_v20 = vadd.f32 %v7523_v5, %v3051_v19  ;;  %v3117_v55 = vld [vmem:[#allocation4 + $0x600] sm:$0xff] }
 0xb77   :  { %v3111_v3 = vmax.f32 %v3095_v12, 0.0  ;;  %v6380_v12 = vpack.c.bf16 %v3118_v2, %v3117_v55 }
 0xb78   :  { %v3110_v7 = vmax.f32 %v3094_v20, 0.0  ;;  %v5480_v45 = vpop.f32.mrb[92].mxu0  ;;  %6301 = vmatprep.subr.bf16.mxu1 %v6300_v1 }
 0xb79   :  { %v3097_v0 = vadd.f32 %v5480_v45, %v7523_v5  ;;  %v3061_v6 = vpop.f32.mrb[93].mxu0  ;;  %6303 = vmatpush3.bf16.msra.mxu1 %v6300_v1 }
 0xb7a   :  { %v6304_v16 = vpack.c.bf16 %v3111_v3, %v3110_v7  ;;  %v3096_v49 = vadd.f32 %v7523_v5, %v3061_v6 }
 0xb7b   :  { %v3113_v18 = vmax.f32 %v3097_v0, 0.0 }
 0xb7c   :  { %v3112_v8 = vmax.f32 %v3096_v49, 0.0  ;;  %v5483_v52 = vpop.f32.mrb[94].mxu0  ;;  %6305 = vmatprep.subr.bf16.mxu1 %v6304_v16 }
 0xb7d   :  { %v3099_v24 = vadd.f32 %v5483_v52, %v7523_v5  ;;  %v3071_v29 = vpop.f32.mrb[95].mxu0  ;;  %6307 = vmatpush3.bf16.msra.mxu1 %v6304_v16 }
 0xb7e   :  { %v6308_v25 = vpack.c.bf16 %v3113_v18, %v3112_v8  ;;  %v3098_v37 = vadd.f32 %v7523_v5, %v3071_v29  ;;  %v85_v5 = vld [vmem:[%s7713_s3 + $0x78] sm:$0xff] }
 0xb7f   :  { %v3115_v61 = vmax.f32 %v3099_v24, 0.0 }
 0xb80   :  { %v3114_v44 = vmax.f32 %v3098_v37, 0.0  ;;  %6309 = vmatprep.subr.bf16.mxu1 %v6308_v25  ;;  %v3119_v37 = vld [vmem:[#allocation4 + $0x610] sm:$0xff] }
 0xb81   :  { %6311 = vmatpush3.bf16.msra.mxu1 %v6308_v25 }
 0xb82   :  { %v6312_v42 = vpack.c.bf16 %v3115_v61, %v3114_v44  ;;  %v3120_v61 = vld [vmem:[#allocation4 + $0x618] sm:$0xff] }
 0xb84   :  { %6313 = vmatprep.subr.bf16.mxu1 %v6312_v42 }
 0xb85   :  { %6315 = vmatpush3.bf16.msra.mxu1 %v6312_v42 }
 0xb86   :  { %6317 = vmatprep.subr.bf16.mxu1 %v7528_v47 }
 0xb88   :  { %5517 = vmatmul.mubr.f32.vlgmr.msra.gmra.mrb[96].mxu1 %v7351_v59  ;;  %v70_v59 = vld [vmem:[%s7713_s3] sm:$0xff] }
 0xb89   :  { %6319 = vmatpush3.bf16.msra.mxu1 %v7528_v47  ;;  %5519 = vmatprep.mubr.f32.mxu1 %v7357_v62  ;;  %v71_v62 = vld [vmem:[%s7713_s3 + $0x8] sm:$0xff]  ;;  %v3134_v47 = vld [vmem:[#allocation4 + $0x680] sm:$0xff] }
 0xb8a   :  { %6321 = vmatprep.subr.bf16.mxu1 %v6288_v40  ;;  %v6348_v53 = vpack.c.bf16 %v3135_v31, %v3134_v47  ;;  %v3127_v47 = vld [vmem:[#allocation4 + $0x650] sm:$0xff]  ;;  %v3128_v31 = vld [vmem:[#allocation4 + $0x658] sm:$0xff] }
 0xb8b   :  { %v6400_v63 = vpack.c.bf16 %v3128_v31, %v3127_v47 }
 0xb8c   :  { %5520 = vmatmul.mubr.f32.gmra.mrb[98].mxu1 %v7363_v38  ;;  %v72_v38 = vld [vmem:[%s7713_s3 + $0x10] sm:$0xff]  ;;  %6349 = vmatprep.subr.bf16.mxu0 %v6348_v53 }
 0xb8d   :  { %6323 = vmatpush3.bf16.msra.mxu1 %v6288_v40  ;;  %5522 = vmatprep.mubr.f32.mxu1 %v7369_v15  ;;  %v73_v15 = vld [vmem:[%s7713_s3 + $0x18] sm:$0xff]  ;;  %v3139_v40 = vld [vmem:[#allocation4 + $0x6a8] sm:$0xff] }
 0xb8e   :  { %6325 = vmatprep.subr.bf16.mxu1 %v6292_v56  ;;  %6351 = vmatpush3.bf16.msra.mxu0 %v6348_v53  ;;  %v6356_v41 = vpack.c.bf16 %v3139_v40, %v3138_v35  ;;  %v3130_v35 = vld [vmem:[#allocation4 + $0x668] sm:$0xff] }
 0xb8f   :  { %6353 = vmatprep.subr.bf16.mxu0 %v6352_v27 }
 0xb90   :  { %5523 = vmatmul.mubr.f32.gmra.mrb[100].mxu1 %v7375_v26  ;;  %v74_v26 = vld [vmem:[%s7713_s3 + $0x20] sm:$0xff] }
 0xb91   :  { %6327 = vmatpush3.bf16.msra.mxu1 %v6292_v56  ;;  %5525 = vmatprep.mubr.f32.mxu1 %v7381_v43  ;;  %v75_v43 = vld [vmem:[%s7713_s3 + $0x28] sm:$0xff]  ;;  %v6364_v56 = vpack.c.bf16 %v3143_v4, %v3142_v60 }
 0xb92   :  { %6329 = vmatprep.subr.bf16.mxu1 %v6296_v21  ;;  %6355 = vmatpush3.bf16.msra.mxu0 %v6352_v27  ;;  %v3129_v27 = vld [vmem:[#allocation4 + $0x660] sm:$0xff] }
 0xb93   :  { %6357 = vmatprep.subr.bf16.mxu0 %v6356_v41  ;;  %v6404_v13 = vpack.c.bf16 %v3130_v35, %v3129_v27 }
 0xb94   :  { %5526 = vmatmul.mubr.f32.gmra.mrb[102].mxu1 %v7387_v17  ;;  %v76_v17 = vld [vmem:[%s7713_s3 + $0x30] sm:$0xff] }
 0xb95   :  { %6331 = vmatpush3.bf16.msra.mxu1 %v6296_v21  ;;  %5528 = vmatprep.mubr.f32.mxu1 %v7393_v50  ;;  %v77_v50 = vld [vmem:[%s7713_s3 + $0x38] sm:$0xff]  ;;  %v3148_v21 = vld [vmem:[#allocation4 + $0x6f0] sm:$0xff] }
 0xb96   :  { %6333 = vmatprep.subr.bf16.mxu1 %v6300_v1  ;;  %6359 = vmatpush3.bf16.msra.mxu0 %v6356_v41  ;;  %v6376_v9 = vpack.c.bf16 %v3149_v30, %v3148_v21 }
 0xb97   :  { %6361 = vmatprep.subr.bf16.mxu0 %v6360_v51 }
 0xb98   :  { %5529 = vmatmul.mubr.f32.gmra.mrb[104].mxu1 %v7399_v11  ;;  %v78_v11 = vld [vmem:[%s7713_s3 + $0x40] sm:$0xff] }
 0xb99   :  { %6335 = vmatpush3.bf16.msra.mxu1 %v6300_v1  ;;  %5531 = vmatprep.mubr.f32.mxu1 %v7405_v14  ;;  %v79_v14 = vld [vmem:[%s7713_s3 + $0x48] sm:$0xff] }
 0xb9a   :  { %6337 = vmatprep.subr.bf16.mxu1 %v6304_v16  ;;  %6363 = vmatpush3.bf16.msra.mxu0 %v6360_v51  ;;  %v3132_v51 = vld [vmem:[#allocation4 + $0x678] sm:$0xff] }
 0xb9b   :  { %6365 = vmatprep.subr.bf16.mxu0 %v6364_v56 }
 0xb9c   :  { %5532 = vmatmul.mubr.f32.gmra.mrb[106].mxu1 %v7411_v39  ;;  %v80_v39 = vld [vmem:[%s7713_s3 + $0x50] sm:$0xff] }
 0xb9d   :  { %6339 = vmatpush3.bf16.msra.mxu1 %v6304_v16  ;;  %5534 = vmatprep.mubr.f32.mxu1 %v7417_v48  ;;  %v81_v48 = vld [vmem:[%s7713_s3 + $0x58] sm:$0xff] }
 0xb9e   :  { %6341 = vmatprep.subr.bf16.mxu1 %v6308_v25  ;;  %6367 = vmatpush3.bf16.msra.mxu0 %v6364_v56  ;;  %v6408_v56 = vpack.c.bf16 %v3132_v51, %v3131_v46 }
 0xb9f   :  { %6369 = vmatprep.subr.bf16.mxu0 %v6368_v32 }
 0xba0   :  { %5535 = vmatmul.mubr.f32.gmra.mrb[108].mxu1 %v7423_v23  ;;  %v82_v23 = vld [vmem:[%s7713_s3 + $0x60] sm:$0xff] }
 0xba1   :  { %6343 = vmatpush3.bf16.msra.mxu1 %v6308_v25  ;;  %5537 = vmatprep.mubr.f32.mxu1 %v7429_v28  ;;  %v83_v28 = vld [vmem:[%s7713_s3 + $0x68] sm:$0xff] }
 0xba2   :  { %6345 = vmatprep.subr.bf16.mxu1 %v6312_v42  ;;  %6371 = vmatpush3.bf16.msra.mxu0 %v6368_v32  ;;  %v3732_v32 = vsub.s32 6, %v6986_v34 }
 0xba3   :  { %6373 = vmatprep.subr.bf16.mxu0 %v6372_v58 }
 0xba4   :  { %5538 = vmatmul.mubr.f32.gmra.mrb[110].mxu1 %v7435_v36  ;;  %v84_v36 = vld [vmem:[%s7713_s3 + $0x70] sm:$0xff]  ;;  %v3733_v57 = vrot.slane %v6577_v22, %v3732_v32 }
 0xba5   :  { %6347 = vmatpush3.bf16.msra.mxu1 %v6312_v42  ;;  %5572 = vmatprep.mubr.f32.mxu1 %v70_v59  ;;  %v6384_v59 = vpack.c.bf16 %v3120_v61, %v3119_v37 }
 0xba6   :  { %6375 = vmatpush3.bf16.msra.mxu0 %v6372_v58 }
 0xba7   :  { %6377 = vmatprep.subr.bf16.mxu0 %v6376_v9 }
 0xba8   :  { %5573 = vmatmul.mubr.f32.vlgmr.msra.gmra.mrb[112].mxu1 %v71_v62  ;;  %v3121_v62 = vld [vmem:[#allocation4 + $0x620] sm:$0xff] }
 0xba9   :  { %5575 = vmatprep.mubr.f32.mxu1 %v72_v38  ;;  %v3122_v38 = vld [vmem:[#allocation4 + $0x628] sm:$0xff] }
 0xbaa   :  { %6379 = vmatpush3.bf16.msra.mxu0 %v6376_v9 }
 0xbab   :  { %6381 = vmatprep.subr.bf16.mxu0 %v6380_v12 }
 0xbac   :  { %5576 = vmatmul.mubr.f32.gmra.mrb[114].mxu1 %v73_v15 }
 0xbad   :  { %5578 = vmatprep.mubr.f32.mxu1 %v74_v26 }
 0xbb0   :  { %5579 = vmatmul.mubr.f32.gmra.mrb[116].mxu1 %v75_v43  ;;  %v6388_v43 = vpack.c.bf16 %v3122_v38, %v3121_v62 }
 0xbb1   :  { %5581 = vmatprep.mubr.f32.mxu1 %v76_v17  ;;  %v3123_v17 = vld [vmem:[#allocation4 + $0x630] sm:$0xff] }
 0xbb4   :  { %5582 = vmatmul.mubr.f32.gmra.mrb[118].mxu1 %v77_v50  ;;  %v3124_v50 = vld [vmem:[#allocation4 + $0x638] sm:$0xff] }
 0xbb5   :  { %5584 = vmatprep.mubr.f32.mxu1 %v78_v11 }
 0xbb8   :  { %5585 = vmatmul.mubr.f32.gmra.mrb[120].mxu1 %v79_v14 }
 0xbb9   :  { %5587 = vmatprep.mubr.f32.mxu1 %v80_v39  ;;  %v6392_v39 = vpack.c.bf16 %v3124_v50, %v3123_v17 }
 0xbbc   :  { %5588 = vmatmul.mubr.f32.gmra.mrb[122].mxu1 %v81_v48  ;;  %v3125_v48 = vld [vmem:[#allocation4 + $0x640] sm:$0xff] }
 0xbbd   :  { %5590 = vmatprep.mubr.f32.mxu1 %v82_v23  ;;  %v3126_v23 = vld [vmem:[#allocation4 + $0x648] sm:$0xff] }
 0xbc0   :  { %5591 = vmatmul.mubr.f32.gmra.mrb[124].mxu1 %v83_v28 }
 0xbc1   :  { %5593 = vmatprep.mubr.f32.mxu1 %v84_v36 }
 0xbc4   :  { %5594 = vmatmul.mubr.f32.gmra.mrb[126].mxu1 %v85_v5  ;;  %v6396_v5 = vpack.c.bf16 %v3126_v23, %v3125_v48 }
 0xc5b   :  { %v7610_v19 = vpop.f32.mrb[96].mxu1 }
 0xc5c   :  { %v7612_v1 = vpop.f32.mrb[97].mxu1 }
 0xc5f   :  { %v7614_v20 = vpop.f32.mrb[98].mxu1 }
 0xc60   :  { %v7616_v3 = vpop.f32.mrb[99].mxu1 }
 0xc63   :  { %v7618_v7 = vpop.f32.mrb[100].mxu1 }
 0xc64   :  { %v7620_v45 = vpop.f32.mrb[101].mxu1 }
 0xc67   :  { %v7622_v0 = vpop.f32.mrb[102].mxu1 }
 0xc68   :  { %v7624_v6 = vpop.f32.mrb[103].mxu1 }
 0xc6b   :  { %v7626_v16 = vpop.f32.mrb[104].mxu1 }
 0xc6c   :  { %v7628_v49 = vpop.f32.mrb[105].mxu1 }
 0xc6f   :  { %v7630_v18 = vpop.f32.mrb[106].mxu1 }
 0xc70   :  { %v7632_v8 = vpop.f32.mrb[107].mxu1 }
 0xc73   :  { %v7634_v52 = vpop.f32.mrb[108].mxu1 }
 0xc74   :  { %v7636_v24 = vpop.f32.mrb[109].mxu1 }
 0xc77   :  { %v7638_v29 = vpop.f32.mrb[110].mxu1 }
 0xc78   :  { %v7640_v25 = vpop.f32.mrb[111].mxu1 }
 0xc7b   :  { %v5574_v44 = vpop.f32.mrb[112].mxu1 }
 0xc7c   :  { %v3361_v42 = vpop.f32.mrb[113].mxu1 }
 0xc7d   :  { %5628 = vmatprep.mubr.f32.mxu0 %v3361_v42 }
 0xc7e   :  { %5629 = vmatmul.mubr.f32.vlgmr.msra.gmra.mrb[96].mxu0 %v5574_v44 }
 0xc7f   :  { %v5577_v15 = vpop.f32.mrb[114].mxu1  ;;  %6383 = vmatpush3.bf16.msra.mxu0 %v6380_v12 }
 0xc80   :  { %v3371_v26 = vpop.f32.mrb[115].mxu1  ;;  %6385 = vmatprep.subr.bf16.mxu0 %v6384_v59 }
 0xc81   :  { %5631 = vmatprep.mubr.f32.mxu0 %v3371_v26 }
 0xc82   :  { %5632 = vmatmul.mubr.f32.gmra.mrb[98].mxu0 %v5577_v15 }
 0xc83   :  { %v5580_v11 = vpop.f32.mrb[116].mxu1  ;;  %6387 = vmatpush3.bf16.msra.mxu0 %v6384_v59 }
 0xc84   :  { %v3381_v14 = vpop.f32.mrb[117].mxu1  ;;  %6389 = vmatprep.subr.bf16.mxu0 %v6388_v43 }
 0xc85   :  { %5634 = vmatprep.mubr.f32.mxu0 %v3381_v14 }
 0xc86   :  { %5635 = vmatmul.mubr.f32.gmra.mrb[100].mxu0 %v5580_v11 }
 0xc87   :  { %v5583_v28 = vpop.f32.mrb[118].mxu1  ;;  %6391 = vmatpush3.bf16.msra.mxu0 %v6388_v43 }
 0xc88   :  { %v3391_v36 = vpop.f32.mrb[119].mxu1  ;;  %6393 = vmatprep.subr.bf16.mxu0 %v6392_v39 }
 0xc89   :  { %5637 = vmatprep.mubr.f32.mxu0 %v3391_v36 }
 0xc8a   :  { %5638 = vmatmul.mubr.f32.gmra.mrb[102].mxu0 %v5583_v28 }
 0xc8b   :  { %v5586_v53 = vpop.f32.mrb[120].mxu1  ;;  %6395 = vmatpush3.bf16.msra.mxu0 %v6392_v39 }
 0xc8c   :  { %v3401_v54 = vpop.f32.mrb[121].mxu1  ;;  %6397 = vmatprep.subr.bf16.mxu0 %v6396_v5 }
 0xc8d   :  { %5640 = vmatprep.mubr.f32.mxu0 %v3401_v54 }
 0xc8e   :  { %5641 = vmatmul.mubr.f32.gmra.mrb[104].mxu0 %v5586_v53 }
 0xc8f   :  { %v5589_v40 = vpop.f32.mrb[122].mxu1  ;;  %6399 = vmatpush3.bf16.msra.mxu0 %v6396_v5 }
 0xc90   :  { %v3411_v41 = vpop.f32.mrb[123].mxu1  ;;  %6401 = vmatprep.subr.bf16.mxu0 %v6400_v63 }
 0xc91   :  { %5643 = vmatprep.mubr.f32.mxu0 %v3411_v41 }
 0xc92   :  { %5644 = vmatmul.mubr.f32.gmra.mrb[106].mxu0 %v5589_v40 }
 0xc93   :  { %v5592_v60 = vpop.f32.mrb[124].mxu1  ;;  %6403 = vmatpush3.bf16.msra.mxu0 %v6400_v63 }
 0xc94   :  { %v3421_v4 = vpop.f32.mrb[125].mxu1  ;;  %6405 = vmatprep.subr.bf16.mxu0 %v6404_v13 }
 0xc95   :  { %5646 = vmatprep.mubr.f32.mxu0 %v3421_v4 }
 0xc96   :  { %5647 = vmatmul.mubr.f32.gmra.mrb[108].mxu0 %v5592_v60 }
 0xc97   :  { %v5595_v10 = vpop.f32.mrb[126].mxu1  ;;  %6407 = vmatpush3.bf16.msra.mxu0 %v6404_v13 }
 0xc98   :  { %v3431_v33 = vpop.f32.mrb[127].mxu1  ;;  %6409 = vmatprep.subr.bf16.mxu0 %v6408_v56 }
 0xc99   :  { %5649 = vmatprep.mubr.f32.mxu0 %v3431_v33 }
 0xc9a   :  { %5650 = vmatmul.mubr.f32.gmra.mrb[110].mxu0 %v5595_v10 }
 0xc9b   :  { %6411 = vmatpush3.bf16.msra.mxu0 %v6408_v56  ;;  %5684 = vmatprep.mubr.f32.mxu0 %v7612_v1 }
 0xc9e   :  { %5685 = vmatmul.mubr.f32.vlgmr.msra.gmra.mrb[96].mxu0 %v7610_v19 }
 0xc9f   :  { %5687 = vmatprep.mubr.f32.mxu0 %v7616_v3 }
 0xca2   :  { %5688 = vmatmul.mubr.f32.gmra.mrb[98].mxu0 %v7614_v20 }
 0xca3   :  { %5690 = vmatprep.mubr.f32.mxu0 %v7620_v45 }
 0xca6   :  { %5691 = vmatmul.mubr.f32.gmra.mrb[100].mxu0 %v7618_v7 }
 0xca7   :  { %5693 = vmatprep.mubr.f32.mxu0 %v7624_v6 }
 0xcaa   :  { %5694 = vmatmul.mubr.f32.gmra.mrb[102].mxu0 %v7622_v0 }
 0xcab   :  { %5696 = vmatprep.mubr.f32.mxu0 %v7628_v49 }
 0xcae   :  { %5697 = vmatmul.mubr.f32.gmra.mrb[104].mxu0 %v7626_v16 }
 0xcaf   :  { %5699 = vmatprep.mubr.f32.mxu0 %v7632_v8 }
 0xcb2   :  { %5700 = vmatmul.mubr.f32.gmra.mrb[106].mxu0 %v7630_v18 }
 0xcb3   :  { %5702 = vmatprep.mubr.f32.mxu0 %v7636_v24 }
 0xcb6   :  { %5703 = vmatmul.mubr.f32.gmra.mrb[108].mxu0 %v7634_v52 }
 0xcb7   :  { %5705 = vmatprep.mubr.f32.mxu0 %v7640_v25 }
 0xcba   :  { %5706 = vmatmul.mubr.f32.gmra.mrb[110].mxu0 %v7638_v29 }
 0xd71   :  { %v5686_v58 = vpop.f32.mrb[96].mxu0 }
 0xd72   :  { %v3735_v21 = vadd.f32 %v5686_v58, %v3733_v57  ;;  %v3651_v30 = vpop.f32.mrb[97].mxu0 }
 0xd73   :  { %v3734_v9 = vadd.f32 %v3733_v57, %v3651_v30 }
 0xd74   :  { %3751 = vst [vmem:[%s7717_s7 + $0x8] sm:$0xff] %v3735_v21 }
 0xd75   :  { %3750 = vst [vmem:[%s7717_s7] sm:$0xff] %v3734_v9  ;;  %v5689_v55 = vpop.f32.mrb[98].mxu0 }
 0xd76   :  { %v3737_v2 = vadd.f32 %v5689_v55, %v3733_v57  ;;  %v3661_v34 = vpop.f32.mrb[99].mxu0 }
 0xd77   :  { %v3736_v12 = vadd.f32 %v3733_v57, %v3661_v34 }
 0xd78   :  { %3753 = vst [vmem:[%s7717_s7 + $0x18] sm:$0xff] %v3737_v2 }
 0xd79   :  { %3752 = vst [vmem:[%s7717_s7 + $0x10] sm:$0xff] %v3736_v12  ;;  %v5692_v19 = vpop.f32.mrb[100].mxu0 }
 0xd7a   :  { %v3739_v1 = vadd.f32 %v5692_v19, %v3733_v57  ;;  %v3671_v20 = vpop.f32.mrb[101].mxu0 }
 0xd7b   :  { %v3738_v3 = vadd.f32 %v3733_v57, %v3671_v20 }
 0xd7c   :  { %3755 = vst [vmem:[%s7717_s7 + $0x28] sm:$0xff] %v3739_v1 }
 0xd7d   :  { %3754 = vst [vmem:[%s7717_s7 + $0x20] sm:$0xff] %v3738_v3  ;;  %v5695_v7 = vpop.f32.mrb[102].mxu0 }
 0xd7e   :  { %v3741_v45 = vadd.f32 %v5695_v7, %v3733_v57  ;;  %v3681_v0 = vpop.f32.mrb[103].mxu0 }
 0xd7f   :  { %v3740_v6 = vadd.f32 %v3733_v57, %v3681_v0 }
 0xd80   :  { %3757 = vst [vmem:[%s7717_s7 + $0x38] sm:$0xff] %v3741_v45 }
 0xd81   :  { %3756 = vst [vmem:[%s7717_s7 + $0x30] sm:$0xff] %v3740_v6  ;;  %v5698_v16 = vpop.f32.mrb[104].mxu0 }
 0xd82   :  { %v3743_v49 = vadd.f32 %v5698_v16, %v3733_v57  ;;  %v3691_v18 = vpop.f32.mrb[105].mxu0 }
 0xd83   :  { %v3742_v8 = vadd.f32 %v3733_v57, %v3691_v18 }
 0xd84   :  { %3759 = vst [vmem:[%s7717_s7 + $0x48] sm:$0xff] %v3743_v49 }
 0xd85   :  { %3758 = vst [vmem:[%s7717_s7 + $0x40] sm:$0xff] %v3742_v8  ;;  %v5701_v52 = vpop.f32.mrb[106].mxu0 }
 0xd86   :  { %v3745_v24 = vadd.f32 %v5701_v52, %v3733_v57  ;;  %v3701_v29 = vpop.f32.mrb[107].mxu0 }
 0xd87   :  { %v3744_v25 = vadd.f32 %v3733_v57, %v3701_v29 }
 0xd88   :  { %3761 = vst [vmem:[%s7717_s7 + $0x58] sm:$0xff] %v3745_v24 }
 0xd89   :  { %3760 = vst [vmem:[%s7717_s7 + $0x50] sm:$0xff] %v3744_v25  ;;  %v5704_v37 = vpop.f32.mrb[108].mxu0 }
 0xd8a   :  { %v3747_v61 = vadd.f32 %v5704_v37, %v3733_v57  ;;  %v3711_v44 = vpop.f32.mrb[109].mxu0 }
 0xd8b   :  { %v3746_v42 = vadd.f32 %v3733_v57, %v3711_v44 }
 0xd8c   :  { %3763 = vst [vmem:[%s7717_s7 + $0x68] sm:$0xff] %v3747_v61 }
 0xd8d   :  { %3762 = vst [vmem:[%s7717_s7 + $0x60] sm:$0xff] %v3746_v42  ;;  %v5707_v59 = vpop.f32.mrb[110].mxu0 }
 0xd8e   :  { %v3749_v62 = vadd.f32 %v5707_v59, %v3733_v57  ;;  %v3721_v38 = vpop.f32.mrb[111].mxu0 }
 0xd8f   :  { %v3748_v15 = vadd.f32 %v3733_v57, %v3721_v38 }
 0xd90   :  { %3765 = vst [vmem:[%s7717_s7 + $0x78] sm:$0xff] %v3749_v62 }
 0xd91   :  { %3764 = vst [vmem:[%s7717_s7 + $0x70] sm:$0xff] %v3748_v15 }
 0xd92   :  { %3770 = vsyncpa [#allocation3], 1 }
 0xd93   :  { %3771 = vsyncpa [#allocation5], 1 }

</bundles_post_ra>
